<compile_context>
chip_gen: v6e
topology: v6e:2x2x1
jax: 0.10.0
libtpu: 0.0.40
codegen_flags: <defaults>
</compile_context>

<pallas_src>
import functools
import math

import jax
import jax.numpy as jnp
from jax.experimental import pallas as pl
from jax.experimental.pallas import tpu as pltpu

# ----------------------- scaled-down BEATs hyper-params ---------------------
# (real BEATs: conv_dim=512, embed=768, 12 heads, 12 layers, ffn=3072)
PATCH = 16
CONV_DIM = 128     # patch_embedding out channels
EMBED_DIM = 128    # encoder embedding dim (post_extract_proj out)
NUM_HEADS = 4
FFN_DIM = 256
NUM_LAYERS = 2
N_CLASSES = 8
LN_EPS = 1e-5


# ----------------------------- in-kernel helpers ----------------------------
def _ln(x, g, b, eps=LN_EPS):
    """LayerNorm over last dim, f32 statistics."""
    mu = jnp.mean(x, axis=-1, keepdims=True)
    var = jnp.mean((x - mu) ** 2, axis=-1, keepdims=True)
    return (x - mu) * jax.lax.rsqrt(var + eps) * g + b


def _mm(x, w, b):
    """bf16 MXU matmul with f32 accumulation (w already bf16, b f32)."""
    return jnp.dot(x.astype(jnp.bfloat16), w,
                   preferred_element_type=jnp.float32) + b


# ------------------------------- fused kernel -------------------------------
def _fused_forward_kernel(
        p_ref,
        pw_ref, pb_ref, g0_ref, b0_ref,
        prw_ref, prb_ref, ge_ref, be_ref,
        qkvw_ref, qkvb_ref, ow_ref, ob_ref, g1_ref, b1_ref,
        f1w_ref, f1b_ref, f2w_ref, f2b_ref, g2_ref, b2_ref,
        fcw_ref, fcb_ref,
        o_ref, *, num_layers, num_heads):
    """Entire AudioClf forward for one batch element (one grid step)."""
    # ---------------- stem ----------------
    p = p_ref[0]                                   # (N, 256) f32 unfolded patches
    f = _mm(p, pw_ref[...], pb_ref[...])           # Conv2d(1,C,16,16) as matmul
    f = _ln(f, g0_ref[...], b0_ref[...])           # backbone.layer_norm
    x = _mm(f, prw_ref[...], prb_ref[...])         # post_extract_proj
    # dropout_input: identity at inference
    x = _ln(x, ge_ref[...], be_ref[...])           # encoder.layer_norm
    n, d = x.shape
    hd = d // num_heads

    # ---------------- transformer encoder layers ----------------
    # TODO(synk): BEATs conv positional embedding (pos_conv), gated relative
    # position bias and deep-norm residual scaling are omitted.
    for l in range(num_layers):
        qkv = _mm(x, qkvw_ref[l], qkvb_ref[l])     # (N, 3D) f32; Q pre-scaled
        qkv16 = qkv.astype(jnp.bfloat16)           # single full-width bf16 cast
        ow = ow_ref[l]                             # (D, D) bf16 out-proj weight

        attn = jnp.zeros((n, d), jnp.float32)
        for h in range(num_heads):
            q = qkv16[:, h * hd:(h + 1) * hd]
            k = qkv16[:, d + h * hd:d + (h + 1) * hd]
            v = qkv16[:, 2 * d + h * hd:2 * d + (h + 1) * hd]
            s = jax.lax.dot_general(q, k, (((1,), (1,)), ((), ())),
                                    preferred_element_type=jnp.float32)
            s = s - jnp.max(s, axis=-1, keepdims=True)
            e = jnp.exp(s)
            pmat = e / jnp.sum(e, axis=-1, keepdims=True)   # exact softmax
            hv = jnp.dot(pmat.astype(jnp.bfloat16), v,
                         preferred_element_type=jnp.float32)          # (N, hd)
            # fold the head-concat into the out-projection (no lane re-layout)
            attn = attn + jnp.dot(hv.astype(jnp.bfloat16),
                                  ow[h * hd:(h + 1) * hd, :],
                                  preferred_element_type=jnp.float32)
        attn = attn + ob_ref[l]

        x = _ln(x + attn, g1_ref[l], b1_ref[l])    # post-LN residual

        hmid = _mm(x, f1w_ref[l], f1b_ref[l])
        # TODO(synk): PyTorch F.gelu defaults to exact erf form; tanh approx here.
        hmid = jax.nn.gelu(hmid, approximate=True)
        hmid = _mm(hmid, f2w_ref[l], f2b_ref[l])
        x = _ln(x + hmid, g2_ref[l], b2_ref[l])

    # ---------------- classifier head ----------------
    # mean over tokens first, then fc: mean(xW+b) == mean(x)W+b (exact)
    m = jnp.mean(x, axis=0, keepdims=True)         # (1, D) f32
    logits = jnp.dot(m.astype(jnp.bfloat16), fcw_ref[...],
                     preferred_element_type=jnp.float32) + fcb_ref[...]
    o_ref[0] = logits.astype(o_ref.dtype)


# ------------------------------- call wrapper --------------------------------
def audio_clf_forward(kp, fbank):
    B, T, M = fbank.shape
    tp, mp = T // PATCH, M // PATCH
    N = tp * mp
    P2 = PATCH * PATCH

    # fbank.unsqueeze(1) + Conv2d(1, C, k=16, s=16): unfold non-overlapping
    # 16x16 patches in (t_patch, m_patch) row-major order; matches
    # features.reshape(B, C, -1).transpose(1, 2).
    # TODO(synk): the unfold stays a tiny (32 KB) XLA layout op — the required
    # lane-splitting reshape is not reliably lowered inside a Mosaic kernel.
    patches = fbank.reshape(B, tp, PATCH, mp, PATCH)
    patches = patches.transpose(0, 1, 3, 2, 4).reshape(B, N, P2)

    kernel = functools.partial(_fused_forward_kernel,
                               num_layers=NUM_LAYERS, num_heads=NUM_HEADS)

    def full_spec(arr):
        nd = arr.ndim
        return pl.BlockSpec(arr.shape, lambda b, _nd=nd: (0,) * _nd)

    w_args = [
        kp["patch_w"], kp["patch_b"], kp["ln0_g"], kp["ln0_b"],
        kp["proj_w"], kp["proj_b"], kp["enc_ln_g"], kp["enc_ln_b"],
        kp["qkv_w"], kp["qkv_b"], kp["o_w"], kp["o_b"], kp["ln1_g"], kp["ln1_b"],
        kp["fc1_w"], kp["fc1_b"], kp["fc2_w"], kp["fc2_b"], kp["ln2_g"], kp["ln2_b"],
        kp["fc_w"], kp["fc_b"],
    ]
    in_specs = ([pl.BlockSpec((1, N, P2), lambda b: (b, 0, 0))]
                + [full_spec(a) for a in w_args])

    out = pl.pallas_call(
        kernel,
        out_shape=jax.ShapeDtypeStruct((B, 1, N_CLASSES), jnp.float32),
        grid=(B,),
        in_specs=in_specs,
        out_specs=pl.BlockSpec((1, 1, N_CLASSES), lambda b: (b, 0, 0)),
        compiler_params=pltpu.CompilerParams(dimension_semantics=("parallel",)),
    )(patches, *w_args)
    return out.reshape(B, N_CLASSES)


# ------------------------- kernel parameter preparation ----------------------
def prepare_kernel_params(params):
    """Host-side, once: stack per-layer weights on a leading (L,...) axis,
    fold 1/sqrt(head_dim) into the Q block of qkv, reshape biases to (1, n)."""
    D, F, L = EMBED_DIM, FFN_DIM, NUM_LAYERS
    scale = 1.0 / math.sqrt(D // NUM_HEADS)

    def stack(name):
        return jnp.stack([lp[name] for lp in params["layers"]])

    qkv_w = stack("qkv_w").astype(jnp.float32)
    qkv_w = qkv_w.at[:, :, :D].multiply(scale)     # fold score scale into Q
    qkv_b = stack("qkv_b")
    qkv_b = qkv_b.at[:, :D].multiply(scale)

    return {
        "patch_w": params["patch_w"],
        "patch_b": params["patch_b"].reshape(1, -1),
        "ln0_g": params["ln0_g"].reshape(1, -1),
        "ln0_b": params["ln0_b"].reshape(1, -1),
        "proj_w": params["proj_w"],
        "proj_b": params["proj_b"].reshape(1, -1),
        "enc_ln_g": params["enc_ln_g"].reshape(1, -1),
        "enc_ln_b": params["enc_ln_b"].reshape(1, -1),
        "qkv_w": qkv_w.astype(jnp.bfloat16),
        "qkv_b": qkv_b.reshape(L, 1, 3 * D),
        "o_w": stack("o_w"),
        "o_b": stack("o_b").reshape(L, 1, D),
        "ln1_g": stack("ln1_g").reshape(L, 1, D),
        "ln1_b": stack("ln1_b").reshape(L, 1, D),
        "fc1_w": stack("fc1_w"),
        "fc1_b": stack("fc1_b").reshape(L, 1, F),
        "fc2_w": stack("fc2_w"),
        "fc2_b": stack("fc2_b").reshape(L, 1, D),
        "ln2_g": stack("ln2_g").reshape(L, 1, D),
        "ln2_b": stack("ln2_b").reshape(L, 1, D),
        "fc_w": params["fc_w"],
        "fc_b": params["fc_b"].reshape(1, -1),
    }


# ------------------------------ pure-JAX reference --------------------------
def reference_forward(params, fbank):
    B, T, M = fbank.shape
    tp, mp = T // PATCH, M // PATCH
    N = tp * mp
    D, H = EMBED_DIM, NUM_HEADS
    hd = D // H

    def lin(x, w, b):
        return x @ w.astype(jnp.float32) + b

    def ln(x, g, b):
        mu = x.mean(-1, keepdims=True)
        var = ((x - mu) ** 2).mean(-1, keepdims=True)
        return (x - mu) / jnp.sqrt(var + LN_EPS) * g + b

    patches = fbank.reshape(B, tp, PATCH, mp, PATCH)
    patches = patches.transpose(0, 1, 3, 2, 4).reshape(B, N, PATCH * PATCH)
    f = ln(lin(patches, params["patch_w"], params["patch_b"]),
           params["ln0_g"], params["ln0_b"])
    x = lin(f, params["proj_w"], params["proj_b"])
    x = ln(x, params["enc_ln_g"], params["enc_ln_b"])

    for p in params["layers"]:
        qkv = lin(x, p["qkv_w"], p["qkv_b"])
        q = qkv[..., :D].reshape(B, N, H, hd).transpose(0, 2, 1, 3)
        k = qkv[..., D:2 * D].reshape(B, N, H, hd).transpose(0, 2, 1, 3)
        v = qkv[..., 2 * D:].reshape(B, N, H, hd).transpose(0, 2, 1, 3)
        s = jnp.einsum("bhqd,bhkd->bhqk", q, k) / math.sqrt(hd)
        pmat = jax.nn.softmax(s, axis=-1)
        a = jnp.einsum("bhqk,bhkd->bhqd", pmat, v).transpose(0, 2, 1, 3).reshape(B, N, D)
        a = lin(a, p["o_w"], p["o_b"])
        x = ln(x + a, p["ln1_g"], p["ln1_b"])
        h = jax.nn.gelu(lin(x, p["fc1_w"], p["fc1_b"]), approximate=True)
        h = lin(h, p["fc2_w"], p["fc2_b"])
        x = ln(x + h, p["ln2_g"], p["ln2_b"])

    logits = lin(x, params["fc_w"], params["fc_b"])
    return logits.mean(axis=1)


# ------------------------------- parameter init ------------------------------
def init_params(key):
    def dense(k, fan_in, fan_out):
        kw, kb = jax.random.split(k)
        # matmul weights stored bf16 (MXU-native, half the DMA bytes)
        w = (jax.random.normal(kw, (fan_in, fan_out), jnp.float32) * 0.02
             ).astype(jnp.bfloat16)
        b = jax.random.normal(kb, (fan_out,), jnp.float32) * 0.02
        return w, b

    keys = jax.random.split(key, 4 + NUM_LAYERS)
    params = {}
    # patch_embedding: Conv2d(1, CONV_DIM, 16, 16) -> weight (CONV_DIM,1,16,16)
    # flattened over (kh, kw) and transposed to (256, CONV_DIM)
    params["patch_w"], params["patch_b"] = dense(keys[0], PATCH * PATCH, CONV_DIM)
    params["ln0_g"] = jnp.ones((CONV_DIM,), jnp.float32)
    params["ln0_b"] = jnp.zeros((CONV_DIM,), jnp.float32)
    params["proj_w"], params["proj_b"] = dense(keys[1], CONV_DIM, EMBED_DIM)
    params["enc_ln_g"] = jnp.ones((EMBED_DIM,), jnp.float32)
    params["enc_ln_b"] = jnp.zeros((EMBED_DIM,), jnp.float32)

    layers = []
    for li in range(NUM_LAYERS):
        lk = jax.random.split(keys[2 + li], 4)
        lp = {}
        lp["qkv_w"], lp["qkv_b"] = dense(lk[0], EMBED_DIM, 3 * EMBED_DIM)  # fused QKV
        lp["o_w"], lp["o_b"] = dense(lk[1], EMBED_DIM, EMBED_DIM)
        lp["fc1_w"], lp["fc1_b"] = dense(lk[2], EMBED_DIM, FFN_DIM)
        lp["fc2_w"], lp["fc2_b"] = dense(lk[3], FFN_DIM, EMBED_DIM)
        lp["ln1_g"] = jnp.ones((EMBED_DIM,), jnp.float32)
        lp["ln1_b"] = jnp.zeros((EMBED_DIM,), jnp.float32)
        lp["ln2_g"] = jnp.ones((EMBED_DIM,), jnp.float32)
        lp["ln2_b"] = jnp.zeros((EMBED_DIM,), jnp.float32)
        layers.append(lp)
    params["layers"] = layers
    params["fc_w"], params["fc_b"] = dense(keys[2 + NUM_LAYERS], EMBED_DIM, N_CLASSES)
    return params


if __name__ == "__main__":
    key = jax.random.PRNGKey(0)
    pkey, xkey = jax.random.split(key)
    params = init_params(pkey)
    kparams = prepare_kernel_params(params)   # host-side, once

    # fbank: (batch=2, frames=64, mel_bins=128) -> 4*8 = 32 patch tokens
    B, T, M = 2, 64, 128
    fbank = jax.random.normal(xkey, (B, T, M), jnp.float32)

    fwd = jax.jit(audio_clf_forward)
    out = jax.block_until_ready(fwd(kparams, fbank))
    assert out.shape == (B, N_CLASSES), out.shape

    ref = jax.block_until_ready(reference_forward(params, fbank))
    max_err = float(jnp.max(jnp.abs(out - ref)))
    assert max_err < 5e-2, f"max abs error {max_err}"

    print("KERNEL_OK")
</pallas_src>

<mosaic_0001>
module attributes {stable_mosaic.version = 11 : i64} {
  func.func @_fused_forward_kernel(%arg0: i32, %arg1: memref<1x32x256xf32, #tpu.memory_space<vmem>>, %arg2: memref<256x128xbf16, #tpu.memory_space<vmem>>, %arg3: memref<1x128xf32, #tpu.memory_space<vmem>>, %arg4: memref<1x128xf32, #tpu.memory_space<vmem>>, %arg5: memref<1x128xf32, #tpu.memory_space<vmem>>, %arg6: memref<128x128xbf16, #tpu.memory_space<vmem>>, %arg7: memref<1x128xf32, #tpu.memory_space<vmem>>, %arg8: memref<1x128xf32, #tpu.memory_space<vmem>>, %arg9: memref<1x128xf32, #tpu.memory_space<vmem>>, %arg10: memref<2x128x384xbf16, #tpu.memory_space<vmem>>, %arg11: memref<2x1x384xf32, #tpu.memory_space<vmem>>, %arg12: memref<2x128x128xbf16, #tpu.memory_space<vmem>>, %arg13: memref<2x1x128xf32, #tpu.memory_space<vmem>>, %arg14: memref<2x1x128xf32, #tpu.memory_space<vmem>>, %arg15: memref<2x1x128xf32, #tpu.memory_space<vmem>>, %arg16: memref<2x128x256xbf16, #tpu.memory_space<vmem>>, %arg17: memref<2x1x256xf32, #tpu.memory_space<vmem>>, %arg18: memref<2x256x128xbf16, #tpu.memory_space<vmem>>, %arg19: memref<2x1x128xf32, #tpu.memory_space<vmem>>, %arg20: memref<2x1x128xf32, #tpu.memory_space<vmem>>, %arg21: memref<2x1x128xf32, #tpu.memory_space<vmem>>, %arg22: memref<128x8xbf16, #tpu.memory_space<vmem>>, %arg23: memref<1x8xf32, #tpu.memory_space<vmem>>, %arg24: memref<1x1x8xf32, #tpu.memory_space<vmem>>) attributes {dimension_semantics = [#tpu.dimension_semantics<parallel>], iteration_bounds = array<i64: 2>, scalar_prefetch = 0 : i64, scratch_operands = 0 : i64, tpu.core_type = #tpu.core_type<tc>, window_params = [{transform_indices = @transform_0, window_bounds = array<i64: 1, 32, 256>}, {pipeline_mode = #tpu.pipeline_mode<synchronous>, transform_indices = @transform_1, window_bounds = array<i64: 256, 128>}, {pipeline_mode = #tpu.pipeline_mode<synchronous>, transform_indices = @transform_2, window_bounds = array<i64: 1, 128>}, {pipeline_mode = #tpu.pipeline_mode<synchronous>, transform_indices = @transform_3, window_bounds = array<i64: 1, 128>}, {pipeline_mode = #tpu.pipeline_mode<synchronous>, transform_indices = @transform_4, window_bounds = array<i64: 1, 128>}, {pipeline_mode = #tpu.pipeline_mode<synchronous>, transform_indices = @transform_5, window_bounds = array<i64: 128, 128>}, {pipeline_mode = #tpu.pipeline_mode<synchronous>, transform_indices = @transform_6, window_bounds = array<i64: 1, 128>}, {pipeline_mode = #tpu.pipeline_mode<synchronous>, transform_indices = @transform_7, window_bounds = array<i64: 1, 128>}, {pipeline_mode = #tpu.pipeline_mode<synchronous>, transform_indices = @transform_8, window_bounds = array<i64: 1, 128>}, {pipeline_mode = #tpu.pipeline_mode<synchronous>, transform_indices = @transform_9, window_bounds = array<i64: 2, 128, 384>}, {pipeline_mode = #tpu.pipeline_mode<synchronous>, transform_indices = @transform_10, window_bounds = array<i64: 2, 1, 384>}, {pipeline_mode = #tpu.pipeline_mode<synchronous>, transform_indices = @transform_11, window_bounds = array<i64: 2, 128, 128>}, {pipeline_mode = #tpu.pipeline_mode<synchronous>, transform_indices = @transform_12, window_bounds = array<i64: 2, 1, 128>}, {pipeline_mode = #tpu.pipeline_mode<synchronous>, transform_indices = @transform_13, window_bounds = array<i64: 2, 1, 128>}, {pipeline_mode = #tpu.pipeline_mode<synchronous>, transform_indices = @transform_14, window_bounds = array<i64: 2, 1, 128>}, {pipeline_mode = #tpu.pipeline_mode<synchronous>, transform_indices = @transform_15, window_bounds = array<i64: 2, 128, 256>}, {pipeline_mode = #tpu.pipeline_mode<synchronous>, transform_indices = @transform_16, window_bounds = array<i64: 2, 1, 256>}, {pipeline_mode = #tpu.pipeline_mode<synchronous>, transform_indices = @transform_17, window_bounds = array<i64: 2, 256, 128>}, {pipeline_mode = #tpu.pipeline_mode<synchronous>, transform_indices = @transform_18, window_bounds = array<i64: 2, 1, 128>}, {pipeline_mode = #tpu.pipeline_mode<synchronous>, transform_indices = @transform_19, window_bounds = array<i64: 2, 1, 128>}, {pipeline_mode = #tpu.pipeline_mode<synchronous>, transform_indices = @transform_20, window_bounds = array<i64: 2, 1, 128>}, {pipeline_mode = #tpu.pipeline_mode<synchronous>, transform_indices = @transform_21, window_bounds = array<i64: 128, 8>}, {pipeline_mode = #tpu.pipeline_mode<synchronous>, transform_indices = @transform_22, window_bounds = array<i64: 1, 8>}, {transform_indices = @transform_23, window_bounds = array<i64: 1, 1, 8>}]} {
    %c0 = arith.constant 0 : index
    %c0_0 = arith.constant 0 : index
    %c0_1 = arith.constant 0 : index
    %0 = vector.load %arg1[%c0, %c0_0, %c0_1] : memref<1x32x256xf32, #tpu.memory_space<vmem>>, vector<1x32x256xf32>
    %1 = vector.shape_cast %0 : vector<1x32x256xf32> to vector<32x256xf32>
    %c0_2 = arith.constant 0 : index
    %c0_3 = arith.constant 0 : index
    %2 = vector.load %arg2[%c0_2, %c0_3] : memref<256x128xbf16, #tpu.memory_space<vmem>>, vector<256x128xbf16>
    %c0_4 = arith.constant 0 : index
    %c0_5 = arith.constant 0 : index
    %3 = vector.load %arg3[%c0_4, %c0_5] : memref<1x128xf32, #tpu.memory_space<vmem>>, vector<1x128xf32>
    %4 = arith.truncf %1 : vector<32x256xf32> to vector<32x256xbf16>
    %cst = arith.constant dense<0.000000e+00> : vector<32x128xf32>
    %5 = tpu.matmul %4, %2, %cst {dimension_numbers = #tpu.dot_dimension_numbers<[1], [0], [0], [1], [0, 0, 1, 1], [], []>} : vector<32x256xbf16>, vector<256x128xbf16>, vector<32x128xf32> -> vector<32x128xf32>
    %6 = vector.broadcast %3 : vector<1x128xf32> to vector<32x128xf32>
    %7 = arith.addf %5, %6 : vector<32x128xf32>
    %c0_6 = arith.constant 0 : index
    %c0_7 = arith.constant 0 : index
    %8 = vector.load %arg4[%c0_6, %c0_7] : memref<1x128xf32, #tpu.memory_space<vmem>>, vector<1x128xf32>
    %c0_8 = arith.constant 0 : index
    %c0_9 = arith.constant 0 : index
    %9 = vector.load %arg5[%c0_8, %c0_9] : memref<1x128xf32, #tpu.memory_space<vmem>>, vector<1x128xf32>
    %cst_10 = arith.constant dense<0.000000e+00> : vector<32xf32>
    %10 = vector.multi_reduction <add>, %7, %cst_10 [1] : vector<32x128xf32> to vector<32xf32>
    %11 = vector.shape_cast %10 : vector<32xf32> to vector<32x1xf32>
    %cst_11 = arith.constant 1.280000e+02 : f32
    %12 = vector.broadcast %cst_11 : f32 to vector<32x1xf32>
    %13 = arith.divf %11, %12 : vector<32x1xf32>
    %14 = vector.broadcast %13 : vector<32x1xf32> to vector<32x128xf32>
    %15 = arith.subf %7, %14 : vector<32x128xf32>
    %16 = arith.mulf %15, %15 : vector<32x128xf32>
    %cst_12 = arith.constant dense<0.000000e+00> : vector<32xf32>
    %17 = vector.multi_reduction <add>, %16, %cst_12 [1] : vector<32x128xf32> to vector<32xf32>
    %18 = vector.shape_cast %17 : vector<32xf32> to vector<32x1xf32>
    %cst_13 = arith.constant 1.280000e+02 : f32
    %19 = vector.broadcast %cst_13 : f32 to vector<32x1xf32>
    %20 = arith.divf %18, %19 : vector<32x1xf32>
    %21 = vector.broadcast %13 : vector<32x1xf32> to vector<32x128xf32>
    %22 = arith.subf %7, %21 : vector<32x128xf32>
    %cst_14 = arith.constant 9.99999974E-6 : f32
    %23 = vector.broadcast %cst_14 : f32 to vector<32x1xf32>
    %24 = arith.addf %20, %23 : vector<32x1xf32>
    %25 = math.rsqrt %24 : vector<32x1xf32>
    %26 = vector.broadcast %25 : vector<32x1xf32> to vector<32x128xf32>
    %27 = arith.mulf %22, %26 : vector<32x128xf32>
    %28 = vector.broadcast %8 : vector<1x128xf32> to vector<32x128xf32>
    %29 = arith.mulf %27, %28 : vector<32x128xf32>
    %30 = vector.broadcast %9 : vector<1x128xf32> to vector<32x128xf32>
    %31 = arith.addf %29, %30 : vector<32x128xf32>
    %c0_15 = arith.constant 0 : index
    %c0_16 = arith.constant 0 : index
    %32 = vector.load %arg6[%c0_15, %c0_16] : memref<128x128xbf16, #tpu.memory_space<vmem>>, vector<128x128xbf16>
    %c0_17 = arith.constant 0 : index
    %c0_18 = arith.constant 0 : index
    %33 = vector.load %arg7[%c0_17, %c0_18] : memref<1x128xf32, #tpu.memory_space<vmem>>, vector<1x128xf32>
    %34 = arith.truncf %31 : vector<32x128xf32> to vector<32x128xbf16>
    %cst_19 = arith.constant dense<0.000000e+00> : vector<32x128xf32>
    %35 = tpu.matmul %34, %32, %cst_19 {dimension_numbers = #tpu.dot_dimension_numbers<[1], [0], [0], [1], [0, 0, 1, 1], [], []>} : vector<32x128xbf16>, vector<128x128xbf16>, vector<32x128xf32> -> vector<32x128xf32>
    %36 = vector.broadcast %33 : vector<1x128xf32> to vector<32x128xf32>
    %37 = arith.addf %35, %36 : vector<32x128xf32>
    %c0_20 = arith.constant 0 : index
    %c0_21 = arith.constant 0 : index
    %38 = vector.load %arg8[%c0_20, %c0_21] : memref<1x128xf32, #tpu.memory_space<vmem>>, vector<1x128xf32>
    %c0_22 = arith.constant 0 : index
    %c0_23 = arith.constant 0 : index
    %39 = vector.load %arg9[%c0_22, %c0_23] : memref<1x128xf32, #tpu.memory_space<vmem>>, vector<1x128xf32>
    %cst_24 = arith.constant dense<0.000000e+00> : vector<32xf32>
    %40 = vector.multi_reduction <add>, %37, %cst_24 [1] : vector<32x128xf32> to vector<32xf32>
    %41 = vector.shape_cast %40 : vector<32xf32> to vector<32x1xf32>
    %cst_25 = arith.constant 1.280000e+02 : f32
    %42 = vector.broadcast %cst_25 : f32 to vector<32x1xf32>
    %43 = arith.divf %41, %42 : vector<32x1xf32>
    %44 = vector.broadcast %43 : vector<32x1xf32> to vector<32x128xf32>
    %45 = arith.subf %37, %44 : vector<32x128xf32>
    %46 = arith.mulf %45, %45 : vector<32x128xf32>
    %cst_26 = arith.constant dense<0.000000e+00> : vector<32xf32>
    %47 = vector.multi_reduction <add>, %46, %cst_26 [1] : vector<32x128xf32> to vector<32xf32>
    %48 = vector.shape_cast %47 : vector<32xf32> to vector<32x1xf32>
    %cst_27 = arith.constant 1.280000e+02 : f32
    %49 = vector.broadcast %cst_27 : f32 to vector<32x1xf32>
    %50 = arith.divf %48, %49 : vector<32x1xf32>
    %51 = vector.broadcast %43 : vector<32x1xf32> to vector<32x128xf32>
    %52 = arith.subf %37, %51 : vector<32x128xf32>
    %cst_28 = arith.constant 9.99999974E-6 : f32
    %53 = vector.broadcast %cst_28 : f32 to vector<32x1xf32>
    %54 = arith.addf %50, %53 : vector<32x1xf32>
    %55 = math.rsqrt %54 : vector<32x1xf32>
    %56 = vector.broadcast %55 : vector<32x1xf32> to vector<32x128xf32>
    %57 = arith.mulf %52, %56 : vector<32x128xf32>
    %58 = vector.broadcast %38 : vector<1x128xf32> to vector<32x128xf32>
    %59 = arith.mulf %57, %58 : vector<32x128xf32>
    %60 = vector.broadcast %39 : vector<1x128xf32> to vector<32x128xf32>
    %61 = arith.addf %59, %60 : vector<32x128xf32>
    %c0_29 = arith.constant 0 : index
    %c0_30 = arith.constant 0 : index
    %c0_31 = arith.constant 0 : index
    %62 = vector.load %arg10[%c0_29, %c0_30, %c0_31] : memref<2x128x384xbf16, #tpu.memory_space<vmem>>, vector<1x128x384xbf16>
    %63 = vector.shape_cast %62 : vector<1x128x384xbf16> to vector<128x384xbf16>
    %c0_32 = arith.constant 0 : index
    %c0_33 = arith.constant 0 : index
    %c0_34 = arith.constant 0 : index
    %64 = vector.load %arg11[%c0_32, %c0_33, %c0_34] : memref<2x1x384xf32, #tpu.memory_space<vmem>>, vector<1x1x384xf32>
    %65 = vector.shape_cast %64 : vector<1x1x384xf32> to vector<1x384xf32>
    %66 = arith.truncf %61 : vector<32x128xf32> to vector<32x128xbf16>
    %cst_35 = arith.constant dense<0.000000e+00> : vector<32x384xf32>
    %67 = tpu.matmul %66, %63, %cst_35 {dimension_numbers = #tpu.dot_dimension_numbers<[1], [0], [0], [1], [0, 0, 1, 1], [], []>} : vector<32x128xbf16>, vector<128x384xbf16>, vector<32x384xf32> -> vector<32x384xf32>
    %68 = vector.broadcast %65 : vector<1x384xf32> to vector<32x384xf32>
    %69 = arith.addf %67, %68 : vector<32x384xf32>
    %70 = arith.truncf %69 : vector<32x384xf32> to vector<32x384xbf16>
    %c0_36 = arith.constant 0 : index
    %c0_37 = arith.constant 0 : index
    %c0_38 = arith.constant 0 : index
    %71 = vector.load %arg12[%c0_36, %c0_37, %c0_38] : memref<2x128x128xbf16, #tpu.memory_space<vmem>>, vector<1x128x128xbf16>
    %72 = vector.shape_cast %71 : vector<1x128x128xbf16> to vector<128x128xbf16>
    %cst_39 = arith.constant 0.000000e+00 : f32
    %73 = vector.broadcast %cst_39 : f32 to vector<32x128xf32>
    %74 = vector.extract_strided_slice %70 {offsets = [0, 0], sizes = [32, 32], strides = [1, 1]} : vector<32x384xbf16> to vector<32x32xbf16>
    %75 = vector.extract_strided_slice %70 {offsets = [0, 128], sizes = [32, 32], strides = [1, 1]} : vector<32x384xbf16> to vector<32x32xbf16>
    %76 = vector.extract_strided_slice %70 {offsets = [0, 256], sizes = [32, 32], strides = [1, 1]} : vector<32x384xbf16> to vector<32x32xbf16>
    %cst_40 = arith.constant dense<0.000000e+00> : vector<32x32xf32>
    %77 = tpu.matmul %74, %75, %cst_40 {dimension_numbers = #tpu.dot_dimension_numbers<[1], [1], [0], [0], [0, 0, 1, 0], [], []>} : vector<32x32xbf16>, vector<32x32xbf16>, vector<32x32xf32> -> vector<32x32xf32>
    %cst_41 = arith.constant dense<0xFF800000> : vector<32xf32>
    %78 = vector.multi_reduction <maximumf>, %77, %cst_41 [1] : vector<32x32xf32> to vector<32xf32>
    %79 = vector.shape_cast %78 : vector<32xf32> to vector<32x1xf32>
    %80 = vector.broadcast %79 : vector<32x1xf32> to vector<32x32xf32>
    %81 = arith.subf %77, %80 : vector<32x32xf32>
    %82 = math.exp %81 : vector<32x32xf32>
    %cst_42 = arith.constant dense<0.000000e+00> : vector<32xf32>
    %83 = vector.multi_reduction <add>, %82, %cst_42 [1] : vector<32x32xf32> to vector<32xf32>
    %84 = vector.shape_cast %83 : vector<32xf32> to vector<32x1xf32>
    %85 = vector.broadcast %84 : vector<32x1xf32> to vector<32x32xf32>
    %86 = arith.divf %82, %85 : vector<32x32xf32>
    %87 = arith.truncf %86 : vector<32x32xf32> to vector<32x32xbf16>
    %cst_43 = arith.constant dense<0.000000e+00> : vector<32x32xf32>
    %88 = tpu.matmul %87, %76, %cst_43 {dimension_numbers = #tpu.dot_dimension_numbers<[1], [0], [0], [1], [0, 0, 1, 1], [], []>} : vector<32x32xbf16>, vector<32x32xbf16>, vector<32x32xf32> -> vector<32x32xf32>
    %89 = arith.truncf %88 : vector<32x32xf32> to vector<32x32xbf16>
    %90 = vector.extract_strided_slice %72 {offsets = [0, 0], sizes = [32, 128], strides = [1, 1]} : vector<128x128xbf16> to vector<32x128xbf16>
    %cst_44 = arith.constant dense<0.000000e+00> : vector<32x128xf32>
    %91 = tpu.matmul %89, %90, %cst_44 {dimension_numbers = #tpu.dot_dimension_numbers<[1], [0], [0], [1], [0, 0, 1, 1], [], []>} : vector<32x32xbf16>, vector<32x128xbf16>, vector<32x128xf32> -> vector<32x128xf32>
    %92 = arith.addf %73, %91 : vector<32x128xf32>
    %93 = vector.extract_strided_slice %70 {offsets = [0, 32], sizes = [32, 32], strides = [1, 1]} : vector<32x384xbf16> to vector<32x32xbf16>
    %94 = vector.extract_strided_slice %70 {offsets = [0, 160], sizes = [32, 32], strides = [1, 1]} : vector<32x384xbf16> to vector<32x32xbf16>
    %95 = vector.extract_strided_slice %70 {offsets = [0, 288], sizes = [32, 32], strides = [1, 1]} : vector<32x384xbf16> to vector<32x32xbf16>
    %cst_45 = arith.constant dense<0.000000e+00> : vector<32x32xf32>
    %96 = tpu.matmul %93, %94, %cst_45 {dimension_numbers = #tpu.dot_dimension_numbers<[1], [1], [0], [0], [0, 0, 1, 0], [], []>} : vector<32x32xbf16>, vector<32x32xbf16>, vector<32x32xf32> -> vector<32x32xf32>
    %cst_46 = arith.constant dense<0xFF800000> : vector<32xf32>
    %97 = vector.multi_reduction <maximumf>, %96, %cst_46 [1] : vector<32x32xf32> to vector<32xf32>
    %98 = vector.shape_cast %97 : vector<32xf32> to vector<32x1xf32>
    %99 = vector.broadcast %98 : vector<32x1xf32> to vector<32x32xf32>
    %100 = arith.subf %96, %99 : vector<32x32xf32>
    %101 = math.exp %100 : vector<32x32xf32>
    %cst_47 = arith.constant dense<0.000000e+00> : vector<32xf32>
    %102 = vector.multi_reduction <add>, %101, %cst_47 [1] : vector<32x32xf32> to vector<32xf32>
    %103 = vector.shape_cast %102 : vector<32xf32> to vector<32x1xf32>
    %104 = vector.broadcast %103 : vector<32x1xf32> to vector<32x32xf32>
    %105 = arith.divf %101, %104 : vector<32x32xf32>
    %106 = arith.truncf %105 : vector<32x32xf32> to vector<32x32xbf16>
    %cst_48 = arith.constant dense<0.000000e+00> : vector<32x32xf32>
    %107 = tpu.matmul %106, %95, %cst_48 {dimension_numbers = #tpu.dot_dimension_numbers<[1], [0], [0], [1], [0, 0, 1, 1], [], []>} : vector<32x32xbf16>, vector<32x32xbf16>, vector<32x32xf32> -> vector<32x32xf32>
    %108 = arith.truncf %107 : vector<32x32xf32> to vector<32x32xbf16>
    %109 = vector.extract_strided_slice %72 {offsets = [32, 0], sizes = [32, 128], strides = [1, 1]} : vector<128x128xbf16> to vector<32x128xbf16>
    %cst_49 = arith.constant dense<0.000000e+00> : vector<32x128xf32>
    %110 = tpu.matmul %108, %109, %cst_49 {dimension_numbers = #tpu.dot_dimension_numbers<[1], [0], [0], [1], [0, 0, 1, 1], [], []>} : vector<32x32xbf16>, vector<32x128xbf16>, vector<32x128xf32> -> vector<32x128xf32>
    %111 = arith.addf %92, %110 : vector<32x128xf32>
    %112 = vector.extract_strided_slice %70 {offsets = [0, 64], sizes = [32, 32], strides = [1, 1]} : vector<32x384xbf16> to vector<32x32xbf16>
    %113 = vector.extract_strided_slice %70 {offsets = [0, 192], sizes = [32, 32], strides = [1, 1]} : vector<32x384xbf16> to vector<32x32xbf16>
    %114 = vector.extract_strided_slice %70 {offsets = [0, 320], sizes = [32, 32], strides = [1, 1]} : vector<32x384xbf16> to vector<32x32xbf16>
    %cst_50 = arith.constant dense<0.000000e+00> : vector<32x32xf32>
    %115 = tpu.matmul %112, %113, %cst_50 {dimension_numbers = #tpu.dot_dimension_numbers<[1], [1], [0], [0], [0, 0, 1, 0], [], []>} : vector<32x32xbf16>, vector<32x32xbf16>, vector<32x32xf32> -> vector<32x32xf32>
    %cst_51 = arith.constant dense<0xFF800000> : vector<32xf32>
    %116 = vector.multi_reduction <maximumf>, %115, %cst_51 [1] : vector<32x32xf32> to vector<32xf32>
    %117 = vector.shape_cast %116 : vector<32xf32> to vector<32x1xf32>
    %118 = vector.broadcast %117 : vector<32x1xf32> to vector<32x32xf32>
    %119 = arith.subf %115, %118 : vector<32x32xf32>
    %120 = math.exp %119 : vector<32x32xf32>
    %cst_52 = arith.constant dense<0.000000e+00> : vector<32xf32>
    %121 = vector.multi_reduction <add>, %120, %cst_52 [1] : vector<32x32xf32> to vector<32xf32>
    %122 = vector.shape_cast %121 : vector<32xf32> to vector<32x1xf32>
    %123 = vector.broadcast %122 : vector<32x1xf32> to vector<32x32xf32>
    %124 = arith.divf %120, %123 : vector<32x32xf32>
    %125 = arith.truncf %124 : vector<32x32xf32> to vector<32x32xbf16>
    %cst_53 = arith.constant dense<0.000000e+00> : vector<32x32xf32>
    %126 = tpu.matmul %125, %114, %cst_53 {dimension_numbers = #tpu.dot_dimension_numbers<[1], [0], [0], [1], [0, 0, 1, 1], [], []>} : vector<32x32xbf16>, vector<32x32xbf16>, vector<32x32xf32> -> vector<32x32xf32>
    %127 = arith.truncf %126 : vector<32x32xf32> to vector<32x32xbf16>
    %128 = vector.extract_strided_slice %72 {offsets = [64, 0], sizes = [32, 128], strides = [1, 1]} : vector<128x128xbf16> to vector<32x128xbf16>
    %cst_54 = arith.constant dense<0.000000e+00> : vector<32x128xf32>
    %129 = tpu.matmul %127, %128, %cst_54 {dimension_numbers = #tpu.dot_dimension_numbers<[1], [0], [0], [1], [0, 0, 1, 1], [], []>} : vector<32x32xbf16>, vector<32x128xbf16>, vector<32x128xf32> -> vector<32x128xf32>
    %130 = arith.addf %111, %129 : vector<32x128xf32>
    %131 = vector.extract_strided_slice %70 {offsets = [0, 96], sizes = [32, 32], strides = [1, 1]} : vector<32x384xbf16> to vector<32x32xbf16>
    %132 = vector.extract_strided_slice %70 {offsets = [0, 224], sizes = [32, 32], strides = [1, 1]} : vector<32x384xbf16> to vector<32x32xbf16>
    %133 = vector.extract_strided_slice %70 {offsets = [0, 352], sizes = [32, 32], strides = [1, 1]} : vector<32x384xbf16> to vector<32x32xbf16>
    %cst_55 = arith.constant dense<0.000000e+00> : vector<32x32xf32>
    %134 = tpu.matmul %131, %132, %cst_55 {dimension_numbers = #tpu.dot_dimension_numbers<[1], [1], [0], [0], [0, 0, 1, 0], [], []>} : vector<32x32xbf16>, vector<32x32xbf16>, vector<32x32xf32> -> vector<32x32xf32>
    %cst_56 = arith.constant dense<0xFF800000> : vector<32xf32>
    %135 = vector.multi_reduction <maximumf>, %134, %cst_56 [1] : vector<32x32xf32> to vector<32xf32>
    %136 = vector.shape_cast %135 : vector<32xf32> to vector<32x1xf32>
    %137 = vector.broadcast %136 : vector<32x1xf32> to vector<32x32xf32>
    %138 = arith.subf %134, %137 : vector<32x32xf32>
    %139 = math.exp %138 : vector<32x32xf32>
    %cst_57 = arith.constant dense<0.000000e+00> : vector<32xf32>
    %140 = vector.multi_reduction <add>, %139, %cst_57 [1] : vector<32x32xf32> to vector<32xf32>
    %141 = vector.shape_cast %140 : vector<32xf32> to vector<32x1xf32>
    %142 = vector.broadcast %141 : vector<32x1xf32> to vector<32x32xf32>
    %143 = arith.divf %139, %142 : vector<32x32xf32>
    %144 = arith.truncf %143 : vector<32x32xf32> to vector<32x32xbf16>
    %cst_58 = arith.constant dense<0.000000e+00> : vector<32x32xf32>
    %145 = tpu.matmul %144, %133, %cst_58 {dimension_numbers = #tpu.dot_dimension_numbers<[1], [0], [0], [1], [0, 0, 1, 1], [], []>} : vector<32x32xbf16>, vector<32x32xbf16>, vector<32x32xf32> -> vector<32x32xf32>
    %146 = arith.truncf %145 : vector<32x32xf32> to vector<32x32xbf16>
    %147 = vector.extract_strided_slice %72 {offsets = [96, 0], sizes = [32, 128], strides = [1, 1]} : vector<128x128xbf16> to vector<32x128xbf16>
    %cst_59 = arith.constant dense<0.000000e+00> : vector<32x128xf32>
    %148 = tpu.matmul %146, %147, %cst_59 {dimension_numbers = #tpu.dot_dimension_numbers<[1], [0], [0], [1], [0, 0, 1, 1], [], []>} : vector<32x32xbf16>, vector<32x128xbf16>, vector<32x128xf32> -> vector<32x128xf32>
    %149 = arith.addf %130, %148 : vector<32x128xf32>
    %c0_60 = arith.constant 0 : index
    %c0_61 = arith.constant 0 : index
    %c0_62 = arith.constant 0 : index
    %150 = vector.load %arg13[%c0_60, %c0_61, %c0_62] : memref<2x1x128xf32, #tpu.memory_space<vmem>>, vector<1x1x128xf32>
    %151 = vector.shape_cast %150 : vector<1x1x128xf32> to vector<1x128xf32>
    %152 = vector.broadcast %151 : vector<1x128xf32> to vector<32x128xf32>
    %153 = arith.addf %149, %152 : vector<32x128xf32>
    %154 = arith.addf %61, %153 : vector<32x128xf32>
    %c0_63 = arith.constant 0 : index
    %c0_64 = arith.constant 0 : index
    %c0_65 = arith.constant 0 : index
    %155 = vector.load %arg14[%c0_63, %c0_64, %c0_65] : memref<2x1x128xf32, #tpu.memory_space<vmem>>, vector<1x1x128xf32>
    %156 = vector.shape_cast %155 : vector<1x1x128xf32> to vector<1x128xf32>
    %c0_66 = arith.constant 0 : index
    %c0_67 = arith.constant 0 : index
    %c0_68 = arith.constant 0 : index
    %157 = vector.load %arg15[%c0_66, %c0_67, %c0_68] : memref<2x1x128xf32, #tpu.memory_space<vmem>>, vector<1x1x128xf32>
    %158 = vector.shape_cast %157 : vector<1x1x128xf32> to vector<1x128xf32>
    %cst_69 = arith.constant dense<0.000000e+00> : vector<32xf32>
    %159 = vector.multi_reduction <add>, %154, %cst_69 [1] : vector<32x128xf32> to vector<32xf32>
    %160 = vector.shape_cast %159 : vector<32xf32> to vector<32x1xf32>
    %cst_70 = arith.constant 1.280000e+02 : f32
    %161 = vector.broadcast %cst_70 : f32 to vector<32x1xf32>
    %162 = arith.divf %160, %161 : vector<32x1xf32>
    %163 = vector.broadcast %162 : vector<32x1xf32> to vector<32x128xf32>
    %164 = arith.subf %154, %163 : vector<32x128xf32>
    %165 = arith.mulf %164, %164 : vector<32x128xf32>
    %cst_71 = arith.constant dense<0.000000e+00> : vector<32xf32>
    %166 = vector.multi_reduction <add>, %165, %cst_71 [1] : vector<32x128xf32> to vector<32xf32>
    %167 = vector.shape_cast %166 : vector<32xf32> to vector<32x1xf32>
    %cst_72 = arith.constant 1.280000e+02 : f32
    %168 = vector.broadcast %cst_72 : f32 to vector<32x1xf32>
    %169 = arith.divf %167, %168 : vector<32x1xf32>
    %170 = vector.broadcast %162 : vector<32x1xf32> to vector<32x128xf32>
    %171 = arith.subf %154, %170 : vector<32x128xf32>
    %cst_73 = arith.constant 9.99999974E-6 : f32
    %172 = vector.broadcast %cst_73 : f32 to vector<32x1xf32>
    %173 = arith.addf %169, %172 : vector<32x1xf32>
    %174 = math.rsqrt %173 : vector<32x1xf32>
    %175 = vector.broadcast %174 : vector<32x1xf32> to vector<32x128xf32>
    %176 = arith.mulf %171, %175 : vector<32x128xf32>
    %177 = vector.broadcast %156 : vector<1x128xf32> to vector<32x128xf32>
    %178 = arith.mulf %176, %177 : vector<32x128xf32>
    %179 = vector.broadcast %158 : vector<1x128xf32> to vector<32x128xf32>
    %180 = arith.addf %178, %179 : vector<32x128xf32>
    %c0_74 = arith.constant 0 : index
    %c0_75 = arith.constant 0 : index
    %c0_76 = arith.constant 0 : index
    %181 = vector.load %arg16[%c0_74, %c0_75, %c0_76] : memref<2x128x256xbf16, #tpu.memory_space<vmem>>, vector<1x128x256xbf16>
    %182 = vector.shape_cast %181 : vector<1x128x256xbf16> to vector<128x256xbf16>
    %c0_77 = arith.constant 0 : index
    %c0_78 = arith.constant 0 : index
    %c0_79 = arith.constant 0 : index
    %183 = vector.load %arg17[%c0_77, %c0_78, %c0_79] : memref<2x1x256xf32, #tpu.memory_space<vmem>>, vector<1x1x256xf32>
    %184 = vector.shape_cast %183 : vector<1x1x256xf32> to vector<1x256xf32>
    %185 = arith.truncf %180 : vector<32x128xf32> to vector<32x128xbf16>
    %cst_80 = arith.constant dense<0.000000e+00> : vector<32x256xf32>
    %186 = tpu.matmul %185, %182, %cst_80 {dimension_numbers = #tpu.dot_dimension_numbers<[1], [0], [0], [1], [0, 0, 1, 1], [], []>} : vector<32x128xbf16>, vector<128x256xbf16>, vector<32x256xf32> -> vector<32x256xf32>
    %187 = vector.broadcast %184 : vector<1x256xf32> to vector<32x256xf32>
    %188 = arith.addf %186, %187 : vector<32x256xf32>
    %189 = arith.mulf %188, %188 : vector<32x256xf32>
    %190 = arith.mulf %188, %189 : vector<32x256xf32>
    %cst_81 = arith.constant 4.471500e-02 : f32
    %191 = vector.broadcast %cst_81 : f32 to vector<32x256xf32>
    %192 = arith.mulf %191, %190 : vector<32x256xf32>
    %193 = arith.addf %188, %192 : vector<32x256xf32>
    %cst_82 = arith.constant 0.797884583 : f32
    %194 = vector.broadcast %cst_82 : f32 to vector<32x256xf32>
    %195 = arith.mulf %194, %193 : vector<32x256xf32>
    %196 = math.tanh %195 : vector<32x256xf32>
    %cst_83 = arith.constant 1.000000e+00 : f32
    %197 = vector.broadcast %cst_83 : f32 to vector<32x256xf32>
    %198 = arith.addf %197, %196 : vector<32x256xf32>
    %cst_84 = arith.constant 5.000000e-01 : f32
    %199 = vector.broadcast %cst_84 : f32 to vector<32x256xf32>
    %200 = arith.mulf %199, %198 : vector<32x256xf32>
    %201 = arith.mulf %188, %200 : vector<32x256xf32>
    %c0_85 = arith.constant 0 : index
    %c0_86 = arith.constant 0 : index
    %c0_87 = arith.constant 0 : index
    %202 = vector.load %arg18[%c0_85, %c0_86, %c0_87] : memref<2x256x128xbf16, #tpu.memory_space<vmem>>, vector<1x256x128xbf16>
    %203 = vector.shape_cast %202 : vector<1x256x128xbf16> to vector<256x128xbf16>
    %c0_88 = arith.constant 0 : index
    %c0_89 = arith.constant 0 : index
    %c0_90 = arith.constant 0 : index
    %204 = vector.load %arg19[%c0_88, %c0_89, %c0_90] : memref<2x1x128xf32, #tpu.memory_space<vmem>>, vector<1x1x128xf32>
    %205 = vector.shape_cast %204 : vector<1x1x128xf32> to vector<1x128xf32>
    %206 = arith.truncf %201 : vector<32x256xf32> to vector<32x256xbf16>
    %cst_91 = arith.constant dense<0.000000e+00> : vector<32x128xf32>
    %207 = tpu.matmul %206, %203, %cst_91 {dimension_numbers = #tpu.dot_dimension_numbers<[1], [0], [0], [1], [0, 0, 1, 1], [], []>} : vector<32x256xbf16>, vector<256x128xbf16>, vector<32x128xf32> -> vector<32x128xf32>
    %208 = vector.broadcast %205 : vector<1x128xf32> to vector<32x128xf32>
    %209 = arith.addf %207, %208 : vector<32x128xf32>
    %210 = arith.addf %180, %209 : vector<32x128xf32>
    %c0_92 = arith.constant 0 : index
    %c0_93 = arith.constant 0 : index
    %c0_94 = arith.constant 0 : index
    %211 = vector.load %arg20[%c0_92, %c0_93, %c0_94] : memref<2x1x128xf32, #tpu.memory_space<vmem>>, vector<1x1x128xf32>
    %212 = vector.shape_cast %211 : vector<1x1x128xf32> to vector<1x128xf32>
    %c0_95 = arith.constant 0 : index
    %c0_96 = arith.constant 0 : index
    %c0_97 = arith.constant 0 : index
    %213 = vector.load %arg21[%c0_95, %c0_96, %c0_97] : memref<2x1x128xf32, #tpu.memory_space<vmem>>, vector<1x1x128xf32>
    %214 = vector.shape_cast %213 : vector<1x1x128xf32> to vector<1x128xf32>
    %cst_98 = arith.constant dense<0.000000e+00> : vector<32xf32>
    %215 = vector.multi_reduction <add>, %210, %cst_98 [1] : vector<32x128xf32> to vector<32xf32>
    %216 = vector.shape_cast %215 : vector<32xf32> to vector<32x1xf32>
    %cst_99 = arith.constant 1.280000e+02 : f32
    %217 = vector.broadcast %cst_99 : f32 to vector<32x1xf32>
    %218 = arith.divf %216, %217 : vector<32x1xf32>
    %219 = vector.broadcast %218 : vector<32x1xf32> to vector<32x128xf32>
    %220 = arith.subf %210, %219 : vector<32x128xf32>
    %221 = arith.mulf %220, %220 : vector<32x128xf32>
    %cst_100 = arith.constant dense<0.000000e+00> : vector<32xf32>
    %222 = vector.multi_reduction <add>, %221, %cst_100 [1] : vector<32x128xf32> to vector<32xf32>
    %223 = vector.shape_cast %222 : vector<32xf32> to vector<32x1xf32>
    %cst_101 = arith.constant 1.280000e+02 : f32
    %224 = vector.broadcast %cst_101 : f32 to vector<32x1xf32>
    %225 = arith.divf %223, %224 : vector<32x1xf32>
    %226 = vector.broadcast %218 : vector<32x1xf32> to vector<32x128xf32>
    %227 = arith.subf %210, %226 : vector<32x128xf32>
    %cst_102 = arith.constant 9.99999974E-6 : f32
    %228 = vector.broadcast %cst_102 : f32 to vector<32x1xf32>
    %229 = arith.addf %225, %228 : vector<32x1xf32>
    %230 = math.rsqrt %229 : vector<32x1xf32>
    %231 = vector.broadcast %230 : vector<32x1xf32> to vector<32x128xf32>
    %232 = arith.mulf %227, %231 : vector<32x128xf32>
    %233 = vector.broadcast %212 : vector<1x128xf32> to vector<32x128xf32>
    %234 = arith.mulf %232, %233 : vector<32x128xf32>
    %235 = vector.broadcast %214 : vector<1x128xf32> to vector<32x128xf32>
    %236 = arith.addf %234, %235 : vector<32x128xf32>
    %c1 = arith.constant 1 : index
    %c0_103 = arith.constant 0 : index
    %c0_104 = arith.constant 0 : index
    %237 = vector.load %arg10[%c1, %c0_103, %c0_104] : memref<2x128x384xbf16, #tpu.memory_space<vmem>>, vector<1x128x384xbf16>
    %238 = vector.shape_cast %237 : vector<1x128x384xbf16> to vector<128x384xbf16>
    %c1_105 = arith.constant 1 : index
    %c0_106 = arith.constant 0 : index
    %c0_107 = arith.constant 0 : index
    %239 = vector.load %arg11[%c1_105, %c0_106, %c0_107] : memref<2x1x384xf32, #tpu.memory_space<vmem>>, vector<1x1x384xf32>
    %240 = vector.shape_cast %239 : vector<1x1x384xf32> to vector<1x384xf32>
    %241 = arith.truncf %236 : vector<32x128xf32> to vector<32x128xbf16>
    %cst_108 = arith.constant dense<0.000000e+00> : vector<32x384xf32>
    %242 = tpu.matmul %241, %238, %cst_108 {dimension_numbers = #tpu.dot_dimension_numbers<[1], [0], [0], [1], [0, 0, 1, 1], [], []>} : vector<32x128xbf16>, vector<128x384xbf16>, vector<32x384xf32> -> vector<32x384xf32>
    %243 = vector.broadcast %240 : vector<1x384xf32> to vector<32x384xf32>
    %244 = arith.addf %242, %243 : vector<32x384xf32>
    %245 = arith.truncf %244 : vector<32x384xf32> to vector<32x384xbf16>
    %c1_109 = arith.constant 1 : index
    %c0_110 = arith.constant 0 : index
    %c0_111 = arith.constant 0 : index
    %246 = vector.load %arg12[%c1_109, %c0_110, %c0_111] : memref<2x128x128xbf16, #tpu.memory_space<vmem>>, vector<1x128x128xbf16>
    %247 = vector.shape_cast %246 : vector<1x128x128xbf16> to vector<128x128xbf16>
    %cst_112 = arith.constant 0.000000e+00 : f32
    %248 = vector.broadcast %cst_112 : f32 to vector<32x128xf32>
    %249 = vector.extract_strided_slice %245 {offsets = [0, 0], sizes = [32, 32], strides = [1, 1]} : vector<32x384xbf16> to vector<32x32xbf16>
    %250 = vector.extract_strided_slice %245 {offsets = [0, 128], sizes = [32, 32], strides = [1, 1]} : vector<32x384xbf16> to vector<32x32xbf16>
    %251 = vector.extract_strided_slice %245 {offsets = [0, 256], sizes = [32, 32], strides = [1, 1]} : vector<32x384xbf16> to vector<32x32xbf16>
    %cst_113 = arith.constant dense<0.000000e+00> : vector<32x32xf32>
    %252 = tpu.matmul %249, %250, %cst_113 {dimension_numbers = #tpu.dot_dimension_numbers<[1], [1], [0], [0], [0, 0, 1, 0], [], []>} : vector<32x32xbf16>, vector<32x32xbf16>, vector<32x32xf32> -> vector<32x32xf32>
    %cst_114 = arith.constant dense<0xFF800000> : vector<32xf32>
    %253 = vector.multi_reduction <maximumf>, %252, %cst_114 [1] : vector<32x32xf32> to vector<32xf32>
    %254 = vector.shape_cast %253 : vector<32xf32> to vector<32x1xf32>
    %255 = vector.broadcast %254 : vector<32x1xf32> to vector<32x32xf32>
    %256 = arith.subf %252, %255 : vector<32x32xf32>
    %257 = math.exp %256 : vector<32x32xf32>
    %cst_115 = arith.constant dense<0.000000e+00> : vector<32xf32>
    %258 = vector.multi_reduction <add>, %257, %cst_115 [1] : vector<32x32xf32> to vector<32xf32>
    %259 = vector.shape_cast %258 : vector<32xf32> to vector<32x1xf32>
    %260 = vector.broadcast %259 : vector<32x1xf32> to vector<32x32xf32>
    %261 = arith.divf %257, %260 : vector<32x32xf32>
    %262 = arith.truncf %261 : vector<32x32xf32> to vector<32x32xbf16>
    %cst_116 = arith.constant dense<0.000000e+00> : vector<32x32xf32>
    %263 = tpu.matmul %262, %251, %cst_116 {dimension_numbers = #tpu.dot_dimension_numbers<[1], [0], [0], [1], [0, 0, 1, 1], [], []>} : vector<32x32xbf16>, vector<32x32xbf16>, vector<32x32xf32> -> vector<32x32xf32>
    %264 = arith.truncf %263 : vector<32x32xf32> to vector<32x32xbf16>
    %265 = vector.extract_strided_slice %247 {offsets = [0, 0], sizes = [32, 128], strides = [1, 1]} : vector<128x128xbf16> to vector<32x128xbf16>
    %cst_117 = arith.constant dense<0.000000e+00> : vector<32x128xf32>
    %266 = tpu.matmul %264, %265, %cst_117 {dimension_numbers = #tpu.dot_dimension_numbers<[1], [0], [0], [1], [0, 0, 1, 1], [], []>} : vector<32x32xbf16>, vector<32x128xbf16>, vector<32x128xf32> -> vector<32x128xf32>
    %267 = arith.addf %248, %266 : vector<32x128xf32>
    %268 = vector.extract_strided_slice %245 {offsets = [0, 32], sizes = [32, 32], strides = [1, 1]} : vector<32x384xbf16> to vector<32x32xbf16>
    %269 = vector.extract_strided_slice %245 {offsets = [0, 160], sizes = [32, 32], strides = [1, 1]} : vector<32x384xbf16> to vector<32x32xbf16>
    %270 = vector.extract_strided_slice %245 {offsets = [0, 288], sizes = [32, 32], strides = [1, 1]} : vector<32x384xbf16> to vector<32x32xbf16>
    %cst_118 = arith.constant dense<0.000000e+00> : vector<32x32xf32>
    %271 = tpu.matmul %268, %269, %cst_118 {dimension_numbers = #tpu.dot_dimension_numbers<[1], [1], [0], [0], [0, 0, 1, 0], [], []>} : vector<32x32xbf16>, vector<32x32xbf16>, vector<32x32xf32> -> vector<32x32xf32>
    %cst_119 = arith.constant dense<0xFF800000> : vector<32xf32>
    %272 = vector.multi_reduction <maximumf>, %271, %cst_119 [1] : vector<32x32xf32> to vector<32xf32>
    %273 = vector.shape_cast %272 : vector<32xf32> to vector<32x1xf32>
    %274 = vector.broadcast %273 : vector<32x1xf32> to vector<32x32xf32>
    %275 = arith.subf %271, %274 : vector<32x32xf32>
    %276 = math.exp %275 : vector<32x32xf32>
    %cst_120 = arith.constant dense<0.000000e+00> : vector<32xf32>
    %277 = vector.multi_reduction <add>, %276, %cst_120 [1] : vector<32x32xf32> to vector<32xf32>
    %278 = vector.shape_cast %277 : vector<32xf32> to vector<32x1xf32>
    %279 = vector.broadcast %278 : vector<32x1xf32> to vector<32x32xf32>
    %280 = arith.divf %276, %279 : vector<32x32xf32>
    %281 = arith.truncf %280 : vector<32x32xf32> to vector<32x32xbf16>
    %cst_121 = arith.constant dense<0.000000e+00> : vector<32x32xf32>
    %282 = tpu.matmul %281, %270, %cst_121 {dimension_numbers = #tpu.dot_dimension_numbers<[1], [0], [0], [1], [0, 0, 1, 1], [], []>} : vector<32x32xbf16>, vector<32x32xbf16>, vector<32x32xf32> -> vector<32x32xf32>
    %283 = arith.truncf %282 : vector<32x32xf32> to vector<32x32xbf16>
    %284 = vector.extract_strided_slice %247 {offsets = [32, 0], sizes = [32, 128], strides = [1, 1]} : vector<128x128xbf16> to vector<32x128xbf16>
    %cst_122 = arith.constant dense<0.000000e+00> : vector<32x128xf32>
    %285 = tpu.matmul %283, %284, %cst_122 {dimension_numbers = #tpu.dot_dimension_numbers<[1], [0], [0], [1], [0, 0, 1, 1], [], []>} : vector<32x32xbf16>, vector<32x128xbf16>, vector<32x128xf32> -> vector<32x128xf32>
    %286 = arith.addf %267, %285 : vector<32x128xf32>
    %287 = vector.extract_strided_slice %245 {offsets = [0, 64], sizes = [32, 32], strides = [1, 1]} : vector<32x384xbf16> to vector<32x32xbf16>
    %288 = vector.extract_strided_slice %245 {offsets = [0, 192], sizes = [32, 32], strides = [1, 1]} : vector<32x384xbf16> to vector<32x32xbf16>
    %289 = vector.extract_strided_slice %245 {offsets = [0, 320], sizes = [32, 32], strides = [1, 1]} : vector<32x384xbf16> to vector<32x32xbf16>
    %cst_123 = arith.constant dense<0.000000e+00> : vector<32x32xf32>
    %290 = tpu.matmul %287, %288, %cst_123 {dimension_numbers = #tpu.dot_dimension_numbers<[1], [1], [0], [0], [0, 0, 1, 0], [], []>} : vector<32x32xbf16>, vector<32x32xbf16>, vector<32x32xf32> -> vector<32x32xf32>
    %cst_124 = arith.constant dense<0xFF800000> : vector<32xf32>
    %291 = vector.multi_reduction <maximumf>, %290, %cst_124 [1] : vector<32x32xf32> to vector<32xf32>
    %292 = vector.shape_cast %291 : vector<32xf32> to vector<32x1xf32>
    %293 = vector.broadcast %292 : vector<32x1xf32> to vector<32x32xf32>
    %294 = arith.subf %290, %293 : vector<32x32xf32>
    %295 = math.exp %294 : vector<32x32xf32>
    %cst_125 = arith.constant dense<0.000000e+00> : vector<32xf32>
    %296 = vector.multi_reduction <add>, %295, %cst_125 [1] : vector<32x32xf32> to vector<32xf32>
    %297 = vector.shape_cast %296 : vector<32xf32> to vector<32x1xf32>
    %298 = vector.broadcast %297 : vector<32x1xf32> to vector<32x32xf32>
    %299 = arith.divf %295, %298 : vector<32x32xf32>
    %300 = arith.truncf %299 : vector<32x32xf32> to vector<32x32xbf16>
    %cst_126 = arith.constant dense<0.000000e+00> : vector<32x32xf32>
    %301 = tpu.matmul %300, %289, %cst_126 {dimension_numbers = #tpu.dot_dimension_numbers<[1], [0], [0], [1], [0, 0, 1, 1], [], []>} : vector<32x32xbf16>, vector<32x32xbf16>, vector<32x32xf32> -> vector<32x32xf32>
    %302 = arith.truncf %301 : vector<32x32xf32> to vector<32x32xbf16>
    %303 = vector.extract_strided_slice %247 {offsets = [64, 0], sizes = [32, 128], strides = [1, 1]} : vector<128x128xbf16> to vector<32x128xbf16>
    %cst_127 = arith.constant dense<0.000000e+00> : vector<32x128xf32>
    %304 = tpu.matmul %302, %303, %cst_127 {dimension_numbers = #tpu.dot_dimension_numbers<[1], [0], [0], [1], [0, 0, 1, 1], [], []>} : vector<32x32xbf16>, vector<32x128xbf16>, vector<32x128xf32> -> vector<32x128xf32>
    %305 = arith.addf %286, %304 : vector<32x128xf32>
    %306 = vector.extract_strided_slice %245 {offsets = [0, 96], sizes = [32, 32], strides = [1, 1]} : vector<32x384xbf16> to vector<32x32xbf16>
    %307 = vector.extract_strided_slice %245 {offsets = [0, 224], sizes = [32, 32], strides = [1, 1]} : vector<32x384xbf16> to vector<32x32xbf16>
    %308 = vector.extract_strided_slice %245 {offsets = [0, 352], sizes = [32, 32], strides = [1, 1]} : vector<32x384xbf16> to vector<32x32xbf16>
    %cst_128 = arith.constant dense<0.000000e+00> : vector<32x32xf32>
    %309 = tpu.matmul %306, %307, %cst_128 {dimension_numbers = #tpu.dot_dimension_numbers<[1], [1], [0], [0], [0, 0, 1, 0], [], []>} : vector<32x32xbf16>, vector<32x32xbf16>, vector<32x32xf32> -> vector<32x32xf32>
    %cst_129 = arith.constant dense<0xFF800000> : vector<32xf32>
    %310 = vector.multi_reduction <maximumf>, %309, %cst_129 [1] : vector<32x32xf32> to vector<32xf32>
    %311 = vector.shape_cast %310 : vector<32xf32> to vector<32x1xf32>
    %312 = vector.broadcast %311 : vector<32x1xf32> to vector<32x32xf32>
    %313 = arith.subf %309, %312 : vector<32x32xf32>
    %314 = math.exp %313 : vector<32x32xf32>
    %cst_130 = arith.constant dense<0.000000e+00> : vector<32xf32>
    %315 = vector.multi_reduction <add>, %314, %cst_130 [1] : vector<32x32xf32> to vector<32xf32>
    %316 = vector.shape_cast %315 : vector<32xf32> to vector<32x1xf32>
    %317 = vector.broadcast %316 : vector<32x1xf32> to vector<32x32xf32>
    %318 = arith.divf %314, %317 : vector<32x32xf32>
    %319 = arith.truncf %318 : vector<32x32xf32> to vector<32x32xbf16>
    %cst_131 = arith.constant dense<0.000000e+00> : vector<32x32xf32>
    %320 = tpu.matmul %319, %308, %cst_131 {dimension_numbers = #tpu.dot_dimension_numbers<[1], [0], [0], [1], [0, 0, 1, 1], [], []>} : vector<32x32xbf16>, vector<32x32xbf16>, vector<32x32xf32> -> vector<32x32xf32>
    %321 = arith.truncf %320 : vector<32x32xf32> to vector<32x32xbf16>
    %322 = vector.extract_strided_slice %247 {offsets = [96, 0], sizes = [32, 128], strides = [1, 1]} : vector<128x128xbf16> to vector<32x128xbf16>
    %cst_132 = arith.constant dense<0.000000e+00> : vector<32x128xf32>
    %323 = tpu.matmul %321, %322, %cst_132 {dimension_numbers = #tpu.dot_dimension_numbers<[1], [0], [0], [1], [0, 0, 1, 1], [], []>} : vector<32x32xbf16>, vector<32x128xbf16>, vector<32x128xf32> -> vector<32x128xf32>
    %324 = arith.addf %305, %323 : vector<32x128xf32>
    %c1_133 = arith.constant 1 : index
    %c0_134 = arith.constant 0 : index
    %c0_135 = arith.constant 0 : index
    %325 = vector.load %arg13[%c1_133, %c0_134, %c0_135] : memref<2x1x128xf32, #tpu.memory_space<vmem>>, vector<1x1x128xf32>
    %326 = vector.shape_cast %325 : vector<1x1x128xf32> to vector<1x128xf32>
    %327 = vector.broadcast %326 : vector<1x128xf32> to vector<32x128xf32>
    %328 = arith.addf %324, %327 : vector<32x128xf32>
    %329 = arith.addf %236, %328 : vector<32x128xf32>
    %c1_136 = arith.constant 1 : index
    %c0_137 = arith.constant 0 : index
    %c0_138 = arith.constant 0 : index
    %330 = vector.load %arg14[%c1_136, %c0_137, %c0_138] : memref<2x1x128xf32, #tpu.memory_space<vmem>>, vector<1x1x128xf32>
    %331 = vector.shape_cast %330 : vector<1x1x128xf32> to vector<1x128xf32>
    %c1_139 = arith.constant 1 : index
    %c0_140 = arith.constant 0 : index
    %c0_141 = arith.constant 0 : index
    %332 = vector.load %arg15[%c1_139, %c0_140, %c0_141] : memref<2x1x128xf32, #tpu.memory_space<vmem>>, vector<1x1x128xf32>
    %333 = vector.shape_cast %332 : vector<1x1x128xf32> to vector<1x128xf32>
    %cst_142 = arith.constant dense<0.000000e+00> : vector<32xf32>
    %334 = vector.multi_reduction <add>, %329, %cst_142 [1] : vector<32x128xf32> to vector<32xf32>
    %335 = vector.shape_cast %334 : vector<32xf32> to vector<32x1xf32>
    %cst_143 = arith.constant 1.280000e+02 : f32
    %336 = vector.broadcast %cst_143 : f32 to vector<32x1xf32>
    %337 = arith.divf %335, %336 : vector<32x1xf32>
    %338 = vector.broadcast %337 : vector<32x1xf32> to vector<32x128xf32>
    %339 = arith.subf %329, %338 : vector<32x128xf32>
    %340 = arith.mulf %339, %339 : vector<32x128xf32>
    %cst_144 = arith.constant dense<0.000000e+00> : vector<32xf32>
    %341 = vector.multi_reduction <add>, %340, %cst_144 [1] : vector<32x128xf32> to vector<32xf32>
    %342 = vector.shape_cast %341 : vector<32xf32> to vector<32x1xf32>
    %cst_145 = arith.constant 1.280000e+02 : f32
    %343 = vector.broadcast %cst_145 : f32 to vector<32x1xf32>
    %344 = arith.divf %342, %343 : vector<32x1xf32>
    %345 = vector.broadcast %337 : vector<32x1xf32> to vector<32x128xf32>
    %346 = arith.subf %329, %345 : vector<32x128xf32>
    %cst_146 = arith.constant 9.99999974E-6 : f32
    %347 = vector.broadcast %cst_146 : f32 to vector<32x1xf32>
    %348 = arith.addf %344, %347 : vector<32x1xf32>
    %349 = math.rsqrt %348 : vector<32x1xf32>
    %350 = vector.broadcast %349 : vector<32x1xf32> to vector<32x128xf32>
    %351 = arith.mulf %346, %350 : vector<32x128xf32>
    %352 = vector.broadcast %331 : vector<1x128xf32> to vector<32x128xf32>
    %353 = arith.mulf %351, %352 : vector<32x128xf32>
    %354 = vector.broadcast %333 : vector<1x128xf32> to vector<32x128xf32>
    %355 = arith.addf %353, %354 : vector<32x128xf32>
    %c1_147 = arith.constant 1 : index
    %c0_148 = arith.constant 0 : index
    %c0_149 = arith.constant 0 : index
    %356 = vector.load %arg16[%c1_147, %c0_148, %c0_149] : memref<2x128x256xbf16, #tpu.memory_space<vmem>>, vector<1x128x256xbf16>
    %357 = vector.shape_cast %356 : vector<1x128x256xbf16> to vector<128x256xbf16>
    %c1_150 = arith.constant 1 : index
    %c0_151 = arith.constant 0 : index
    %c0_152 = arith.constant 0 : index
    %358 = vector.load %arg17[%c1_150, %c0_151, %c0_152] : memref<2x1x256xf32, #tpu.memory_space<vmem>>, vector<1x1x256xf32>
    %359 = vector.shape_cast %358 : vector<1x1x256xf32> to vector<1x256xf32>
    %360 = arith.truncf %355 : vector<32x128xf32> to vector<32x128xbf16>
    %cst_153 = arith.constant dense<0.000000e+00> : vector<32x256xf32>
    %361 = tpu.matmul %360, %357, %cst_153 {dimension_numbers = #tpu.dot_dimension_numbers<[1], [0], [0], [1], [0, 0, 1, 1], [], []>} : vector<32x128xbf16>, vector<128x256xbf16>, vector<32x256xf32> -> vector<32x256xf32>
    %362 = vector.broadcast %359 : vector<1x256xf32> to vector<32x256xf32>
    %363 = arith.addf %361, %362 : vector<32x256xf32>
    %364 = arith.mulf %363, %363 : vector<32x256xf32>
    %365 = arith.mulf %363, %364 : vector<32x256xf32>
    %cst_154 = arith.constant 4.471500e-02 : f32
    %366 = vector.broadcast %cst_154 : f32 to vector<32x256xf32>
    %367 = arith.mulf %366, %365 : vector<32x256xf32>
    %368 = arith.addf %363, %367 : vector<32x256xf32>
    %cst_155 = arith.constant 0.797884583 : f32
    %369 = vector.broadcast %cst_155 : f32 to vector<32x256xf32>
    %370 = arith.mulf %369, %368 : vector<32x256xf32>
    %371 = math.tanh %370 : vector<32x256xf32>
    %cst_156 = arith.constant 1.000000e+00 : f32
    %372 = vector.broadcast %cst_156 : f32 to vector<32x256xf32>
    %373 = arith.addf %372, %371 : vector<32x256xf32>
    %cst_157 = arith.constant 5.000000e-01 : f32
    %374 = vector.broadcast %cst_157 : f32 to vector<32x256xf32>
    %375 = arith.mulf %374, %373 : vector<32x256xf32>
    %376 = arith.mulf %363, %375 : vector<32x256xf32>
    %c1_158 = arith.constant 1 : index
    %c0_159 = arith.constant 0 : index
    %c0_160 = arith.constant 0 : index
    %377 = vector.load %arg18[%c1_158, %c0_159, %c0_160] : memref<2x256x128xbf16, #tpu.memory_space<vmem>>, vector<1x256x128xbf16>
    %378 = vector.shape_cast %377 : vector<1x256x128xbf16> to vector<256x128xbf16>
    %c1_161 = arith.constant 1 : index
    %c0_162 = arith.constant 0 : index
    %c0_163 = arith.constant 0 : index
    %379 = vector.load %arg19[%c1_161, %c0_162, %c0_163] : memref<2x1x128xf32, #tpu.memory_space<vmem>>, vector<1x1x128xf32>
    %380 = vector.shape_cast %379 : vector<1x1x128xf32> to vector<1x128xf32>
    %381 = arith.truncf %376 : vector<32x256xf32> to vector<32x256xbf16>
    %cst_164 = arith.constant dense<0.000000e+00> : vector<32x128xf32>
    %382 = tpu.matmul %381, %378, %cst_164 {dimension_numbers = #tpu.dot_dimension_numbers<[1], [0], [0], [1], [0, 0, 1, 1], [], []>} : vector<32x256xbf16>, vector<256x128xbf16>, vector<32x128xf32> -> vector<32x128xf32>
    %383 = vector.broadcast %380 : vector<1x128xf32> to vector<32x128xf32>
    %384 = arith.addf %382, %383 : vector<32x128xf32>
    %385 = arith.addf %355, %384 : vector<32x128xf32>
    %c1_165 = arith.constant 1 : index
    %c0_166 = arith.constant 0 : index
    %c0_167 = arith.constant 0 : index
    %386 = vector.load %arg20[%c1_165, %c0_166, %c0_167] : memref<2x1x128xf32, #tpu.memory_space<vmem>>, vector<1x1x128xf32>
    %387 = vector.shape_cast %386 : vector<1x1x128xf32> to vector<1x128xf32>
    %c1_168 = arith.constant 1 : index
    %c0_169 = arith.constant 0 : index
    %c0_170 = arith.constant 0 : index
    %388 = vector.load %arg21[%c1_168, %c0_169, %c0_170] : memref<2x1x128xf32, #tpu.memory_space<vmem>>, vector<1x1x128xf32>
    %389 = vector.shape_cast %388 : vector<1x1x128xf32> to vector<1x128xf32>
    %cst_171 = arith.constant dense<0.000000e+00> : vector<32xf32>
    %390 = vector.multi_reduction <add>, %385, %cst_171 [1] : vector<32x128xf32> to vector<32xf32>
    %391 = vector.shape_cast %390 : vector<32xf32> to vector<32x1xf32>
    %cst_172 = arith.constant 1.280000e+02 : f32
    %392 = vector.broadcast %cst_172 : f32 to vector<32x1xf32>
    %393 = arith.divf %391, %392 : vector<32x1xf32>
    %394 = vector.broadcast %393 : vector<32x1xf32> to vector<32x128xf32>
    %395 = arith.subf %385, %394 : vector<32x128xf32>
    %396 = arith.mulf %395, %395 : vector<32x128xf32>
    %cst_173 = arith.constant dense<0.000000e+00> : vector<32xf32>
    %397 = vector.multi_reduction <add>, %396, %cst_173 [1] : vector<32x128xf32> to vector<32xf32>
    %398 = vector.shape_cast %397 : vector<32xf32> to vector<32x1xf32>
    %cst_174 = arith.constant 1.280000e+02 : f32
    %399 = vector.broadcast %cst_174 : f32 to vector<32x1xf32>
    %400 = arith.divf %398, %399 : vector<32x1xf32>
    %401 = vector.broadcast %393 : vector<32x1xf32> to vector<32x128xf32>
    %402 = arith.subf %385, %401 : vector<32x128xf32>
    %cst_175 = arith.constant 9.99999974E-6 : f32
    %403 = vector.broadcast %cst_175 : f32 to vector<32x1xf32>
    %404 = arith.addf %400, %403 : vector<32x1xf32>
    %405 = math.rsqrt %404 : vector<32x1xf32>
    %406 = vector.broadcast %405 : vector<32x1xf32> to vector<32x128xf32>
    %407 = arith.mulf %402, %406 : vector<32x128xf32>
    %408 = vector.broadcast %387 : vector<1x128xf32> to vector<32x128xf32>
    %409 = arith.mulf %407, %408 : vector<32x128xf32>
    %410 = vector.broadcast %389 : vector<1x128xf32> to vector<32x128xf32>
    %411 = arith.addf %409, %410 : vector<32x128xf32>
    %cst_176 = arith.constant dense<0.000000e+00> : vector<128xf32>
    %412 = vector.multi_reduction <add>, %411, %cst_176 [0] : vector<32x128xf32> to vector<128xf32>
    %413 = vector.shape_cast %412 : vector<128xf32> to vector<1x128xf32>
    %cst_177 = arith.constant 3.200000e+01 : f32
    %414 = vector.broadcast %cst_177 : f32 to vector<1x128xf32>
    %415 = arith.divf %413, %414 : vector<1x128xf32>
    %416 = arith.truncf %415 : vector<1x128xf32> to vector<1x128xbf16>
    %c0_178 = arith.constant 0 : index
    %c0_179 = arith.constant 0 : index
    %417 = vector.load %arg22[%c0_178, %c0_179] : memref<128x8xbf16, #tpu.memory_space<vmem>>, vector<128x8xbf16>
    %cst_180 = arith.constant dense<0.000000e+00> : vector<1x8xf32>
    %418 = tpu.matmul %416, %417, %cst_180 {dimension_numbers = #tpu.dot_dimension_numbers<[1], [0], [0], [1], [0, 0, 1, 1], [], []>} : vector<1x128xbf16>, vector<128x8xbf16>, vector<1x8xf32> -> vector<1x8xf32>
    %c0_181 = arith.constant 0 : index
    %c0_182 = arith.constant 0 : index
    %419 = vector.load %arg23[%c0_181, %c0_182] : memref<1x8xf32, #tpu.memory_space<vmem>>, vector<1x8xf32>
    %420 = arith.addf %418, %419 : vector<1x8xf32>
    %c0_183 = arith.constant 0 : index
    %c0_184 = arith.constant 0 : index
    %c0_185 = arith.constant 0 : index
    %421 = vector.load %arg24[%c0_183, %c0_184, %c0_185] : memref<1x1x8xf32, #tpu.memory_space<vmem>>, vector<1x1x8xf32>
    %422 = vector.shape_cast %421 : vector<1x1x8xf32> to vector<1x8xf32>
    %423 = vector.shape_cast %420 : vector<1x8xf32> to vector<1x1x8xf32>
    tpu.vector_store %arg24[%c0_183, %c0_184, %c0_185], %423 {strides = array<i32>} : memref<1x1x8xf32, #tpu.memory_space<vmem>>, vector<1x1x8xf32>,
    return
  }
  func.func @transform_0(%arg0: i32) -> (i32, i32, i32) {
    %c0_i32 = arith.constant 0 : i32
    %c0_i32_0 = arith.constant 0 : i32
    %c0_i32_1 = arith.constant 0 : i32
    return %arg0, %c0_i32, %c0_i32_0 : i32, i32, i32
  }
  func.func @transform_1(%arg0: i32) -> (i32, i32) {
    %c0_i32 = arith.constant 0 : i32
    %c0_i32_0 = arith.constant 0 : i32
    %c0_i32_1 = arith.constant 0 : i32
    return %c0_i32, %c0_i32_0 : i32, i32
  }
  func.func @transform_2(%arg0: i32) -> (i32, i32) {
    %c0_i32 = arith.constant 0 : i32
    %c0_i32_0 = arith.constant 0 : i32
    %c0_i32_1 = arith.constant 0 : i32
    return %c0_i32, %c0_i32_0 : i32, i32
  }
  func.func @transform_3(%arg0: i32) -> (i32, i32) {
    %c0_i32 = arith.constant 0 : i32
    %c0_i32_0 = arith.constant 0 : i32
    %c0_i32_1 = arith.constant 0 : i32
    return %c0_i32, %c0_i32_0 : i32, i32
  }
  func.func @transform_4(%arg0: i32) -> (i32, i32) {
    %c0_i32 = arith.constant 0 : i32
    %c0_i32_0 = arith.constant 0 : i32
    %c0_i32_1 = arith.constant 0 : i32
    return %c0_i32, %c0_i32_0 : i32, i32
  }
  func.func @transform_5(%arg0: i32) -> (i32, i32) {
    %c0_i32 = arith.constant 0 : i32
    %c0_i32_0 = arith.constant 0 : i32
    %c0_i32_1 = arith.constant 0 : i32
    return %c0_i32, %c0_i32_0 : i32, i32
  }
  func.func @transform_6(%arg0: i32) -> (i32, i32) {
    %c0_i32 = arith.constant 0 : i32
    %c0_i32_0 = arith.constant 0 : i32
    %c0_i32_1 = arith.constant 0 : i32
    return %c0_i32, %c0_i32_0 : i32, i32
  }
  func.func @transform_7(%arg0: i32) -> (i32, i32) {
    %c0_i32 = arith.constant 0 : i32
    %c0_i32_0 = arith.constant 0 : i32
    %c0_i32_1 = arith.constant 0 : i32
    return %c0_i32, %c0_i32_0 : i32, i32
  }
  func.func @transform_8(%arg0: i32) -> (i32, i32) {
    %c0_i32 = arith.constant 0 : i32
    %c0_i32_0 = arith.constant 0 : i32
    %c0_i32_1 = arith.constant 0 : i32
    return %c0_i32, %c0_i32_0 : i32, i32
  }
  func.func @transform_9(%arg0: i32) -> (i32, i32, i32) {
    %c0_i32 = arith.constant 0 : i32
    %c0_i32_0 = arith.constant 0 : i32
    %c0_i32_1 = arith.constant 0 : i32
    %c0_i32_2 = arith.constant 0 : i32
    return %c0_i32, %c0_i32_0, %c0_i32_1 : i32, i32, i32
  }
  func.func @transform_10(%arg0: i32) -> (i32, i32, i32) {
    %c0_i32 = arith.constant 0 : i32
    %c0_i32_0 = arith.constant 0 : i32
    %c0_i32_1 = arith.constant 0 : i32
    %c0_i32_2 = arith.constant 0 : i32
    return %c0_i32, %c0_i32_0, %c0_i32_1 : i32, i32, i32
  }
  func.func @transform_11(%arg0: i32) -> (i32, i32, i32) {
    %c0_i32 = arith.constant 0 : i32
    %c0_i32_0 = arith.constant 0 : i32
    %c0_i32_1 = arith.constant 0 : i32
    %c0_i32_2 = arith.constant 0 : i32
    return %c0_i32, %c0_i32_0, %c0_i32_1 : i32, i32, i32
  }
  func.func @transform_12(%arg0: i32) -> (i32, i32, i32) {
    %c0_i32 = arith.constant 0 : i32
    %c0_i32_0 = arith.constant 0 : i32
    %c0_i32_1 = arith.constant 0 : i32
    %c0_i32_2 = arith.constant 0 : i32
    return %c0_i32, %c0_i32_0, %c0_i32_1 : i32, i32, i32
  }
  func.func @transform_13(%arg0: i32) -> (i32, i32, i32) {
    %c0_i32 = arith.constant 0 : i32
    %c0_i32_0 = arith.constant 0 : i32
    %c0_i32_1 = arith.constant 0 : i32
    %c0_i32_2 = arith.constant 0 : i32
    return %c0_i32, %c0_i32_0, %c0_i32_1 : i32, i32, i32
  }
  func.func @transform_14(%arg0: i32) -> (i32, i32, i32) {
    %c0_i32 = arith.constant 0 : i32
    %c0_i32_0 = arith.constant 0 : i32
    %c0_i32_1 = arith.constant 0 : i32
    %c0_i32_2 = arith.constant 0 : i32
    return %c0_i32, %c0_i32_0, %c0_i32_1 : i32, i32, i32
  }
  func.func @transform_15(%arg0: i32) -> (i32, i32, i32) {
    %c0_i32 = arith.constant 0 : i32
    %c0_i32_0 = arith.constant 0 : i32
    %c0_i32_1 = arith.constant 0 : i32
    %c0_i32_2 = arith.constant 0 : i32
    return %c0_i32, %c0_i32_0, %c0_i32_1 : i32, i32, i32
  }
  func.func @transform_16(%arg0: i32) -> (i32, i32, i32) {
    %c0_i32 = arith.constant 0 : i32
    %c0_i32_0 = arith.constant 0 : i32
    %c0_i32_1 = arith.constant 0 : i32
    %c0_i32_2 = arith.constant 0 : i32
    return %c0_i32, %c0_i32_0, %c0_i32_1 : i32, i32, i32
  }
  func.func @transform_17(%arg0: i32) -> (i32, i32, i32) {
    %c0_i32 = arith.constant 0 : i32
    %c0_i32_0 = arith.constant 0 : i32
    %c0_i32_1 = arith.constant 0 : i32
    %c0_i32_2 = arith.constant 0 : i32
    return %c0_i32, %c0_i32_0, %c0_i32_1 : i32, i32, i32
  }
  func.func @transform_18(%arg0: i32) -> (i32, i32, i32) {
    %c0_i32 = arith.constant 0 : i32
    %c0_i32_0 = arith.constant 0 : i32
    %c0_i32_1 = arith.constant 0 : i32
    %c0_i32_2 = arith.constant 0 : i32
    return %c0_i32, %c0_i32_0, %c0_i32_1 : i32, i32, i32
  }
  func.func @transform_19(%arg0: i32) -> (i32, i32, i32) {
    %c0_i32 = arith.constant 0 : i32
    %c0_i32_0 = arith.constant 0 : i32
    %c0_i32_1 = arith.constant 0 : i32
    %c0_i32_2 = arith.constant 0 : i32
    return %c0_i32, %c0_i32_0, %c0_i32_1 : i32, i32, i32
  }
  func.func @transform_20(%arg0: i32) -> (i32, i32, i32) {
    %c0_i32 = arith.constant 0 : i32
    %c0_i32_0 = arith.constant 0 : i32
    %c0_i32_1 = arith.constant 0 : i32
    %c0_i32_2 = arith.constant 0 : i32
    return %c0_i32, %c0_i32_0, %c0_i32_1 : i32, i32, i32
  }
  func.func @transform_21(%arg0: i32) -> (i32, i32) {
    %c0_i32 = arith.constant 0 : i32
    %c0_i32_0 = arith.constant 0 : i32
    %c0_i32_1 = arith.constant 0 : i32
    return %c0_i32, %c0_i32_0 : i32, i32
  }
  func.func @transform_22(%arg0: i32) -> (i32, i32) {
    %c0_i32 = arith.constant 0 : i32
    %c0_i32_0 = arith.constant 0 : i32
    %c0_i32_1 = arith.constant 0 : i32
    return %c0_i32, %c0_i32_0 : i32, i32
  }
  func.func @transform_23(%arg0: i32) -> (i32, i32, i32) {
    %c0_i32 = arith.constant 0 : i32
    %c0_i32_0 = arith.constant 0 : i32
    %c0_i32_1 = arith.constant 0 : i32
    return %arg0, %c0_i32, %c0_i32_0 : i32, i32, i32
  }
}

</mosaic_0001>

<bundles_post_ra>
// kernel: audio_clf_forward.1
= control target key start
LH: loop header
LB: loop body
LE: loop exit
PB: predicated region body
PF: predicated region fallthrough
CT: control target
= control target key end

     0   :  { %s7739_s0 = inlined_call_operand.vmem [shape: f32[2,32,256], index: 0, kind: input, shape index: {}]   ;;  %s7740_s1 = inlined_call_operand.vmem [shape: bf16[256,128], index: 1, kind: input, shape index: {}]   ;;  %s7741_s2 = inlined_call_operand.vmem [shape: f32[1,128], index: 2, kind: input, shape index: {}]   ;;  %s7742_s3 = inlined_call_operand.vmem [shape: f32[1,128], index: 3, kind: input, shape index: {}]   ;;  %s7743_s4 = inlined_call_operand.vmem [shape: f32[1,128], index: 4, kind: input, shape index: {}]   ;;  %s7744_s5 = inlined_call_operand.vmem [shape: bf16[128,128], index: 5, kind: input, shape index: {}]   ;;  %s7745_s6 = inlined_call_operand.vmem [shape: f32[1,128], index: 6, kind: input, shape index: {}]   ;;  %s7746_s7 = inlined_call_operand.vmem [shape: f32[1,128], index: 7, kind: input, shape index: {}]   ;;  %s7747_s8 = inlined_call_operand.vmem [shape: f32[1,128], index: 8, kind: input, shape index: {}]   ;;  %s7748_s9 = inlined_call_operand.vmem [shape: bf16[2,128,384], index: 9, kind: input, shape index: {}]   ;;  %s7749_s10 = inlined_call_operand.vmem [shape: f32[2,1,384], index: 10, kind: input, shape index: {}]   ;;  %s7750_s11 = inlined_call_operand.vmem [shape: bf16[2,128,128], index: 11, kind: input, shape index: {}]   ;;  %s7751_s12 = inlined_call_operand.vmem [shape: f32[2,1,128], index: 12, kind: input, shape index: {}]   ;;  %s7752_s13 = inlined_call_operand.vmem [shape: f32[2,1,128], index: 13, kind: input, shape index: {}]   ;;  %s7753_s14 = inlined_call_operand.vmem [shape: f32[2,1,128], index: 14, kind: input, shape index: {}]   ;;  %s7754_s15 = inlined_call_operand.vmem [shape: bf16[2,128,256], index: 15, kind: input, shape index: {}]   ;;  %s7755_s16 = inlined_call_operand.vmem [shape: f32[2,1,256], index: 16, kind: input, shape index: {}]   ;;  %s7756_s17 = inlined_call_operand.vmem [shape: bf16[2,256,128], index: 17, kind: input, shape index: {}]   ;;  %s7757_s18 = inlined_call_operand.vmem [shape: f32[2,1,128], index: 18, kind: input, shape index: {}]   ;;  %s7758_s19 = inlined_call_operand.vmem [shape: f32[2,1,128], index: 19, kind: input, shape index: {}]   ;;  %s7759_s20 = inlined_call_operand.vmem [shape: f32[2,1,128], index: 20, kind: input, shape index: {}]   ;;  %s7760_s21 = inlined_call_operand.vmem [shape: bf16[128,8], index: 21, kind: input, shape index: {}]   ;;  %s7761_s22 = inlined_call_operand.vmem [shape: f32[1,8], index: 22, kind: input, shape index: {}]   ;;  %s7762_s23 = inlined_call_operand.hbm [shape: f32[2,1,8], index: 23, kind: output, shape index: {}]  }
   0x1   :  { %7774 = sst [smem:[#allocation12_spill]] %s7739_s0 }
   0x2   :  { %7775 = sst [smem:[#allocation13_spill]] %s7740_s1 }
   0x3   :  { %7776 = sst [smem:[#allocation14_spill]] %s7741_s2 }
   0x4   :  { %7777 = sst [smem:[#allocation15_spill]] %s7742_s3 }
   0x5   :  { %7778 = sst [smem:[#allocation16_spill]] %s7743_s4 }
   0x6   :  { %7779 = sst [smem:[#allocation17_spill]] %s7744_s5 }
   0x7   :  { %7780 = sst [smem:[#allocation18_spill]] %s7745_s6 }
   0x8   :  { %7781 = sst [smem:[#allocation19_spill]] %s7746_s7 }
   0x9   :  { %7782 = sst [smem:[#allocation20_spill]] %s7761_s22 }
   0xa   :  { %7783 = sst [smem:[#allocation21_spill]] %s7762_s23 }
   0xb   :  { %28 = vsyncpa [#allocation3], 0 }
   0xc   :  { %30 = vsyncpa [#allocation3 + $0x1], 0  ;;  %s6555_s4 = smov 0   ;;  %s6557_s30 = smov 0  }
   0xd   :  { %s6559_s24 = smov 0   ;;  %s6561_s25 = smov 0  }
   0xe LB: > { %7784 = sst [smem:[#allocation5_spill]] %s6414_s4  ;;  %s6576_s5 = sadd.s32 4294967295, %s6426_s25   ;;  %s6426_s25 = sphi %s6561_s25, %s7808_s25   ;;  %s6422_s24 = sphi %s6559_s24, %s7810_s24   ;;  %s6418_s30 = sphi %s6557_s30, %s7812_s30   ;;  %s6414_s4 = sphi %s6555_s4, %s7811_s4  }
   0xf   : > { %7785 = sst [smem:[#allocation6_spill]] %s6422_s24  ;;  %s5074_s1 = sadd.s32 4294967294, %s6426_s25  }
  0x10   : > { %7786 = sst [smem:[#allocation7_spill]] %s6426_s25  ;;  %s6580_s26 = sadd.s32 1, %s6426_s25  }
  0x11   : > { %7787 = sst [smem:[#allocation8_spill]] %s6580_s26  ;;  %s531_s2 = sadd.s32 1, %s6422_s24 }
  0x12   : > { %s528_s6 = ssub.s32 %s6426_s25, %s6580_s26  ;;  %p541_p0 = scmp.ne.s32.totalorder %s6422_s24, %s6418_s30 }
  0x13   : > { %p529_p1 = scmp.eq.s32.totalorder %s528_s6, 0  ;;  %p542_p2 = scmp.eq.s32.totalorder %s6576_s5, 1 }
  0x14   : > { %p547_p3 = scmp.ne.s32.totalorder %s6418_s30, %s6414_s4  ;;  %p548_p4 = scmp.eq.s32.totalorder %s5074_s1, 1 }
  0x15   : > { %s6591_s27 = scalar_select %p529_p1, %s6422_s24, %s531_s2  }
  0x16   : > { %p6593_p5 = por %p542_p2, %p541_p0  ;;  %p6597_p6 = por %p548_p4, %p547_p3 }
  0x17   : > { %7788 = sst [smem:[#allocation9_spill]] %s6591_s27  ;;  %p5077_p7 = scmp.ge.s32.totalorder %s6426_s25, 1 }
  0x18   : > { %s7789_s7 = scalar_select %p6593_p5, 1, 0 }
  0x19   : > { %s7791_s28 = scalar_select %p6597_p6, 1, 0 }
  0x1a   : > { %7790 = sst [smem:[#allocation10_spill]] %s7789_s7  ;;  %p640_p8 = scmp.lt.s32.totalorder %s6426_s25, 3 }
  0x1b   : > { %7792 = sst [smem:[#allocation11_spill]] %s7791_s28 }
  0x1c   : > { %p641_p9 = pnand %p5077_p7, %p640_p8 }
  0x1d   : > { %s7793_s0 = sld [smem:[#allocation13_spill]] (!%p641_p9)  ;;  %p703_p10 = scmp.lt.s32.totalorder (!%p641_p9), %s6576_s5, 1 }
  0x1e   : > { %644 = sbr.rel (%p641_p9) target bundleno = 8737 (0x2221), region = 112  ;;  %s7794_s1 = sld [smem:[#allocation12_spill]] (!%p641_p9) }
  0x1f   : > { %s7795_s27 = sld [smem:[#allocation14_spill]] (!%p641_p9)  ;;  %s6429_s23 = smov (!%p641_p9), 96  }
  0x20   : > { %s7796_s24 = sld [smem:[#allocation17_spill]] (!%p641_p9)  ;;  %s6430_s29 = smov (!%p641_p9), 64  }
  0x21   : > { %s7798_s25 = sld [smem:[#allocation15_spill]] (!%p641_p9)  ;;  %s5410_s7 = sshll.u32 (!%p641_p9), %s6576_s5, 4 }
  0x22   : > { %s7799_s3 = sld [smem:[#allocation16_spill]] (!%p641_p9)  ;;  %s6434_s22 = smov (!%p641_p9), [#allocation2]  }
  0x23   : > { %v5966_v0 = vld [vmem:[%s7793_s0 + $0x78] sm:$0xff]   ;;  %v5968_v2 = vld [vmem:[%s7793_s0 + $0x70] sm:$0xff]   ;;  %v5970_v4 = vld [vmem:[%s7793_s0 + $0x68] sm:$0xff]   ;;  %s704_s28 = scalar_select %p703_p10, %s6576_s5, 1  ;;  %vm1463_vm0 = vcmask 261120   ;;  %vm6433_vm1 = vmmov 0  }
  0x24   : > { %v5967_v1 = vld [vmem:[%s7793_s0 + $0x38] sm:$0xff]   ;;  %5414 = vmatprep.subr.bf16.mxu0 %v5966_v0  ;;  %v5969_v3 = vld [vmem:[%s7793_s0 + $0x30] sm:$0xff]   ;;  %v5971_v5 = vld [vmem:[%s7793_s0 + $0x28] sm:$0xff]   ;;  %vm5004_vm2 = vcmask 57344  }
  0x25   : > { %5415 = vmatpush3.bf16.msra.mxu0 %v5967_v1  ;;  %v5972_v6 = vld [vmem:[%s7793_s0 + $0x60] sm:$0xff]   ;;  %s5413_s4 = sshll.u32 %s704_s28, 6  ;;  %v5974_v8 = vld [vmem:[%s7793_s0 + $0x58] sm:$0xff]   ;;  %v5976_v10 = vld [vmem:[%s7793_s0 + $0x50] sm:$0xff]   ;;  %s7801_s28 = sld [smem:[#allocation19_spill]] }
  0x26   : > { %5416 = vmatprep.subr.bf16.mxu0 %v5968_v2  ;;  %v5973_v7 = vld [vmem:[%s7793_s0 + $0x20] sm:$0xff]   ;;  %s707_s2 = scalar_lea.vmem %s7794_s1, %s5413_s4  ;;  %v5975_v9 = vld [vmem:[%s7793_s0 + $0x18] sm:$0xff]   ;;  %v5977_v14 = vld [vmem:[%s7793_s0 + $0x10] sm:$0xff]   ;;  %s7797_s26 = smov %s7796_s24 }
  0x27   : > { %v710_v11 = vld [vmem:[%s707_s2 + $0x8] sm:$0xff]  ;;  %v712_v12 = vld [vmem:[%s707_s2 + $0x18] sm:$0xff]  ;;  %v5980_v17 = vld [vmem:[%s7793_s0 + $0x40] sm:$0xff]   ;;  %s7802_s4 = sld [smem:[#allocation20_spill]] }
  0x28   : > { %v751_v13 = vpack.c.bf16 %v712_v12, %v710_v11  ;;  %v5978_v15 = vld [vmem:[%s7793_s0 + $0x48] sm:$0xff]   ;;  %v5981_v18 = vld [vmem:[%s7793_s0] sm:$0xff]   ;;  %v711_v20 = vld [vmem:[%s707_s2 + $0x10] sm:$0xff] }
  0x29   : > { %5417 = vmatpush3.bf16.msra.mxu0 %v5969_v3  ;;  %v5979_v16 = vld [vmem:[%s7793_s0 + $0x8] sm:$0xff]   ;;  %v709_v19 = vld [vmem:[%s707_s2] sm:$0xff]  ;;  %v716_v22 = vld [vmem:[%s707_s2 + $0x38] sm:$0xff] }
  0x2a   : > { %5418 = vmatprep.subr.bf16.mxu0 %v5970_v4  ;;  %888 = vmatprep.mubr.bf16.mxu0 %v751_v13  ;;  %v714_v21 = vld [vmem:[%s707_s2 + $0x28] sm:$0xff]  ;;  %v750_v23 = vpack.c.bf16 %v711_v20, %v709_v19  ;;  %v713_v25 = vld [vmem:[%s707_s2 + $0x20] sm:$0xff]  ;;  %v715_v26 = vld [vmem:[%s707_s2 + $0x30] sm:$0xff]  ;;  %s7804_s2 = sld [smem:[#allocation21_spill]] }
  0x2b   : > { %v753_v24 = vpack.c.bf16 %v716_v22, %v714_v21  ;;  %v752_v27 = vpack.c.bf16 %v715_v26, %v713_v25  ;;  %v5080_v30 = vld [vmem:[%s7795_s27] ss:$0 sm:$0xff]  ;;  %v5982_v61 = vld [vmem:[%s7796_s24 + $0x38] sm:$0xff]   ;;  %v5983_v62 = vld [vmem:[%s7797_s26 + $0x30] sm:$0xff]   ;;  %s7800_s27 = sld [smem:[#allocation18_spill]]  ;;  %s701_s24 = sand.u32 1, %s6418_s30  }
  0x2c   : > { %5633 = vmatprep.subr.bf16.mxu1 %v5982_v61  ;;  %v5984_v63 = vld [vmem:[%s7797_s26 + $0x28] sm:$0xff]   ;;  %v5985_v0 = vld [vmem:[%s7797_s26 + $0x20] sm:$0xff]   ;;  %v5986_v1 = vld [vmem:[%s7797_s26 + $0x18] sm:$0xff]   ;;  %s5007_s6 = scalar_lea.sflag [#allocation3], %s701_s24 }
  0x2d   : > { %5419 = vmatpush3.bf16.msra.mxu0 %v5971_v5  ;;  %5634 = vmatpush3.bf16.msra.mxu1 %v5982_v61  ;;  %v5987_v2 = vld [vmem:[%s7797_s26 + $0x10] sm:$0xff]   ;;  %v5988_v3 = vld [vmem:[%s7797_s26 + $0x8] sm:$0xff]   ;;  %v5989_v4 = vld [vmem:[%s7797_s26] sm:$0xff]  }
  0x2e   : > { %5420 = vmatprep.subr.bf16.mxu0 %v5972_v6  ;;  %5635 = vmatprep.subr.bf16.mxu1 %v5983_v62  ;;  %v5097_v19 = vld [vmem:[%s7798_s25] ss:$0 sm:$0xff] }
  0x31   : > { %5421 = vmatpush3.bf16.msra.mxu0 %v5973_v7  ;;  %5636 = vmatpush3.bf16.msra.mxu1 %v5983_v62 }
  0x32   : > { %5422 = vmatprep.subr.bf16.mxu0 %v5974_v8  ;;  %5637 = vmatprep.subr.bf16.mxu1 %v5984_v63 }
  0x35   : > { %5423 = vmatpush3.bf16.msra.mxu0 %v5975_v9  ;;  %5638 = vmatpush3.bf16.msra.mxu1 %v5984_v63 }
  0x36   : > { %5424 = vmatprep.subr.bf16.mxu0 %v5976_v10  ;;  %5639 = vmatprep.subr.bf16.mxu1 %v5985_v0 }
  0x39   : > { %5425 = vmatpush3.bf16.msra.mxu0 %v5977_v14  ;;  %5640 = vmatpush3.bf16.msra.mxu1 %v5985_v0  ;;  %v5995_v0 = vld [vmem:[%s7748_s9 + $0x94] ss:$12 sps:$4 sm:$0xff]  }
  0x3a   : > { %5426 = vmatprep.subr.bf16.mxu0 %v5978_v15  ;;  %5641 = vmatprep.subr.bf16.mxu1 %v5986_v1 }
  0x3d   : > { %5427 = vmatpush3.bf16.msra.mxu0 %v5979_v16  ;;  %5642 = vmatpush3.bf16.msra.mxu1 %v5986_v1  ;;  %v5996_v1 = vld [vmem:[%s7748_s9 + $0xb0] ss:$12 sps:$4 sm:$0xff]  }
  0x3e   : > { %5428 = vmatprep.subr.bf16.mxu0 %v5980_v17  ;;  %5643 = vmatprep.subr.bf16.mxu1 %v5987_v2 }
  0x41   : > { %5429 = vmatpush3.bf16.msra.mxu0 %v5981_v18  ;;  %5644 = vmatpush3.bf16.msra.mxu1 %v5987_v2  ;;  %v5993_v2 = vld [vmem:[%s7748_s9 + $0x90] ss:$12 sps:$4 sm:$0xff]  }
  0x42   : > { %5645 = vmatprep.subr.bf16.mxu1 %v5988_v3 }
  0x44   : > { %889 = vmatmul.mubr.bf16.vlgmr.msra.gmra.mxu0 %v750_v23  ;;  %v5098_v23 = vld [vmem:[%s7799_s3] ss:$0 sm:$0xff]  ;;  %s6431_s3 = smov 32  }
  0x45   : > { %896 = vmatprep.mubr.bf16.mxu0 %v753_v24  ;;  %5646 = vmatpush3.bf16.msra.mxu1 %v5988_v3  ;;  %v5999_v3 = vld [vmem:[%s7748_s9 + $0x7c] ss:$12 sps:$4 sm:$0xff]  }
  0x46   : > { %5647 = vmatprep.subr.bf16.mxu1 %v5989_v4 }
  0x49   : > { %5648 = vmatpush3.bf16.msra.mxu1 %v5989_v4  ;;  %v6000_v4 = vld [vmem:[%s7748_s9 + $0x98] ss:$12 sps:$4 sm:$0xff]  }
  0x4a   : > { %5653 = vmatprep.subr.bf16.mxu1 %v5996_v1 }
  0x4c   : > { %897 = vmatmul.mubr.bf16.gmra.mxu0 %v752_v27 }
 0x104   : > { %v5430_v28 = vpop.f32.mrf.mxu0 }
 0x106   : > { %v5431_v29 = vpop.f32.mrf.mxu0 }
 0x107   : > { %v5432_v31 = vadd.f32 %v5431_v29, %v5430_v28 }
 0x108   : > { %v5433_v32 = vpop.f32.mrf.mxu0 }
 0x109   : > { %v891_v33 = vadd.f32 %v5432_v31, %v5080_v30 }
 0x10a   : > { %v5434_v34 = vpop.f32.mrf.mxu0 }
 0x10b   : > { %v5435_v35 = vadd.f32 %v5434_v34, %v5433_v32  ;;  %907 = vadd.xlane.f32.xlu0 %v891_v33 }
 0x10c   : > { %v5436_v36 = vpop.f32.mrf.mxu0 }
 0x10d   : > { %v894_v37 = vadd.f32 %v5435_v35, %v5080_v30 }
 0x10e   : > { %v5437_v38 = vpop.f32.mrf.mxu0 }
 0x10f   : > { %v5438_v39 = vadd.f32 %v5437_v38, %v5436_v36  ;;  %909 = vadd.xlane.f32.xlu0 %v894_v37  ;;  %v5099_v38 = vld [vmem:[%s7800_s27] ss:$0 sm:$0xff] }
 0x110   : > { %v5439_v40 = vpop.f32.mrf.mxu0 }
 0x111   : > { %v899_v41 = vadd.f32 %v5438_v39, %v5080_v30 }
 0x112   : > { %v5440_v42 = vpop.f32.mrf.mxu0 }
 0x113   : > { %v5441_v43 = vadd.f32 %v5440_v42, %v5439_v40  ;;  %911 = vadd.xlane.f32.xlu1 %v899_v41 }
 0x115   : > { %v902_v44 = vadd.f32 %v5441_v43, %v5080_v30 }
 0x117   : > { %913 = vadd.xlane.f32.xlu1 %v902_v44 }
 0x194   : > { %v908_v45 = vpop.xlane.xlu0 %907 }
 0x195   : > { %v916_v46 = vmul.f32 0.0078125, %v908_v45 }
 0x197   : > { %v920_v47 = vsub.f32 %v891_v33, %v916_v46  ;;  %v5990_v46 = vld [vmem:[%s7748_s9 + $0xa8] ss:$12 sps:$4 sm:$0xff]  }
 0x198   : > { %v910_v48 = vpop.xlane.xlu0 %909 }
 0x199   : > { %v917_v49 = vmul.f32 0.0078125, %v910_v48  ;;  %v924_v50 = vmul.f32 %v920_v47, %v920_v47 }
 0x19b   : > { %928 = vadd.xlane.f32.xlu0 %v924_v50  ;;  %v921_v51 = vsub.f32 %v894_v37, %v917_v49 }
 0x19c   : > { %v912_v52 = vpop.xlane.xlu1 %911 }
 0x19d   : > { %v918_v53 = vmul.f32 0.0078125, %v912_v52  ;;  %v925_v54 = vmul.f32 %v921_v51, %v921_v51 }
 0x19f   : > { %930 = vadd.xlane.f32.xlu1 %v925_v54  ;;  %v922_v55 = vsub.f32 %v899_v41, %v918_v53 }
 0x1a0   : > { %v914_v56 = vpop.xlane.xlu1 %913 }
 0x1a1   : > { %v919_v57 = vmul.f32 0.0078125, %v914_v56  ;;  %v926_v58 = vmul.f32 %v922_v55, %v922_v55 }
 0x1a3   : > { %932 = vadd.xlane.f32.xlu0 %v926_v58  ;;  %v923_v59 = vsub.f32 %v902_v44, %v919_v57 }
 0x1a5   : > { %v927_v60 = vmul.f32 %v923_v59, %v923_v59 }
 0x1a7   : > { %934 = vadd.xlane.f32.xlu1 %v927_v60 }
 0x224   : > { %v929_v5 = vpop.xlane.xlu0 %928 }
 0x225   : > { %v936_v6 = vmul.f32 0.0078125, %v929_v5  ;;  %v5997_v5 = vld [vmem:[%s7748_s9 + $0x78] ss:$12 sps:$4 sm:$0xff]  }
 0x227   : > { %v940_v7 = vadd.f32 1e-05, %v936_v6  ;;  %v6003_v6 = vld [vmem:[%s7748_s9 + $0x64] ss:$12 sps:$4 sm:$0xff]  }
 0x228   : > { %v931_v8 = vpop.xlane.xlu1 %930 }
 0x229   : > { %6158 = vrsqrt.f32 %v940_v7  ;;  %v937_v9 = vmul.f32 0.0078125, %v931_v8  ;;  %v6004_v7 = vld [vmem:[%s7748_s9 + $0x80] ss:$12 sps:$4 sm:$0xff]  }
 0x22a   : > { %v6001_v8 = vld [vmem:[%s7748_s9 + $0x60] ss:$12 sps:$4 sm:$0xff]  }
 0x22b   : > { %v941_v10 = vadd.f32 1e-05, %v937_v9  ;;  %v6007_v9 = vld [vmem:[%s7748_s9 + $0x4c] ss:$12 sps:$4 sm:$0xff]  }
 0x22c   : > { %v933_v11 = vpop.xlane.xlu0 %932 }
 0x22d   : > { %6160 = vrsqrt.f32 %v941_v10  ;;  %v938_v12 = vmul.f32 0.0078125, %v933_v11  ;;  %v6008_v10 = vld [vmem:[%s7748_s9 + $0x68] ss:$12 sps:$4 sm:$0xff]  }
 0x22e   : > { %v6005_v11 = vld [vmem:[%s7748_s9 + $0x48] ss:$12 sps:$4 sm:$0xff]  }
 0x22f   : > { %v942_v13 = vadd.f32 1e-05, %v938_v12  ;;  %v6011_v12 = vld [vmem:[%s7748_s9 + $0x34] ss:$12 sps:$4 sm:$0xff]  }
 0x230   : > { %v935_v14 = vpop.xlane.xlu1 %934 }
 0x231   : > { %6162 = vrsqrt.f32 %v942_v13  ;;  %v939_v15 = vmul.f32 0.0078125, %v935_v14  ;;  %v6012_v13 = vld [vmem:[%s7748_s9 + $0x50] ss:$12 sps:$4 sm:$0xff]  }
 0x232   : > { %v6009_v14 = vld [vmem:[%s7748_s9 + $0x30] ss:$12 sps:$4 sm:$0xff]  }
 0x233   : > { %v943_v16 = vadd.f32 1e-05, %v939_v15  ;;  %v6015_v15 = vld [vmem:[%s7748_s9 + $0x1c] ss:$12 sps:$4 sm:$0xff]  }
 0x235   : > { %6164 = vrsqrt.f32 %v943_v16  ;;  %v6016_v16 = vld [vmem:[%s7748_s9 + $0x38] ss:$12 sps:$4 sm:$0xff]  }
 0x236   : > { %v6159_v17 = vpop.eup %6158 }
 0x237   : > { %v948_v18 = vmul.f32 %v6159_v17, %v920_v47  ;;  %v5992_v47 = vld [vmem:[%s7748_s9 + $0xac] ss:$12 sps:$4 sm:$0xff]  }
 0x238   : > { %1339 = vmatprep.subr.bf16.mxu0 %v5992_v47  ;;  %v6013_v17 = vld [vmem:[%s7748_s9 + $0x18] ss:$12 sps:$4 sm:$0xff]  }
 0x239   : > { %v958_v22 = vmul.f32 %v5097_v19, %v948_v18  ;;  %1340 = vmatpush1.bf16.msra.mxu0 %v5990_v46  ;;  %v6019_v18 = vld [vmem:[%s7748_s9 + $0x4] ss:$12 sps:$4 sm:$0xff]  }
 0x23a   : > { %v6161_v20 = vpop.eup %6160  ;;  %1341 = vmatprep.subr.bf16.mxu0 %v5995_v0 }
 0x23b   : > { %v949_v21 = vmul.f32 %v6161_v20, %v921_v51  ;;  %v968_v26 = vadd.f32 %v5098_v23, %v958_v22  ;;  %v6017_v20 = vld [vmem:[%s7748_s9] ss:$12 sps:$4 sm:$0xff]   ;;  %v6021_v22 = vld [vmem:[%s7748_s9 + $0x8] ss:$12 sps:$4 sm:$0xff]  }
 0x23d   : > { %v959_v24 = vmul.f32 %v5097_v19, %v949_v21  ;;  %1342 = vmatpush1.bf16.msra.mxu0 %v5993_v2  ;;  %v6428_v21 = vmov 0  }
 0x23e   : > { %v6163_v25 = vpop.eup %6162  ;;  %1343 = vmatprep.subr.bf16.mxu0 %v5999_v3  ;;  %1371 = vmatprep.mubr.bf16.mxu0 %v6428_v21 }
 0x23f   : > { %v969_v27 = vadd.f32 %v5098_v23, %v959_v24  ;;  %v950_v28 = vmul.f32 %v6163_v25, %v922_v55 }
 0x241   : > { %v989_v29 = vpack.c.bf16 %v969_v27, %v968_v26  ;;  %v960_v32 = vmul.f32 %v5097_v19, %v950_v28  ;;  %1344 = vmatpush1.bf16.msra.mxu0 %v5997_v5 }
 0x242   : > { %v6165_v30 = vpop.eup %6164  ;;  %1345 = vmatprep.subr.bf16.mxu0 %v6003_v6 }
 0x243   : > { %5649 = vmatprep.mubr.bf16.mxu1 %v989_v29  ;;  %v951_v31 = vmul.f32 %v6165_v30, %v923_v59  ;;  %v970_v34 = vadd.f32 %v5098_v23, %v960_v32 }
 0x245   : > { %v961_v33 = vmul.f32 %v5097_v19, %v951_v31  ;;  %1346 = vmatpush1.bf16.msra.mxu0 %v6001_v8  ;;  %v6020_v19 = vld [vmem:[%s7748_s9 + $0x20] ss:$12 sps:$4 sm:$0xff]  }
 0x246   : > { %1347 = vmatprep.subr.bf16.mxu0 %v6007_v9 }
 0x247   : > { %v971_v35 = vadd.f32 %v5098_v23, %v961_v33 }
 0x249   : > { %v990_v36 = vpack.c.bf16 %v971_v35, %v970_v34  ;;  %1348 = vmatpush1.bf16.msra.mxu0 %v6005_v11 }
 0x24a   : > { %1349 = vmatprep.subr.bf16.mxu0 %v6011_v12 }
 0x24b   : > { %5650 = vmatmul.mubr.bf16.vlgmr.msra.gmra.mxu1 %v990_v36 }
 0x24c   : > { %5654 = vmatpush3.bf16.msra.mxu1 %v5996_v1 }
 0x24d   : > { %5655 = vmatprep.subr.bf16.mxu1 %v6000_v4  ;;  %1350 = vmatpush1.bf16.msra.mxu0 %v6009_v14 }
 0x24e   : > { %1351 = vmatprep.subr.bf16.mxu0 %v6015_v15 }
 0x250   : > { %5656 = vmatpush3.bf16.msra.mxu1 %v6000_v4 }
 0x251   : > { %5657 = vmatprep.subr.bf16.mxu1 %v6004_v7  ;;  %1352 = vmatpush1.bf16.msra.mxu0 %v6013_v17 }
 0x252   : > { %1353 = vmatprep.subr.bf16.mxu0 %v6019_v18 }
 0x254   : > { %5658 = vmatpush3.bf16.msra.mxu1 %v6004_v7 }
 0x255   : > { %5659 = vmatprep.subr.bf16.mxu1 %v6008_v10  ;;  %1354 = vmatpush1.bf16.msra.mxu0 %v6017_v20 }
 0x258   : > { %5660 = vmatpush3.bf16.msra.mxu1 %v6008_v10 }
 0x259   : > { %5661 = vmatprep.subr.bf16.mxu1 %v6012_v13 }
 0x25c   : > { %5662 = vmatpush3.bf16.msra.mxu1 %v6012_v13 }
 0x25d   : > { %5663 = vmatprep.subr.bf16.mxu1 %v6016_v16 }
 0x260   : > { %5664 = vmatpush3.bf16.msra.mxu1 %v6016_v16 }
 0x261   : > { %5665 = vmatprep.subr.bf16.mxu1 %v6020_v19 }
 0x264   : > { %5666 = vmatpush3.bf16.msra.mxu1 %v6020_v19 }
 0x265   : > { %5667 = vmatprep.subr.bf16.mxu1 %v6021_v22 }
 0x268   : > { %5668 = vmatpush3.bf16.msra.mxu1 %v6021_v22 }
 0x30b   : > { %v5651_v37 = vpop.f32.mrf.mxu1 }
 0x30c   : > { %v1088_v43 = vadd.f32 %v5651_v37, %v5099_v38  ;;  %v5108_v37 = vld [vmem:[%s7801_s28] ss:$0 sm:$0xff] }
 0x30d   : > { %v1079_v39 = vpop.f32.mrf.mxu1 }
 0x30e   : > { %v1080_v40 = vadd.f32 %v5099_v38, %v1079_v39 }
 0x30f   : > { %v5652_v41 = vpop.f32.mrf.mxu1 }
 0x310   : > { %1096 = vadd.xlane.f32.xlu0 %v1080_v40  ;;  %v1091_v45 = vadd.f32 %v5652_v41, %v5099_v38 }
 0x311   : > { %v1082_v42 = vpop.f32.mrf.mxu1 }
 0x312   : > { %v1083_v44 = vadd.f32 %v5099_v38, %v1082_v42  ;;  %v5109_v42 = vld [vmem:[%s7747_s8] ss:$0 sm:$0xff] }
 0x314   : > { %1098 = vadd.xlane.f32.xlu1 %v1083_v44  ;;  %1100 = vadd.xlane.f32.xlu0 %v1088_v43 }
 0x318   : > { %1102 = vadd.xlane.f32.xlu1 %v1091_v45 }
 0x399   : > { %v1097_v48 = vpop.xlane.xlu0 %1096 }
 0x39a   : > { %v1104_v49 = vmul.f32 0.0078125, %v1097_v48 }
 0x39c   : > { %v6698_v50 = vsub.f32 %v1080_v40, %v1104_v49 }
 0x39d   : > { %v1099_v51 = vpop.xlane.xlu1 %1098  ;;  %v1101_v52 = vpop.xlane.xlu0 %1100 }
 0x39e   : > { %v1105_v53 = vmul.f32 0.0078125, %v1099_v51  ;;  %v1106_v54 = vmul.f32 0.0078125, %v1101_v52  ;;  %v1112_v55 = vmul.f32 %v6698_v50, %v6698_v50 }
 0x3a0   : > { %1116 = vadd.xlane.f32.xlu0 %v1112_v55  ;;  %v6702_v56 = vsub.f32 %v1083_v44, %v1105_v53  ;;  %v6704_v57 = vsub.f32 %v1088_v43, %v1106_v54  ;;  %v1196_v55 = vlaneseq }
 0x3a1   : > { %v1103_v58 = vpop.xlane.xlu1 %1102 }
 0x3a2   : > { %v1107_v59 = vmul.f32 0.0078125, %v1103_v58  ;;  %v1113_v60 = vmul.f32 %v6702_v56, %v6702_v56  ;;  %v1114_v61 = vmul.f32 %v6704_v57, %v6704_v57  ;;  %v1192_v58 = vld [vmem:[%s7749_s10] sm:$0x7] }
 0x3a4   : > { %1118 = vadd.xlane.f32.xlu1 %v1113_v60  ;;  %1120 = vadd.xlane.f32.xlu0 %v1114_v61  ;;  %v6710_v62 = vsub.f32 %v1091_v45, %v1107_v59 }
 0x3a6   : > { %v1115_v63 = vmul.f32 %v6710_v62, %v6710_v62 }
 0x3a8   : > { %1122 = vadd.xlane.f32.xlu1 %v1115_v63 }
 0x429   : > { %v1117_v23 = vpop.xlane.xlu0 %1116 }
 0x42a   : > { %v1124_v24 = vmul.f32 0.0078125, %v1117_v23 }
 0x42c   : > { %v1128_v25 = vadd.f32 1e-05, %v1124_v24 }
 0x42d   : > { %v1119_v26 = vpop.xlane.xlu1 %1118  ;;  %v1121_v27 = vpop.xlane.xlu0 %1120 }
 0x42e   : > { %6166 = vrsqrt.f32 %v1128_v25  ;;  %v1125_v28 = vmul.f32 0.0078125, %v1119_v26  ;;  %v1126_v29 = vmul.f32 0.0078125, %v1121_v27 }
 0x430   : > { %v1129_v30 = vadd.f32 1e-05, %v1125_v28  ;;  %v1130_v31 = vadd.f32 1e-05, %v1126_v29 }
 0x431   : > { %v1123_v32 = vpop.xlane.xlu1 %1122 }
 0x432   : > { %6168 = vrsqrt.f32 %v1129_v30  ;;  %v1127_v33 = vmul.f32 0.0078125, %v1123_v32 }
 0x433   : > { %6170 = vrsqrt.f32 %v1130_v31 }
 0x434   : > { %v1131_v34 = vadd.f32 1e-05, %v1127_v33 }
 0x436   : > { %6172 = vrsqrt.f32 %v1131_v34 }
 0x43b   : > { %v6167_v35 = vpop.eup %6166 }
 0x43c   : > { %v1136_v36 = vmul.f32 %v6167_v35, %v6698_v50 }
 0x43e   : > { %v1146_v41 = vmul.f32 %v5108_v37, %v1136_v36 }
 0x43f   : > { %v6169_v38 = vpop.eup %6168 }
 0x440   : > { %v6171_v39 = vpop.eup %6170  ;;  %v1137_v40 = vmul.f32 %v6169_v38, %v6702_v56  ;;  %v6790_v46 = vadd.f32 %v5109_v42, %v1146_v41  ;;  %v6804_v56 = vshrl.u32 %v1196_v55, 7 }
 0x441   : > { %v1138_v43 = vmul.f32 %v6171_v39, %v6704_v57 }
 0x442   : > { %v1147_v44 = vmul.f32 %v5108_v37, %v1137_v40  ;;  %v6807_v57 = vsub.s32 0, %v6804_v56  ;;  %v6816_v4 = vsub.s32 1, %v6804_v56  ;;  %v1206_v15 = vsub.s32 2, %v6804_v56 }
 0x443   : > { %v6173_v45 = vpop.eup %6172  ;;  %v1148_v49 = vmul.f32 %v5108_v37, %v1138_v43 }
 0x444   : > { %v6792_v47 = vadd.f32 %v5109_v42, %v1147_v44  ;;  %v1139_v48 = vmul.f32 %v6173_v45, %v6710_v62  ;;  %v1199_v60 = vrot.slane %v1192_v58, %v6807_v57  ;;  %v1203_v8 = vrot.slane %v1192_v58, %v6816_v4 }
 0x445   : > { %v6797_v52 = vadd.f32 %v5109_v42, %v1148_v49  ;;  %v1207_v20 = vrot.slane %v1192_v58, %v1206_v15 }
 0x446   : > { %v1193_v50 = vpack.c.bf16 %v6792_v47, %v6790_v46  ;;  %v1149_v51 = vmul.f32 %v5108_v37, %v1139_v48 }
 0x448   : > { %1372 = vmatmul.mubr.bf16.vlgmr.msra.gmra.mxu0 %v1193_v50  ;;  %5669 = vmatprep.mubr.bf16.mxu1 %v1193_v50  ;;  %v6799_v53 = vadd.f32 %v5109_v42, %v1149_v51 }
 0x449   : > { %1381 = vmatprep.mubr.bf16.mxu0 %v6428_v21 }
 0x44a   : > { %v1194_v54 = vpack.c.bf16 %v6799_v53, %v6797_v52 }
 0x44c   : > { %5670 = vmatmul.mubr.bf16.vlgmr.msra.gmra.mxu1 %v1194_v54 }
 0x450   : > { %1382 = vmatmul.mubr.bf16.gmra.mxu0 %v1194_v54 }
 0x508   : > { %v1373_v59 = vpop.f32.mrf.mxu0 }
 0x509   : > { %v1374_v63 = vadd.f32 %v1373_v59, %v1199_v60 }
 0x50a   : > { %v1375_v61 = vpop.f32.mrf.mxu0 }
 0x50b   : > { %v1376_v14 = vadd.f32 %v1375_v61, %v1203_v8 }
 0x50c   : > { %v1377_v62 = vpop.f32.mrf.mxu0  ;;  %v5671_v6 = vpop.f32.mrf.mxu1 }
 0x50d   : > { %v1378_v0 = vadd.f32 %v1377_v62, %v1199_v60  ;;  %v1435_v23 = vadd.f32 %v5671_v6, %v1207_v20 }
 0x50e   : > { %v1379_v1 = vpop.f32.mrf.mxu0  ;;  %v1426_v13 = vpop.f32.mrf.mxu1 }
 0x50f   : > { %v6813_v2 = vpack.c.bf16 %v1378_v0, %v1374_v63  ;;  %v1380_v10 = vadd.f32 %v1379_v1, %v1203_v8  ;;  %v1427_v30 = vadd.f32 %v1426_v13, %v1207_v20 }
 0x510   : > { %v1383_v3 = vpop.f32.mrf.mxu0  ;;  %v5672_v19 = vpop.f32.mrf.mxu1 }
 0x511   : > { %5677 = vmatprep.mubr.msk.bf16.mxu1 %vm1463_vm0, %v6813_v2  ;;  %v6824_v17 = vpack.c.bf16 %v1380_v10, %v1376_v14  ;;  %v1438_v22 = vadd.f32 %v5672_v19, %v1207_v20  ;;  %v1384_v28 = vadd.f32 %v1383_v3, %v1199_v60 }
 0x512   : > { %v1385_v5 = vpop.f32.mrf.mxu0  ;;  %v1429_v26 = vpop.f32.mrf.mxu1 }
 0x513   : > { %v1386_v11 = vadd.f32 %v1385_v5, %v1203_v8  ;;  %v6834_v24 = vpack.c.bf16 %v1438_v22, %v1435_v23  ;;  %v1471_v25 = vsel %vm1463_vm0, %v6824_v17, 0  ;;  %v1430_v29 = vadd.f32 %v1429_v26, %v1207_v20 }
 0x514   : > { %v1387_v7 = vpop.f32.mrf.mxu0 }
 0x515   : > { %v1388_v27 = vadd.f32 %v1387_v7, %v1199_v60  ;;  %v6841_v32 = vpack.c.bf16 %v1430_v29, %v1427_v30  ;;  %v6022_v30 = vld [vmem:[%s7750_s11 + $0x8] sm:$0xff]  }
 0x516   : > { %v1389_v9 = vpop.f32.mrf.mxu0 }
 0x517   : > { %v1390_v12 = vadd.f32 %v1389_v9, %v1203_v8  ;;  %v6839_v31 = vpack.c.bf16 %v1388_v27, %v1384_v28 }
 0x519   : > { %v6822_v16 = vpack.c.bf16 %v1390_v12, %v1386_v11 }
 0x51b   : > { %5905 = vmatprep.subr.msk.bf16.mxu1 %vm1463_vm0, %v6822_v16  ;;  %v1474_v18 = vsel %vm1463_vm0, %v6822_v16, 0 }
 0x51c   : > { %5674 = vmatpush3.bf16.xpose.msra.mxu1 %v1474_v18 }
 0x51d   : > { %5906 = vmatprep.subr.msk.bf16.mxu1 %vm1463_vm0, %v6824_v17 }
 0x524   : > { %5676 = vmatpush3.bf16.xpose.msra.mxu1 %v1471_v25 }
 0x525   : > { %5681 = vmatprep.subr.bf16.mxu1 %v6834_v24 }
 0x52b   : > { %5678 = vmatmul.mubr.msk.bf16.vlgmr.msra.gmra.mxu1 %vm1463_vm0, %v6839_v31 }
 0x52c   : > { %5682 = vmatpush3.bf16.msra.mxu1 %v6834_v24 }
 0x52d   : > { %5683 = vmatprep.subr.bf16.mxu1 %v6841_v32 }
 0x530   : > { %5684 = vmatpush3.bf16.msra.mxu1 %v6841_v32 }
 0x5eb   : > { %v5679_v33 = vpop.f32.mrf.mxu1 }
 0x5ec   : > { %v1531_v38 = vsel %vm1463_vm0, %v5679_v33, -inf }
 0x5ed   : > { %v1510_v34 = vpop.f32.mrf.mxu1 }
 0x5ee   : > { %v1525_v35 = vsel %vm1463_vm0, %v1510_v34, -inf }
 0x5ef   : > { %1526 = vmax.xlane.f32.xlu0 %v1525_v35  ;;  %v5680_v36 = vpop.f32.mrf.mxu1 }
 0x5f0   : > { %v1534_v40 = vsel %vm1463_vm0, %v5680_v36, -inf }
 0x5f1   : > { %v1513_v37 = vpop.f32.mrf.mxu1 }
 0x5f2   : > { %v1528_v39 = vsel %vm1463_vm0, %v1513_v37, -inf }
 0x5f3   : > { %1532 = vmax.xlane.f32.xlu0 %v1531_v38  ;;  %1529 = vmax.xlane.f32.xlu1 %v1528_v39 }
 0x5f7   : > { %1535 = vmax.xlane.f32.xlu1 %v1534_v40 }
 0x678   : > { %v1527_v41 = vpop.xlane.xlu0 %1526 }
 0x679   : > { %v1537_v42 = vsub.f32 %v1510_v34, %v1527_v41 }
 0x67b   : > { %v1541_v49 = vmul.f32 1.442695, %v1537_v42 }
 0x67c   : > { %v1533_v43 = vpop.xlane.xlu0 %1532  ;;  %v1530_v44 = vpop.xlane.xlu1 %1529 }
 0x67d   : > { %v1539_v45 = vsub.f32 %v5679_v33, %v1533_v43  ;;  %v1538_v48 = vsub.f32 %v1513_v37, %v1530_v44  ;;  %v6023_v33 = vld [vmem:[%s7750_s11] sm:$0xff]  }
 0x67f   : > { %v1545_v50 = vmul.f32 1.442695, %v1539_v45  ;;  %v1543_v51 = vmul.f32 1.442695, %v1538_v48 }
 0x680   : > { %v1536_v54 = vpop.xlane.xlu1 %1535 }
 0x681   : > { %6174 = vpow2.f32 %v1545_v50  ;;  %v1540_v55 = vsub.f32 %v5680_v36, %v1536_v54 }
 0x682   : > { %6176 = vpow2.f32 %v1543_v51 }
 0x683   : > { %6178 = vpow2.f32 %v1541_v49  ;;  %v1547_v58 = vmul.f32 1.442695, %v1540_v55 }
 0x685   : > { %6180 = vpow2.f32 %v1547_v58 }
 0x68e   : > { %v6175_v59 = vpop.eup %6174 }
 0x68f   : > { %v6177_v60 = vpop.eup %6176  ;;  %v1555_v61 = vsel %vm1463_vm0, %v6175_v59, 0.0 }
 0x690   : > { %v6179_v62 = vpop.eup %6178  ;;  %1556 = vadd.xlane.f32.xlu0 %v1555_v61  ;;  %v1552_v63 = vsel %vm1463_vm0, %v6177_v60, 0.0 }
 0x691   : > { %1553 = vadd.xlane.f32.xlu1 %v1552_v63  ;;  %v1549_v1 = vsel %vm1463_vm0, %v6179_v62, 0.0 }
 0x692   : > { %v6181_v0 = vpop.eup %6180 }
 0x693   : > { %v1558_v3 = vsel %vm1463_vm0, %v6181_v0, 0.0 }
 0x694   : > { %1550 = vadd.xlane.f32.xlu0 %v1549_v1 }
 0x695   : > { %1559 = vadd.xlane.f32.xlu1 %v1558_v3 }
 0x6a6   : > { %1636 = vrot.lane.b32.xlu1 %v6824_v17, %s6429_s23 }
 0x6aa   : > { %1630 = vrot.lane.b32.xlu1 %v6813_v2, %s6429_s23  ;;  %1638 = vrot.lane.b32.xlu0 %v6822_v16, %s6429_s23 }
 0x6ae   : > { %1632 = vrot.lane.b32.xlu1 %v6839_v31, %s6429_s23 }
 0x719   : > { %v1557_v5 = vpop.xlane.xlu0 %1556 }
 0x71a   : > { %v1554_v6 = vpop.xlane.xlu1 %1553 }
 0x71b   : > { %6182 = vrcp.f32 %v1554_v6 }
 0x71c   : > { %6184 = vrcp.f32 %v1557_v5 }
 0x71d   : > { %v1551_v7 = vpop.xlane.xlu0 %1550 }
 0x71e   : > { %6186 = vrcp.f32 %v1551_v7  ;;  %v1560_v8 = vpop.xlane.xlu1 %1559 }
 0x71f   : > { %6188 = vrcp.f32 %v1560_v8 }
 0x721   : > { %v1639_v9 = vpop.permute.xlu0 %1638 }
 0x722   : > { %5907 = vmatprep.subr.msk.bf16.mxu1 %vm1463_vm0, %v1639_v9  ;;  %v1637_v13 = vpop.permute.xlu1 %1636  ;;  %v1650_v27 = vsel %vm1463_vm0, %v1639_v9, 0 }
 0x723   : > { %v1647_v28 = vsel %vm1463_vm0, %v1637_v13, 0 }
 0x726   : > { %v1631_v26 = vpop.permute.xlu1 %1630 }
 0x728   : > { %v6183_v10 = vpop.eup %6182 }
 0x729   : > { %v6185_v11 = vpop.eup %6184  ;;  %v1564_v19 = vmul.f32 %v6183_v10, %v6177_v60 }
 0x72a   : > { %v1566_v20 = vmul.f32 %v6185_v11, %v6175_v59  ;;  %v1633_v29 = vpop.permute.xlu1 %1632 }
 0x72b   : > { %v6187_v12 = vpop.eup %6186 }
 0x72c   : > { %v6189_v14 = vpop.eup %6188  ;;  %v1562_v18 = vmul.f32 %v6187_v12, %v6179_v62 }
 0x72d   : > { %v1568_v22 = vmul.f32 %v6189_v14, %v6181_v0 }
 0x72e   : > { %v1569_v23 = vpack.c.bf16 %v1564_v19, %v1562_v18 }
 0x72f   : > { %v1570_v25 = vpack.c.bf16 %v1568_v22, %v1566_v20 }
 0x730   : > { %5685 = vmatprep.mubr.msk.bf16.mxu1 %vm1463_vm0, %v1569_v23 }
 0x731   : > { %5686 = vmatmul.mubr.msk.bf16.vlgmr.msra.gmra.mxu1 %vm1463_vm0, %v1570_v25 }
 0x732   : > { %5690 = vmatpush3.bf16.xpose.msra.mxu1 %v1650_v27  ;;  %5693 = vmatprep.mubr.msk.bf16.mxu1 %vm1463_vm0, %v1631_v26 }
 0x733   : > { %5908 = vmatprep.subr.msk.bf16.mxu1 %vm1463_vm0, %v1637_v13 }
 0x73a   : > { %5692 = vmatpush3.bf16.xpose.msra.mxu1 %v1647_v28 }
 0x73b   : > { %5713 = vmatprep.subr.bf16.mxu1 %v6022_v30 }
 0x741   : > { %5694 = vmatmul.mubr.msk.bf16.vlgmr.msra.gmra.mxu1 %vm1463_vm0, %v1633_v29 }
 0x742   : > { %5714 = vmatpush3.bf16.msra.mxu1 %v6022_v30  ;;  %v6025_v30 = vld [vmem:[%s7750_s11 + $0x10] sm:$0xff]  }
 0x743   : > { %5715 = vmatprep.subr.bf16.mxu1 %v6023_v33 }
 0x746   : > { %5716 = vmatpush3.bf16.msra.mxu1 %v6023_v33 }
 0x7f1   : > { %v5687_v34 = vpop.f32.mrf.mxu1 }
 0x7f3   : > { %v1611_v35 = vpop.f32.mrf.mxu1 }
 0x7f5   : > { %v5688_v36 = vpop.f32.mrf.mxu1 }
 0x7f6   : > { %v1627_v39 = vpack.c.bf16 %v5688_v36, %v5687_v34 }
 0x7f7   : > { %v1614_v37 = vpop.f32.mrf.mxu1 }
 0x7f8   : > { %v1626_v38 = vpack.c.bf16 %v1614_v37, %v1611_v35 }
 0x7fa   : > { %5717 = vmatprep.mubr.msk.bf16.mxu1 %vm1463_vm0, %v1626_v38 }
 0x7fb   : > { %5718 = vmatmul.mubr.msk.bf16.vlgmr.msra.gmra.mxu1 %vm1463_vm0, %v1627_v39 }
 0x801   : > { %v5695_v40 = vpop.f32.mrf.mxu1 }
 0x802   : > { %v1707_v45 = vsel %vm1463_vm0, %v5695_v40, -inf }
 0x803   : > { %v1686_v41 = vpop.f32.mrf.mxu1 }
 0x804   : > { %v1701_v42 = vsel %vm1463_vm0, %v1686_v41, -inf }
 0x805   : > { %1702 = vmax.xlane.f32.xlu0 %v1701_v42  ;;  %v5696_v43 = vpop.f32.mrf.mxu1 }
 0x806   : > { %v1710_v49 = vsel %vm1463_vm0, %v5696_v43, -inf }
 0x807   : > { %v1689_v44 = vpop.f32.mrf.mxu1 }
 0x808   : > { %v1704_v48 = vsel %vm1463_vm0, %v1689_v44, -inf }
 0x809   : > { %1708 = vmax.xlane.f32.xlu0 %v1707_v45  ;;  %1705 = vmax.xlane.f32.xlu1 %v1704_v48 }
 0x80d   : > { %1711 = vmax.xlane.f32.xlu0 %v1710_v49 }
 0x88e   : > { %v1703_v50 = vpop.xlane.xlu0 %1702 }
 0x88f   : > { %v1713_v51 = vsub.f32 %v1686_v41, %v1703_v50 }
 0x891   : > { %v1717_v59 = vmul.f32 1.442695, %v1713_v51 }
 0x892   : > { %v1709_v54 = vpop.xlane.xlu0 %1708  ;;  %v1706_v55 = vpop.xlane.xlu1 %1705 }
 0x893   : > { %v1715_v58 = vsub.f32 %v5695_v40, %v1709_v54  ;;  %v1714_v61 = vsub.f32 %v1689_v44, %v1706_v55 }
 0x895   : > { %v1721_v60 = vmul.f32 1.442695, %v1715_v58  ;;  %v1719_v0 = vmul.f32 1.442695, %v1714_v61 }
 0x896   : > { %v1712_v62 = vpop.xlane.xlu0 %1711 }
 0x897   : > { %6190 = vpow2.f32 %v1721_v60  ;;  %v1716_v63 = vsub.f32 %v5696_v43, %v1712_v62 }
 0x898   : > { %6192 = vpow2.f32 %v1717_v59 }
 0x899   : > { %v1723_v1 = vmul.f32 1.442695, %v1716_v63 }
 0x89b   : > { %6194 = vpow2.f32 %v1723_v1 }
 0x89c   : > { %6196 = vpow2.f32 %v1719_v0 }
 0x8a4   : > { %v6191_v3 = vpop.eup %6190 }
 0x8a5   : > { %v1731_v5 = vsel %vm1463_vm0, %v6191_v3, 0.0  ;;  %v6193_v6 = vpop.eup %6192 }
 0x8a6   : > { %1732 = vadd.xlane.f32.xlu0 %v1731_v5  ;;  %v1725_v8 = vsel %vm1463_vm0, %v6193_v6, 0.0 }
 0x8a8   : > { %v6195_v7 = vpop.eup %6194 }
 0x8a9   : > { %v1734_v9 = vsel %vm1463_vm0, %v6195_v7, 0.0  ;;  %v6197_v10 = vpop.eup %6196 }
 0x8aa   : > { %1726 = vadd.xlane.f32.xlu0 %v1725_v8  ;;  %1735 = vadd.xlane.f32.xlu1 %v1734_v9  ;;  %v1728_v11 = vsel %vm1463_vm0, %v6197_v10, 0.0 }
 0x8ae   : > { %1729 = vadd.xlane.f32.xlu1 %v1728_v11 }
 0x8bf   : > { %1749 = vrot.lane.b32.xlu1 %v6841_v32, %s6429_s23 }
 0x8c0   : > { %1751 = vrot.lane.b32.xlu0 %v6834_v24, %s6429_s23 }
 0x8c3   : > { %1952 = vrot.lane.b32.xlu1 %v6822_v16, %s6430_s29 }
 0x8c4   : > { %1946 = vrot.lane.b32.xlu0 %v6813_v2, %s6430_s29 }
 0x8c7   : > { %1950 = vrot.lane.b32.xlu1 %v6824_v17, %s6430_s29 }
 0x8c8   : > { %2201 = vrot.lane.b32.xlu0 %v6822_v16, %s6431_s3 }
 0x8cb   : > { %1948 = vrot.lane.b32.xlu1 %v6839_v31, %s6430_s29 }
 0x8cc   : > { %2195 = vrot.lane.b32.xlu0 %v6813_v2, %s6431_s3  ;;  %v6024_v2 = vld [vmem:[%s7750_s11 + $0x18] sm:$0xff]  }
 0x8cf   : > { %2199 = vrot.lane.b32.xlu1 %v6824_v17, %s6431_s3 }
 0x8d3   : > { %2197 = vrot.lane.b32.xlu1 %v6839_v31, %s6431_s3 }
 0x92f   : > { %v1733_v12 = vpop.xlane.xlu0 %1732 }
 0x933   : > { %v1727_v13 = vpop.xlane.xlu0 %1726  ;;  %v1736_v14 = vpop.xlane.xlu1 %1735 }
 0x934   : > { %6198 = vrcp.f32 %v1736_v14 }
 0x935   : > { %6200 = vrcp.f32 %v1727_v13 }
 0x936   : > { %6202 = vrcp.f32 %v1733_v12 }
 0x937   : > { %v1752_v18 = vpop.permute.xlu0 %1751  ;;  %v1730_v16 = vpop.xlane.xlu1 %1729 }
 0x938   : > { %6204 = vrcp.f32 %v1730_v16  ;;  %5697 = vmatprep.subr.bf16.mxu0 %v1752_v18 }
 0x939   : > { %5698 = vmatpush3.bf16.msra.mxu0 %v1752_v18 }
 0x93b   : > { %v1750_v19 = vpop.permute.xlu1 %1749  ;;  %v1947_v40 = vpop.permute.xlu0 %1946 }
 0x93c   : > { %5699 = vmatprep.subr.bf16.mxu0 %v1750_v19 }
 0x93d   : > { %5700 = vmatpush3.bf16.msra.mxu0 %v1750_v19 }
 0x93e   : > { %5705 = vmatprep.subr.bf16.mxu0 %v6024_v2 }
 0x93f   : > { %v1953_v33 = vpop.permute.xlu1 %1952  ;;  %v2202_v44 = vpop.permute.xlu0 %2201 }
 0x940   : > { %v1964_v41 = vsel %vm1463_vm0, %v1953_v33, 0  ;;  %v2213_v49 = vsel %vm1463_vm0, %v2202_v44, 0 }
 0x941   : > { %v6199_v17 = vpop.eup %6198 }
 0x942   : > { %v6201_v31 = vpop.eup %6200  ;;  %v1744_v23 = vmul.f32 %v6199_v17, %v6195_v7 }
 0x943   : > { %v6203_v20 = vpop.eup %6202  ;;  %v1738_v25 = vmul.f32 %v6201_v31, %v6193_v6  ;;  %v1951_v42 = vpop.permute.xlu1 %1950 }
 0x944   : > { %v1742_v27 = vmul.f32 %v6203_v20, %v6191_v3  ;;  %v1961_v43 = vsel %vm1463_vm0, %v1951_v42, 0  ;;  %v2196_v48 = vpop.permute.xlu0 %2195 }
 0x945   : > { %v6205_v22 = vpop.eup %6204 }
 0x946   : > { %v1740_v26 = vmul.f32 %v6205_v22, %v6197_v10  ;;  %v1746_v29 = vpack.c.bf16 %v1744_v23, %v1742_v27 }
 0x947   : > { %v1949_v45 = vpop.permute.xlu1 %1948 }
 0x948   : > { %v1745_v28 = vpack.c.bf16 %v1740_v26, %v1738_v25 }
 0x94a   : > { %5701 = vmatprep.mubr.msk.bf16.mxu0 %vm1463_vm0, %v1745_v28 }
 0x94b   : > { %5702 = vmatmul.mubr.msk.bf16.vlgmr.msra.gmra.mxu0 %vm1463_vm0, %v1746_v29  ;;  %v2200_v50 = vpop.permute.xlu1 %2199 }
 0x94c   : > { %5706 = vmatpush3.bf16.msra.mxu0 %v6024_v2  ;;  %v2210_v51 = vsel %vm1463_vm0, %v2200_v50, 0 }
 0x94d   : > { %5707 = vmatprep.subr.bf16.mxu0 %v6025_v30 }
 0x94f   : > { %v2198_v54 = vpop.permute.xlu1 %2197 }
 0x950   : > { %5708 = vmatpush3.bf16.msra.mxu0 %v6025_v30 }
 0x951   : > { %5909 = vmatprep.subr.msk.bf16.mxu0 %vm1463_vm0, %v1953_v33 }
 0xa0b   : > { %v5703_v34 = vpop.f32.mrf.mxu0 }
 0xa0d   : > { %v1795_v35 = vpop.f32.mrf.mxu0 }
 0xa0f   : > { %v5704_v36 = vpop.f32.mrf.mxu0 }
 0xa10   : > { %v1811_v39 = vpack.c.bf16 %v5704_v36, %v5703_v34 }
 0xa11   : > { %v1798_v37 = vpop.f32.mrf.mxu0 }
 0xa12   : > { %v1810_v38 = vpack.c.bf16 %v1798_v37, %v1795_v35 }
 0xa14   : > { %5709 = vmatprep.mubr.msk.bf16.mxu0 %vm1463_vm0, %v1810_v38 }
 0xa15   : > { %5710 = vmatmul.mubr.msk.bf16.vlgmr.msra.gmra.mxu0 %vm1463_vm0, %v1811_v39 }
 0xa16   : > { %5722 = vmatpush3.bf16.xpose.msra.mxu0 %v1964_v41  ;;  %5725 = vmatprep.mubr.msk.bf16.mxu0 %vm1463_vm0, %v1947_v40 }
 0xa17   : > { %5910 = vmatprep.subr.msk.bf16.mxu0 %vm1463_vm0, %v1951_v42 }
 0xa1e   : > { %5724 = vmatpush3.bf16.xpose.msra.mxu0 %v1961_v43 }
 0xa1f   : > { %5911 = vmatprep.subr.msk.bf16.mxu0 %vm1463_vm0, %v2202_v44 }
 0xa25   : > { %5726 = vmatmul.mubr.msk.bf16.vlgmr.msra.gmra.mxu0 %vm1463_vm0, %v1949_v45 }
 0xa26   : > { %5746 = vmatpush3.bf16.xpose.msra.mxu0 %v2213_v49  ;;  %5749 = vmatprep.mubr.msk.bf16.mxu0 %vm1463_vm0, %v2196_v48 }
 0xa27   : > { %5912 = vmatprep.subr.msk.bf16.mxu0 %vm1463_vm0, %v2200_v50 }
 0xa2e   : > { %5748 = vmatpush3.bf16.xpose.msra.mxu0 %v2210_v51 }
 0xa35   : > { %5750 = vmatmul.mubr.msk.bf16.vlgmr.msra.gmra.mxu0 %vm1463_vm0, %v2198_v54 }
 0xa36   : > { %2667 = vmatprep.mubr.bf16.mxu0 %v6428_v21 }
 0xad5   : > { %v6931_v55 = vpop.f32.mrf.mxu0 }
 0xad7   : > { %v6933_v58 = vpop.f32.mrf.mxu0 }
 0xad9   : > { %v6935_v59 = vpop.f32.mrf.mxu0 }
 0xadb   : > { %v6937_v60 = vpop.f32.mrf.mxu0 }
 0xae5   : > { %v5727_v61 = vpop.f32.mrf.mxu0 }
 0xae6   : > { %v2021_v3 = vsel %vm1463_vm0, %v5727_v61, -inf }
 0xae7   : > { %v2000_v62 = vpop.f32.mrf.mxu0 }
 0xae8   : > { %v2015_v63 = vsel %vm1463_vm0, %v2000_v62, -inf }
 0xae9   : > { %2016 = vmax.xlane.f32.xlu0 %v2015_v63  ;;  %v5728_v0 = vpop.f32.mrf.mxu0 }
 0xaea   : > { %v2024_v6 = vsel %vm1463_vm0, %v5728_v0, -inf }
 0xaeb   : > { %v2003_v1 = vpop.f32.mrf.mxu0 }
 0xaec   : > { %v2018_v5 = vsel %vm1463_vm0, %v2003_v1, -inf }
 0xaed   : > { %2022 = vmax.xlane.f32.xlu0 %v2021_v3  ;;  %2019 = vmax.xlane.f32.xlu1 %v2018_v5 }
 0xaf1   : > { %2025 = vmax.xlane.f32.xlu0 %v2024_v6 }
 0xaf5   : > { %v5751_v28 = vpop.f32.mrf.mxu0 }
 0xaf6   : > { %v2270_v35 = vsel %vm1463_vm0, %v5751_v28, -inf }
 0xaf7   : > { %v2249_v29 = vpop.f32.mrf.mxu0 }
 0xaf8   : > { %v2264_v36 = vsel %vm1463_vm0, %v2249_v29, -inf }
 0xaf9   : > { %v5752_v30 = vpop.f32.mrf.mxu0 }
 0xafa   : > { %v2273_v37 = vsel %vm1463_vm0, %v5752_v30, -inf }
 0xafb   : > { %v2252_v33 = vpop.f32.mrf.mxu0 }
 0xafc   : > { %v2267_v34 = vsel %vm1463_vm0, %v2252_v33, -inf }
 0xb72   : > { %v2017_v7 = vpop.xlane.xlu0 %2016 }
 0xb73   : > { %v2027_v8 = vsub.f32 %v2000_v62, %v2017_v7 }
 0xb75   : > { %v2031_v12 = vmul.f32 1.442695, %v2027_v8 }
 0xb76   : > { %v2023_v9 = vpop.xlane.xlu0 %2022  ;;  %v2020_v10 = vpop.xlane.xlu1 %2019 }
 0xb77   : > { %v2029_v11 = vsub.f32 %v5727_v61, %v2023_v9  ;;  %v2028_v14 = vsub.f32 %v2003_v1, %v2020_v10 }
 0xb79   : > { %v2035_v13 = vmul.f32 1.442695, %v2029_v11  ;;  %v2033_v2 = vmul.f32 1.442695, %v2028_v14 }
 0xb7a   : > { %v2026_v18 = vpop.xlane.xlu0 %2025 }
 0xb7b   : > { %6206 = vpow2.f32 %v2035_v13  ;;  %v2030_v16 = vsub.f32 %v5728_v0, %v2026_v18 }
 0xb7c   : > { %6208 = vpow2.f32 %v2031_v12 }
 0xb7d   : > { %v2037_v19 = vmul.f32 1.442695, %v2030_v16 }
 0xb7f   : > { %6210 = vpow2.f32 %v2037_v19 }
 0xb80   : > { %6212 = vpow2.f32 %v2033_v2 }
 0xb88   : > { %v6207_v17 = vpop.eup %6206 }
 0xb89   : > { %v2045_v31 = vsel %vm1463_vm0, %v6207_v17, 0.0  ;;  %v6209_v20 = vpop.eup %6208 }
 0xb8a   : > { %2046 = vadd.xlane.f32.xlu0 %v2045_v31  ;;  %v2039_v23 = vsel %vm1463_vm0, %v6209_v20, 0.0 }
 0xb8c   : > { %v6211_v22 = vpop.eup %6210 }
 0xb8d   : > { %v2048_v25 = vsel %vm1463_vm0, %v6211_v22, 0.0  ;;  %v6213_v26 = vpop.eup %6212 }
 0xb8e   : > { %2040 = vadd.xlane.f32.xlu0 %v2039_v23  ;;  %2049 = vadd.xlane.f32.xlu1 %v2048_v25  ;;  %v2042_v27 = vsel %vm1463_vm0, %v6213_v26, 0.0  ;;  %v6027_v23 = vld [vmem:[%s7750_s11 + $0x20] sm:$0xff]   ;;  %v5719_v25 = vpop.f32.mrf.mxu1 }
 0xb92   : > { %2043 = vadd.xlane.f32.xlu1 %v2042_v27 }
 0xba3   : > { %2061 = vrot.lane.b32.xlu1 %v6841_v32, %s6430_s29 }
 0xba4   : > { %2063 = vrot.lane.b32.xlu0 %v6834_v24, %s6430_s29 }
 0xbc3   : > { %2268 = vmax.xlane.f32.xlu0 %v2267_v34 }
 0xbc7   : > { %2271 = vmax.xlane.f32.xlu0 %v2270_v35  ;;  %2265 = vmax.xlane.f32.xlu1 %v2264_v36 }
 0xbcb   : > { %2274 = vmax.xlane.f32.xlu1 %v2273_v37 }
 0xc13   : > { %v2047_v38 = vpop.xlane.xlu0 %2046 }
 0xc17   : > { %v2041_v39 = vpop.xlane.xlu0 %2040  ;;  %v2050_v40 = vpop.xlane.xlu1 %2049 }
 0xc18   : > { %6214 = vrcp.f32 %v2050_v40 }
 0xc19   : > { %6216 = vrcp.f32 %v2041_v39 }
 0xc1a   : > { %6218 = vrcp.f32 %v2047_v38 }
 0xc1b   : > { %v2064_v41 = vpop.permute.xlu0 %2063  ;;  %v2044_v42 = vpop.xlane.xlu1 %2043 }
 0xc1c   : > { %6220 = vrcp.f32 %v2044_v42  ;;  %5729 = vmatprep.subr.bf16.mxu1 %v2064_v41 }
 0xc1d   : > { %5730 = vmatpush3.bf16.msra.mxu1 %v2064_v41 }
 0xc1f   : > { %v2062_v43 = vpop.permute.xlu1 %2061 }
 0xc20   : > { %5731 = vmatprep.subr.bf16.mxu1 %v2062_v43 }
 0xc21   : > { %5732 = vmatpush3.bf16.msra.mxu1 %v2062_v43 }
 0xc25   : > { %v6215_v44 = vpop.eup %6214 }
 0xc26   : > { %v6217_v45 = vpop.eup %6216  ;;  %v2058_v50 = vmul.f32 %v6215_v44, %v6211_v22  ;;  %v6026_v22 = vld [vmem:[%s7750_s11 + $0x28] sm:$0xff]  }
 0xc27   : > { %v6219_v48 = vpop.eup %6218  ;;  %v2052_v51 = vmul.f32 %v6217_v45, %v6209_v20  ;;  %5737 = vmatprep.subr.bf16.mxu1 %v6026_v22 }
 0xc28   : > { %v2056_v61 = vmul.f32 %v6219_v48, %v6207_v17 }
 0xc29   : > { %v6221_v49 = vpop.eup %6220 }
 0xc2a   : > { %v2054_v54 = vmul.f32 %v6221_v49, %v6213_v26  ;;  %v2060_v63 = vpack.c.bf16 %v2058_v50, %v2056_v61  ;;  %v1931_v26 = vpop.f32.mrf.mxu1  ;;  %v6028_v61 = vld [vmem:[%s7750_s11 + $0x38] sm:$0xff]  }
 0xc2c   : > { %v2059_v62 = vpack.c.bf16 %v2054_v54, %v2052_v51  ;;  %v5720_v27 = vpop.f32.mrf.mxu1 }
 0xc2e   : > { %5733 = vmatprep.mubr.msk.bf16.mxu1 %vm1463_vm0, %v2059_v62  ;;  %v6029_v62 = vld [vmem:[%s7750_s11 + $0x30] sm:$0xff]  }
 0xc2f   : > { %5734 = vmatmul.mubr.msk.bf16.vlgmr.msra.gmra.mxu1 %vm1463_vm0, %v2060_v63  ;;  %v1940_v63 = vadd.f32 %v5719_v25, %v6931_v55 }
 0xc30   : > { %5738 = vmatpush3.bf16.msra.mxu1 %v6026_v22 }
 0xc31   : > { %5739 = vmatprep.subr.bf16.mxu1 %v6027_v23 }
 0xc34   : > { %5740 = vmatpush3.bf16.msra.mxu1 %v6027_v23 }
 0xc4c   : > { %v2269_v0 = vpop.xlane.xlu0 %2268 }
 0xc4d   : > { %v2277_v7 = vsub.f32 %v2252_v33, %v2269_v0 }
 0xc4f   : > { %v2282_v12 = vmul.f32 1.442695, %v2277_v7 }
 0xc50   : > { %v2272_v1 = vpop.xlane.xlu0 %2271  ;;  %v2266_v3 = vpop.xlane.xlu1 %2265 }
 0xc51   : > { %v2278_v5 = vsub.f32 %v5751_v28, %v2272_v1  ;;  %v2276_v6 = vsub.f32 %v2249_v29, %v2266_v3  ;;  %v1934_v28 = vpop.f32.mrf.mxu1  ;;  %v1932_v1 = vadd.f32 %v1931_v26, %v6933_v58 }
 0xc53   : > { %v2284_v8 = vmul.f32 1.442695, %v2278_v5  ;;  %v2280_v9 = vmul.f32 1.442695, %v2276_v6  ;;  %v1943_v6 = vadd.f32 %v5720_v27, %v6935_v59 }
 0xc54   : > { %v2275_v10 = vpop.xlane.xlu1 %2274 }
 0xc55   : > { %6222 = vpow2.f32 %v2284_v8  ;;  %v2279_v11 = vsub.f32 %v5752_v30, %v2275_v10 }
 0xc56   : > { %6224 = vpow2.f32 %v2280_v9  ;;  %v1935_v9 = vadd.f32 %v1934_v28, %v6937_v60  ;;  %v5166_v60 = vld [vmem:[%s7751_s12] ss:$0 sm:$0xff] }
 0xc57   : > { %v2286_v13 = vmul.f32 1.442695, %v2279_v11 }
 0xc59   : > { %6226 = vpow2.f32 %v2286_v13 }
 0xc5a   : > { %6228 = vpow2.f32 %v2282_v12 }
 0xc62   : > { %v6223_v14 = vpop.eup %6222 }
 0xc63   : > { %v2294_v18 = vsel %vm1463_vm0, %v6223_v14, 0.0  ;;  %v6225_v16 = vpop.eup %6224 }
 0xc64   : > { %2295 = vadd.xlane.f32.xlu0 %v2294_v18  ;;  %v2288_v19 = vsel %vm1463_vm0, %v6225_v16, 0.0 }
 0xc66   : > { %v6227_v2 = vpop.eup %6226 }
 0xc67   : > { %v2297_v17 = vsel %vm1463_vm0, %v6227_v2, 0.0  ;;  %v6229_v31 = vpop.eup %6228 }
 0xc68   : > { %2289 = vadd.xlane.f32.xlu0 %v2288_v19  ;;  %2298 = vadd.xlane.f32.xlu1 %v2297_v17  ;;  %v2291_v20 = vsel %vm1463_vm0, %v6229_v31, 0.0 }
 0xc6c   : > { %2292 = vadd.xlane.f32.xlu1 %v2291_v20 }
 0xc7d   : > { %2310 = vrot.lane.b32.xlu1 %v6841_v32, %s6431_s3 }
 0xc7e   : > { %2312 = vrot.lane.b32.xlu0 %v6834_v24, %s6431_s3 }
 0xced   : > { %v2296_v29 = vpop.xlane.xlu0 %2295 }
 0xcef   : > { %v5735_v30 = vpop.f32.mrf.mxu1 }
 0xcf1   : > { %v2107_v33 = vpop.f32.mrf.mxu1  ;;  %v2290_v34 = vpop.xlane.xlu0 %2289 }
 0xcf2   : > { %v2299_v35 = vpop.xlane.xlu1 %2298 }
 0xcf3   : > { %v5736_v36 = vpop.f32.mrf.mxu1  ;;  %6230 = vrcp.f32 %v2299_v35  ;;  %v6030_v35 = vld [vmem:[%s7754_s15 + $0x70] ss:$8 sps:$4 sm:$0xff]  }
 0xcf4   : > { %6232 = vrcp.f32 %v2290_v34  ;;  %v2123_v40 = vpack.c.bf16 %v5736_v36, %v5735_v30 }
 0xcf5   : > { %v2110_v37 = vpop.f32.mrf.mxu1  ;;  %v2313_v38 = vpop.permute.xlu0 %2312  ;;  %6234 = vrcp.f32 %v2296_v29 }
 0xcf6   : > { %v2122_v39 = vpack.c.bf16 %v2110_v37, %v2107_v33  ;;  %v2293_v32 = vpop.xlane.xlu1 %2292  ;;  %5753 = vmatprep.subr.bf16.mxu1 %v2313_v38 }
 0xcf7   : > { %6236 = vrcp.f32 %v2293_v32 }
 0xcf8   : > { %5741 = vmatprep.mubr.msk.bf16.mxu1 %vm1463_vm0, %v2122_v39 }
 0xcf9   : > { %5742 = vmatmul.mubr.msk.bf16.vlgmr.msra.gmra.mxu1 %vm1463_vm0, %v2123_v40 }
 0xcfa   : > { %5754 = vmatpush3.bf16.msra.mxu1 %v2313_v38  ;;  %v2311_v24 = vpop.permute.xlu1 %2310 }
 0xcfb   : > { %5755 = vmatprep.subr.bf16.mxu1 %v2311_v24 }
 0xcfe   : > { %5756 = vmatpush3.bf16.msra.mxu1 %v2311_v24 }
 0xcff   : > { %5761 = vmatprep.subr.bf16.mxu1 %v6028_v61 }
 0xd00   : > { %v6231_v41 = vpop.eup %6230 }
 0xd01   : > { %v6233_v42 = vpop.eup %6232  ;;  %v2307_v45 = vmul.f32 %v6231_v41, %v6227_v2 }
 0xd02   : > { %v6235_v43 = vpop.eup %6234  ;;  %v2301_v48 = vmul.f32 %v6233_v42, %v6225_v16 }
 0xd03   : > { %v2305_v50 = vmul.f32 %v6235_v43, %v6223_v14 }
 0xd04   : > { %v6237_v44 = vpop.eup %6236 }
 0xd05   : > { %v2303_v49 = vmul.f32 %v6237_v44, %v6229_v31  ;;  %v2309_v54 = vpack.c.bf16 %v2307_v45, %v2305_v50  ;;  %v6033_v50 = vld [vmem:[%s7754_s15 + $0x60] ss:$8 sps:$4 sm:$0xff]  }
 0xd07   : > { %v2308_v51 = vpack.c.bf16 %v2303_v49, %v2301_v48  ;;  %v6035_v49 = vld [vmem:[%s7754_s15 + $0x64] ss:$8 sps:$4 sm:$0xff]  }
 0xd09   : > { %5757 = vmatprep.mubr.msk.bf16.mxu1 %vm1463_vm0, %v2308_v51  ;;  %v6038_v51 = vld [vmem:[%s7754_s15 + $0x54] ss:$8 sps:$4 sm:$0xff]  }
 0xd0a   : > { %5758 = vmatmul.mubr.msk.bf16.vlgmr.msra.gmra.mxu1 %vm1463_vm0, %v2309_v54  ;;  %v6036_v54 = vld [vmem:[%s7754_s15 + $0x50] ss:$8 sps:$4 sm:$0xff]  }
 0xd0b   : > { %5762 = vmatpush3.bf16.msra.mxu1 %v6028_v61  ;;  %v6041_v61 = vld [vmem:[%s7754_s15 + $0x44] ss:$8 sps:$4 sm:$0xff]  }
 0xd0c   : > { %5763 = vmatprep.subr.bf16.mxu1 %v6029_v62 }
 0xd0f   : > { %5764 = vmatpush3.bf16.msra.mxu1 %v6029_v62  ;;  %v6039_v62 = vld [vmem:[%s7754_s15 + $0x40] ss:$8 sps:$4 sm:$0xff]  }
 0xdb9   : > { %v5743_v0 = vpop.f32.mrf.mxu1 }
 0xdba   : > { %v2193_v3 = vadd.f32 %v5743_v0, %v1940_v63  ;;  %v6042_v63 = vld [vmem:[%s7754_s15 + $0x30] ss:$8 sps:$4 sm:$0xff]   ;;  %v6044_v0 = vld [vmem:[%s7754_s15 + $0x34] ss:$8 sps:$4 sm:$0xff]  }
 0xdbb   : > { %v2176_v5 = vpop.f32.mrf.mxu1 }
 0xdbc   : > { %v2191_v7 = vadd.f32 %v2176_v5, %v1932_v1  ;;  %v6047_v1 = vld [vmem:[%s7754_s15 + $0x24] ss:$8 sps:$4 sm:$0xff]   ;;  %v6050_v5 = vld [vmem:[%s7754_s15 + $0x14] ss:$8 sps:$4 sm:$0xff]  }
 0xdbd   : > { %v5744_v8 = vpop.f32.mrf.mxu1 }
 0xdbe   : > { %v2194_v10 = vadd.f32 %v5744_v8, %v1943_v6  ;;  %v6048_v6 = vld [vmem:[%s7754_s15 + $0x10] ss:$8 sps:$4 sm:$0xff]   ;;  %v6051_v8 = vld [vmem:[%s7754_s15] ss:$8 sps:$4 sm:$0xff]  }
 0xdbf   : > { %v2179_v11 = vpop.f32.mrf.mxu1 }
 0xdc0   : > { %v2192_v12 = vadd.f32 %v2179_v11, %v1935_v9 }
 0xdca   : > { %v5759_v13 = vpop.f32.mrf.mxu1 }
 0xdcc   : > { %v2356_v14 = vpop.f32.mrf.mxu1 }
 0xdce   : > { %v5760_v18 = vpop.f32.mrf.mxu1 }
 0xdcf   : > { %v2372_v55 = vpack.c.bf16 %v5760_v18, %v5759_v13 }
 0xdd0   : > { %v2359_v16 = vpop.f32.mrf.mxu1 }
 0xdd1   : > { %v2371_v2 = vpack.c.bf16 %v2359_v16, %v2356_v14 }
 0xdd3   : > { %5765 = vmatprep.mubr.msk.bf16.mxu1 %vm1463_vm0, %v2371_v2 }
 0xdd4   : > { %5766 = vmatmul.mubr.msk.bf16.vlgmr.msra.gmra.mxu1 %vm1463_vm0, %v2372_v55 }
 0xe94   : > { %v5767_v58 = vpop.f32.mrf.mxu1 }
 0xe95   : > { %v2442_v23 = vadd.f32 %v5767_v58, %v2193_v3  ;;  %v6045_v3 = vld [vmem:[%s7754_s15 + $0x20] ss:$8 sps:$4 sm:$0xff]  }
 0xe96   : > { %v2425_v19 = vpop.f32.mrf.mxu1 }
 0xe97   : > { %v2440_v59 = vadd.f32 %v2425_v19, %v2191_v7  ;;  %v2453_v29 = vadd.f32 %v5166_v60, %v2442_v23  ;;  %v6053_v7 = vld [vmem:[%s7754_s15 + $0x4] ss:$8 sps:$4 sm:$0xff]   ;;  %v5168_v23 = vld [vmem:[%s7753_s14] ss:$0 sm:$0xff] }
 0xe98   : > { %v5768_v17 = vpop.f32.mrf.mxu1 }
 0xe99   : > { %v2451_v31 = vadd.f32 %v5166_v60, %v2440_v59  ;;  %v2443_v20 = vadd.f32 %v5768_v17, %v2194_v10  ;;  %v2457_v34 = vadd.f32 %v2453_v29, %v6797_v52  ;;  %v5167_v17 = vld [vmem:[%s7752_s13] ss:$0 sm:$0xff] }
 0xe9a   : > { %v2428_v22 = vpop.f32.mrf.mxu1 }
 0xe9b   : > { %v2454_v25 = vadd.f32 %v5166_v60, %v2443_v20  ;;  %v2441_v26 = vadd.f32 %v2428_v22, %v2192_v12  ;;  %v2455_v27 = vadd.f32 %v2451_v31, %v6790_v46  ;;  %v6032_v46 = vld [vmem:[%s7754_s15 + $0x74] ss:$8 sps:$4 sm:$0xff]  }
 0xe9c   : > { %2635 = vmatprep.subr.bf16.mxu0 %v6032_v46 }
 0xe9d   : > { %v2452_v28 = vadd.f32 %v5166_v60, %v2441_v26  ;;  %2461 = vadd.xlane.f32.xlu1 %v2455_v27  ;;  %v2458_v30 = vadd.f32 %v2454_v25, %v6799_v53  ;;  %2636 = vmatpush1.bf16.msra.mxu0 %v6030_v35 }
 0xe9e   : > { %2637 = vmatprep.subr.bf16.mxu0 %v6035_v49  ;;  %v6067_v49 = vld [vmem:[%s7756_s17 + $0x8] sm:$0xff]  }
 0xe9f   : > { %v2456_v33 = vadd.f32 %v2452_v28, %v6792_v47 }
 0xea1   : > { %2467 = vadd.xlane.f32.xlu1 %v2458_v30  ;;  %2463 = vadd.xlane.f32.xlu0 %v2456_v33 }
 0xea2   : > { %2638 = vmatpush1.bf16.msra.mxu0 %v6033_v50  ;;  %v6068_v50 = vld [vmem:[%s7756_s17 + $0x40] sm:$0xff]  }
 0xea3   : > { %2639 = vmatprep.subr.bf16.mxu0 %v6038_v51  ;;  %v6069_v51 = vld [vmem:[%s7756_s17] sm:$0xff]  }
 0xea5   : > { %2465 = vadd.xlane.f32.xlu0 %v2457_v34 }
 0xea6   : > { %2640 = vmatpush1.bf16.msra.mxu0 %v6036_v54  ;;  %v2541_v54 = vld [vmem:[%s7755_s16] sm:$0x3] }
 0xea7   : > { %2641 = vmatprep.subr.bf16.mxu0 %v6041_v61  ;;  %v2548_v61 = vrot.slane %v2541_v54, %v6807_v57 }
 0xeaa   : > { %2642 = vmatpush1.bf16.msra.mxu0 %v6039_v62  ;;  %v2552_v62 = vrot.slane %v2541_v54, %v6816_v4 }
 0xeab   : > { %2643 = vmatprep.subr.bf16.mxu0 %v6044_v0 }
 0xeae   : > { %2644 = vmatpush1.bf16.msra.mxu0 %v6042_v63 }
 0xeaf   : > { %2645 = vmatprep.subr.bf16.mxu0 %v6047_v1 }
 0xeb2   : > { %2646 = vmatpush1.bf16.msra.mxu0 %v6045_v3 }
 0xeb3   : > { %2647 = vmatprep.subr.bf16.mxu0 %v6050_v5 }
 0xeb6   : > { %2648 = vmatpush1.bf16.msra.mxu0 %v6048_v6 }
 0xeb7   : > { %2649 = vmatprep.subr.bf16.mxu0 %v6053_v7 }
 0xeba   : > { %2650 = vmatpush1.bf16.msra.mxu0 %v6051_v8 }
 0xf26   : > { %v2462_v36 = vpop.xlane.xlu1 %2461 }
 0xf27   : > { %v2469_v37 = vmul.f32 0.0078125, %v2462_v36 }
 0xf29   : > { %v7000_v53 = vsub.f32 %v2455_v27, %v2469_v37 }
 0xf2a   : > { %v2468_v47 = vpop.xlane.xlu1 %2467  ;;  %v2464_v38 = vpop.xlane.xlu0 %2463 }
 0xf2b   : > { %v2472_v39 = vmul.f32 0.0078125, %v2468_v47  ;;  %v2470_v32 = vmul.f32 0.0078125, %v2464_v38  ;;  %v2477_v52 = vmul.f32 %v7000_v53, %v7000_v53  ;;  %v6054_v47 = vld [vmem:[%s7756_s17 + $0x78] sm:$0xff]  }
 0xf2c   : > { %v6055_v38 = vld [vmem:[%s7756_s17 + $0x38] sm:$0xff]   ;;  %5510 = vmatprep.subr.bf16.mxu1 %v6054_v47 }
 0xf2d   : > { %v2474_v40 = vsub.f32 %v2456_v33, %v2470_v32  ;;  %2481 = vadd.xlane.f32.xlu0 %v2477_v52  ;;  %v7004_v41 = vsub.f32 %v2458_v30, %v2472_v39  ;;  %5511 = vmatpush3.bf16.msra.mxu1 %v6055_v38  ;;  %v6056_v39 = vld [vmem:[%s7756_s17 + $0x70] sm:$0xff]   ;;  %v6058_v52 = vld [vmem:[%s7756_s17 + $0x68] sm:$0xff]  }
 0xf2e   : > { %v2466_v24 = vpop.xlane.xlu0 %2465  ;;  %v6057_v32 = vld [vmem:[%s7756_s17 + $0x30] sm:$0xff]   ;;  %5512 = vmatprep.subr.bf16.mxu1 %v6056_v39 }
 0xf2f   : > { %v2471_v42 = vmul.f32 0.0078125, %v2466_v24  ;;  %v2478_v43 = vmul.f32 %v2474_v40, %v2474_v40  ;;  %v2480_v45 = vmul.f32 %v7004_v41, %v7004_v41  ;;  %v6060_v24 = vld [vmem:[%s7756_s17 + $0x60] sm:$0xff]  }
 0xf31   : > { %v7006_v44 = vsub.f32 %v2457_v34, %v2471_v42  ;;  %2483 = vadd.xlane.f32.xlu1 %v2478_v43  ;;  %5513 = vmatpush3.bf16.msra.mxu1 %v6057_v32  ;;  %v6062_v42 = vld [vmem:[%s7756_s17 + $0x58] sm:$0xff]  }
 0xf32   : > { %5514 = vmatprep.subr.bf16.mxu1 %v6058_v52  ;;  %v6063_v43 = vld [vmem:[%s7756_s17 + $0x18] sm:$0xff]  }
 0xf33   : > { %v2479_v48 = vmul.f32 %v7006_v44, %v7006_v44 }
 0xf35   : > { %2487 = vadd.xlane.f32.xlu1 %v2480_v45  ;;  %2485 = vadd.xlane.f32.xlu0 %v2479_v48  ;;  %v6065_v45 = vld [vmem:[%s7756_s17 + $0x10] sm:$0xff]   ;;  %v6066_v48 = vld [vmem:[%s7756_s17 + $0x48] sm:$0xff]  }
 0xfb6   : > { %v2482_v9 = vpop.xlane.xlu0 %2481 }
 0xfb7   : > { %v2489_v10 = vmul.f32 0.0078125, %v2482_v9 }
 0xfb9   : > { %v2493_v11 = vadd.f32 1e-05, %v2489_v10 }
 0xfba   : > { %v2484_v12 = vpop.xlane.xlu1 %2483 }
 0xfbb   : > { %6238 = vrsqrt.f32 %v2493_v11  ;;  %v2490_v13 = vmul.f32 0.0078125, %v2484_v12 }
 0xfbd   : > { %v2494_v14 = vadd.f32 1e-05, %v2490_v13 }
 0xfbe   : > { %v2488_v18 = vpop.xlane.xlu1 %2487  ;;  %v2486_v16 = vpop.xlane.xlu0 %2485 }
 0xfbf   : > { %6240 = vrsqrt.f32 %v2494_v14  ;;  %v2492_v2 = vmul.f32 0.0078125, %v2488_v18  ;;  %v2491_v55 = vmul.f32 0.0078125, %v2486_v16 }
 0xfc1   : > { %v2496_v58 = vadd.f32 1e-05, %v2492_v2  ;;  %v2495_v19 = vadd.f32 1e-05, %v2491_v55 }
 0xfc3   : > { %6242 = vrsqrt.f32 %v2496_v58 }
 0xfc4   : > { %6244 = vrsqrt.f32 %v2495_v19 }
 0xfc8   : > { %v6239_v59 = vpop.eup %6238 }
 0xfc9   : > { %v2501_v60 = vmul.f32 %v6239_v59, %v7000_v53 }
 0xfcb   : > { %v2511_v22 = vmul.f32 %v5167_v17, %v2501_v60 }
 0xfcc   : > { %v6241_v31 = vpop.eup %6240 }
 0xfcd   : > { %v2502_v20 = vmul.f32 %v6241_v31, %v2474_v40  ;;  %v7061_v28 = vadd.f32 %v5168_v23, %v2511_v22  ;;  %v6059_v40 = vld [vmem:[%s7756_s17 + $0x28] sm:$0xff]  }
 0xfce   : > { %5515 = vmatpush3.bf16.msra.mxu1 %v6059_v40 }
 0xfcf   : > { %v2512_v25 = vmul.f32 %v5167_v17, %v2502_v20  ;;  %5516 = vmatprep.subr.bf16.mxu1 %v6060_v24 }
 0xfd0   : > { %v6243_v26 = vpop.eup %6242 }
 0xfd1   : > { %v6245_v27 = vpop.eup %6244  ;;  %v7063_v29 = vadd.f32 %v5168_v23, %v2512_v25  ;;  %v2504_v30 = vmul.f32 %v6243_v26, %v7004_v41  ;;  %v6061_v41 = vld [vmem:[%s7756_s17 + $0x20] sm:$0xff]  }
 0xfd2   : > { %v2503_v33 = vmul.f32 %v6245_v27, %v7006_v44  ;;  %5517 = vmatpush3.bf16.msra.mxu1 %v6061_v41  ;;  %v6064_v44 = vld [vmem:[%s7756_s17 + $0x50] sm:$0xff]  }
 0xfd3   : > { %v2542_v34 = vpack.c.bf16 %v7063_v29, %v7061_v28  ;;  %v2514_v35 = vmul.f32 %v5167_v17, %v2504_v30  ;;  %5518 = vmatprep.subr.bf16.mxu1 %v6062_v42 }
 0xfd4   : > { %v2513_v46 = vmul.f32 %v5167_v17, %v2503_v33 }
 0xfd5   : > { %2668 = vmatmul.mubr.bf16.vlgmr.msra.gmra.mxu0 %v2542_v34  ;;  %v7072_v37 = vadd.f32 %v5168_v23, %v2514_v35 }
 0xfd6   : > { %2677 = vmatprep.mubr.bf16.mxu0 %v6428_v21  ;;  %v7070_v36 = vadd.f32 %v5168_v23, %v2513_v46  ;;  %5519 = vmatpush3.bf16.msra.mxu1 %v6063_v43 }
 0xfd7   : > { %5520 = vmatprep.subr.bf16.mxu1 %v6064_v44 }
 0xfd8   : > { %v2543_v53 = vpack.c.bf16 %v7072_v37, %v7070_v36 }
 0xfda   : > { %5521 = vmatpush3.bf16.msra.mxu1 %v6065_v45 }
 0xfdb   : > { %5522 = vmatprep.subr.bf16.mxu1 %v6066_v48 }
 0xfdd   : > { %2678 = vmatmul.mubr.bf16.gmra.mxu0 %v2543_v53 }
 0xfde   : > { %3231 = vmatprep.mubr.bf16.mxu0 %v6428_v21  ;;  %5523 = vmatpush3.bf16.msra.mxu1 %v6067_v49 }
 0xfdf   : > { %5524 = vmatprep.subr.bf16.mxu1 %v6068_v50 }
 0xfe2   : > { %5525 = vmatpush3.bf16.msra.mxu1 %v6069_v51 }
0x1095   : > { %v2669_v63 = vpop.f32.mrf.mxu0 }
0x1096   : > { %v7130_v0 = vadd.f32 %v2669_v63, %v2548_v61 }
0x1097   : > { %v2671_v1 = vpop.f32.mrf.mxu0 }
0x1098   : > { %v2688_v3 = vmul.f32 %v7130_v0, %v7130_v0  ;;  %v7134_v5 = vadd.f32 %v2671_v1, %v2552_v62 }
0x1099   : > { %v2673_v6 = vpop.f32.mrf.mxu0 }
0x109a   : > { %v2696_v7 = vmul.f32 %v2688_v3, %v7130_v0  ;;  %v2689_v8 = vmul.f32 %v7134_v5, %v7134_v5  ;;  %v7139_v9 = vadd.f32 %v2673_v6, %v2548_v61 }
0x109b   : > { %v2675_v10 = vpop.f32.mrf.mxu0 }
0x109c   : > { %v2704_v11 = vmul.f32 0.044715, %v2696_v7  ;;  %v2697_v12 = vmul.f32 %v2689_v8, %v7134_v5  ;;  %v2690_v13 = vmul.f32 %v7139_v9, %v7139_v9  ;;  %v7144_v14 = vadd.f32 %v2675_v10, %v2552_v62 }
0x109d   : > { %v2679_v18 = vpop.f32.mrf.mxu0 }
0x109e   : > { %v2712_v16 = vadd.f32 %v2704_v11, %v7130_v0  ;;  %v2705_v2 = vmul.f32 0.044715, %v2697_v12  ;;  %v2698_v55 = vmul.f32 %v2690_v13, %v7139_v9  ;;  %v2691_v58 = vmul.f32 %v7144_v14, %v7144_v14 }
0x109f   : > { %v7150_v19 = vadd.f32 %v2679_v18, %v2548_v61  ;;  %v2681_v59 = vpop.f32.mrf.mxu0 }
0x10a0   : > { %v2720_v60 = vmul.f32 0.7978846, %v2712_v16  ;;  %v2713_v17 = vadd.f32 %v2705_v2, %v7134_v5  ;;  %v2706_v31 = vmul.f32 0.044715, %v2698_v55  ;;  %v2699_v20 = vmul.f32 %v2691_v58, %v7144_v14 }
0x10a1   : > { %v2692_v22 = vmul.f32 %v7150_v19, %v7150_v19  ;;  %v7156_v23 = vadd.f32 %v2681_v59, %v2552_v62  ;;  %v2683_v25 = vpop.f32.mrf.mxu0 }
0x10a2   : > { %v2721_v26 = vmul.f32 0.7978846, %v2713_v17  ;;  %v2714_v27 = vadd.f32 %v2706_v31, %v7139_v9  ;;  %v2707_v30 = vmul.f32 0.044715, %v2699_v20  ;;  %6246 = vtanh.f32 %v2720_v60 }
0x10a3   : > { %v2700_v33 = vmul.f32 %v2692_v22, %v7150_v19  ;;  %v2693_v34 = vmul.f32 %v7156_v23, %v7156_v23  ;;  %v2684_v35 = vadd.f32 %v2683_v25, %v2548_v61  ;;  %v2685_v46 = vpop.f32.mrf.mxu0 }
0x10a4   : > { %6248 = vtanh.f32 %v2721_v26  ;;  %v2722_v53 = vmul.f32 0.7978846, %v2714_v27  ;;  %v2715_v47 = vadd.f32 %v2707_v30, %v7144_v14  ;;  %v2686_v38 = vadd.f32 %v2685_v46, %v2552_v62 }
0x10a5   : > { %v2708_v39 = vmul.f32 0.044715, %v2700_v33  ;;  %v2701_v32 = vmul.f32 %v2693_v34, %v7156_v23  ;;  %v2694_v52 = vmul.f32 %v2684_v35, %v2684_v35 }
0x10a6   : > { %6250 = vtanh.f32 %v2722_v53  ;;  %v2723_v40 = vmul.f32 0.7978846, %v2715_v47  ;;  %v2695_v24 = vmul.f32 %v2686_v38, %v2686_v38 }
0x10a7   : > { %v2716_v41 = vadd.f32 %v2708_v39, %v7150_v19  ;;  %v2709_v42 = vmul.f32 0.044715, %v2701_v32  ;;  %v2702_v43 = vmul.f32 %v2694_v52, %v2684_v35 }
0x10a8   : > { %6252 = vtanh.f32 %v2723_v40  ;;  %v2703_v44 = vmul.f32 %v2695_v24, %v2686_v38  ;;  %v5185_v24 = vld [vmem:[%s7757_s18] ss:$0 sm:$0xff] }
0x10a9   : > { %v2724_v45 = vmul.f32 0.7978846, %v2716_v41  ;;  %v2717_v48 = vadd.f32 %v2709_v42, %v7156_v23  ;;  %v2710_v49 = vmul.f32 0.044715, %v2702_v43 }
0x10aa   : > { %v2711_v50 = vmul.f32 0.044715, %v2703_v44 }
0x10ab   : > { %6254 = vtanh.f32 %v2724_v45  ;;  %v2725_v51 = vmul.f32 0.7978846, %v2717_v48  ;;  %v2718_v54 = vadd.f32 %v2710_v49, %v2684_v35 }
0x10ac   : > { %v2719_v61 = vadd.f32 %v2711_v50, %v2686_v38 }
0x10ad   : > { %6256 = vtanh.f32 %v2725_v51  ;;  %v2726_v62 = vmul.f32 0.7978846, %v2718_v54 }
0x10ae   : > { %v2727_v63 = vmul.f32 0.7978846, %v2719_v61 }
0x10af   : > { %6258 = vtanh.f32 %v2726_v62  ;;  %v6247_v1 = vpop.eup %6246 }
0x10b0   : > { %6260 = vtanh.f32 %v2727_v63  ;;  %v2736_v8 = vadd.f32 1.0, %v6247_v1 }
0x10b1   : > { %v6249_v3 = vpop.eup %6248 }
0x10b2   : > { %v2737_v6 = vadd.f32 1.0, %v6249_v3  ;;  %v2744_v16 = vmul.f32 0.5, %v2736_v8 }
0x10b3   : > { %v6251_v7 = vpop.eup %6250 }
0x10b4   : > { %v2738_v10 = vadd.f32 1.0, %v6251_v7  ;;  %v2745_v18 = vmul.f32 0.5, %v2737_v6  ;;  %v2752_v31 = vmul.f32 %v2744_v16, %v7130_v0 }
0x10b5   : > { %v6253_v11 = vpop.eup %6252 }
0x10b6   : > { %v2746_v12 = vmul.f32 0.5, %v2738_v10  ;;  %v2739_v13 = vadd.f32 1.0, %v6253_v11  ;;  %v2753_v60 = vmul.f32 %v2745_v18, %v7134_v5 }
0x10b8   : > { %v6255_v2 = vpop.eup %6254  ;;  %v2747_v55 = vmul.f32 0.5, %v2739_v13  ;;  %v2754_v58 = vmul.f32 %v2746_v12, %v7139_v9 }
0x10b9   : > { %v2740_v22 = vadd.f32 1.0, %v6255_v2 }
0x10ba   : > { %v6257_v59 = vpop.eup %6256  ;;  %v2755_v17 = vmul.f32 %v2747_v55, %v7144_v14  ;;  %v2793_v30 = vpack.c.bf16 %v2754_v58, %v2752_v31  ;;  %v6073_v31 = vld [vmem:[%s7748_s9 + $0x150] ss:$12 sps:$4 sm:$0xff]  }
0x10bb   : > { %v2741_v20 = vadd.f32 1.0, %v6257_v59  ;;  %v2748_v53 = vmul.f32 0.5, %v2740_v22  ;;  %v6079_v22 = vld [vmem:[%s7748_s9 + $0x170] ss:$12 sps:$4 sm:$0xff]  }
0x10bc   : > { %v6259_v25 = vpop.eup %6258  ;;  %v2794_v26 = vpack.c.bf16 %v2755_v17, %v2753_v60  ;;  %v6075_v17 = vld [vmem:[%s7748_s9 + $0x154] ss:$12 sps:$4 sm:$0xff]   ;;  %5769 = vmatprep.subr.bf16.mxu1 %v6079_v22 }
0x10bd   : > { %v6261_v27 = vpop.eup %6260  ;;  %v2742_v33 = vadd.f32 1.0, %v6259_v25  ;;  %v2749_v46 = vmul.f32 0.5, %v2741_v20  ;;  %v2756_v0 = vmul.f32 %v2748_v53, %v7150_v19  ;;  %v6078_v20 = vld [vmem:[%s7748_s9 + $0x13c] ss:$12 sps:$4 sm:$0xff]   ;;  %v6076_v25 = vld [vmem:[%s7748_s9 + $0x138] ss:$12 sps:$4 sm:$0xff]  }
0x10be   : > { %2931 = vmatprep.mubr.bf16.mxu1 %v2794_v26  ;;  %v2743_v34 = vadd.f32 1.0, %v6261_v27  ;;  %v6082_v26 = vld [vmem:[%s7748_s9 + $0x124] ss:$12 sps:$4 sm:$0xff]   ;;  %v6090_v53 = vld [vmem:[%s7748_s9 + $0xf4] ss:$12 sps:$4 sm:$0xff]  }
0x10bf   : > { %2932 = vmatmul.mubr.bf16.vlgmr.msra.gmra.mxu1 %v2793_v30  ;;  %v2750_v9 = vmul.f32 0.5, %v2742_v33  ;;  %v2757_v5 = vmul.f32 %v2749_v46, %v7156_v23  ;;  %v6083_v27 = vld [vmem:[%s7748_s9 + $0x158] ss:$12 sps:$4 sm:$0xff]   ;;  %v6080_v30 = vld [vmem:[%s7748_s9 + $0x120] ss:$12 sps:$4 sm:$0xff]  }
0x10c0   : > { %v2751_v47 = vmul.f32 0.5, %v2743_v34  ;;  %5770 = vmatpush3.bf16.msra.mxu1 %v6079_v22  ;;  %v6086_v33 = vld [vmem:[%s7748_s9 + $0x10c] ss:$12 sps:$4 sm:$0xff]   ;;  %v6084_v46 = vld [vmem:[%s7748_s9 + $0x108] ss:$12 sps:$4 sm:$0xff]  }
0x10c1   : > { %v2758_v39 = vmul.f32 %v2750_v9, %v2684_v35  ;;  %5771 = vmatprep.subr.bf16.mxu1 %v6083_v27  ;;  %v6087_v34 = vld [vmem:[%s7748_s9 + $0x140] ss:$12 sps:$4 sm:$0xff]   ;;  %v6091_v9 = vld [vmem:[%s7748_s9 + $0x128] ss:$12 sps:$4 sm:$0xff]  }
0x10c2   : > { %v2759_v14 = vmul.f32 %v2751_v47, %v2686_v38  ;;  %v6088_v47 = vld [vmem:[%s7748_s9 + $0xf0] ss:$12 sps:$4 sm:$0xff]  }
0x10c3   : > { %v2795_v52 = vpack.c.bf16 %v2758_v39, %v2756_v0  ;;  %v6094_v39 = vld [vmem:[%s7748_s9 + $0xdc] ss:$12 sps:$4 sm:$0xff]   ;;  %v6098_v0 = vld [vmem:[%s7748_s9 + $0xc4] ss:$12 sps:$4 sm:$0xff]  }
0x10c4   : > { %v2796_v32 = vpack.c.bf16 %v2759_v14, %v2757_v5  ;;  %5772 = vmatpush3.bf16.msra.mxu1 %v6083_v27  ;;  %v6095_v5 = vld [vmem:[%s7748_s9 + $0x110] ss:$12 sps:$4 sm:$0xff]   ;;  %v6092_v14 = vld [vmem:[%s7748_s9 + $0xd8] ss:$12 sps:$4 sm:$0xff]  }
0x10c5   : > { %5773 = vmatprep.subr.bf16.mxu1 %v6087_v34 }
0x10c6   : > { %2939 = vmatprep.mubr.bf16.mxu1 %v2796_v32  ;;  %v6099_v32 = vld [vmem:[%s7748_s9 + $0xf8] ss:$12 sps:$4 sm:$0xff]  }
0x10c7   : > { %2940 = vmatmul.mubr.bf16.gmra.mxu1 %v2795_v52  ;;  %v6096_v52 = vld [vmem:[%s7748_s9 + $0xc0] ss:$12 sps:$4 sm:$0xff]  }
0x10c8   : > { %5774 = vmatpush3.bf16.msra.mxu1 %v6087_v34 }
0x10c9   : > { %5775 = vmatprep.subr.bf16.mxu1 %v6091_v9 }
0x10cc   : > { %5776 = vmatpush3.bf16.msra.mxu1 %v6091_v9 }
0x10cd   : > { %5777 = vmatprep.subr.bf16.mxu1 %v6095_v5 }
0x10d0   : > { %5778 = vmatpush3.bf16.msra.mxu1 %v6095_v5 }
0x10d1   : > { %5779 = vmatprep.subr.bf16.mxu1 %v6099_v32 }
0x10d4   : > { %5780 = vmatpush3.bf16.msra.mxu1 %v6099_v32 }
0x117f   : > { %v5526_v40 = vpop.f32.mrf.mxu1 }
0x1181   : > { %v5527_v41 = vpop.f32.mrf.mxu1 }
0x1182   : > { %v5528_v42 = vadd.f32 %v5527_v41, %v5526_v40  ;;  %v6100_v40 = vld [vmem:[%s7748_s9 + $0xe0] ss:$12 sps:$4 sm:$0xff]  }
0x1183   : > { %v5529_v43 = vpop.f32.mrf.mxu1  ;;  %5781 = vmatprep.subr.bf16.mxu1 %v6100_v40 }
0x1184   : > { %v2934_v44 = vadd.f32 %v5528_v42, %v5185_v24  ;;  %5782 = vmatpush3.bf16.msra.mxu1 %v6100_v40 }
0x1185   : > { %v5530_v45 = vpop.f32.mrf.mxu1 }
0x1186   : > { %v5531_v35 = vadd.f32 %v5530_v45, %v5529_v43  ;;  %v2948_v23 = vadd.f32 %v2934_v44, %v7061_v28  ;;  %v6070_v28 = vld [vmem:[%s7748_s9 + $0x168] ss:$12 sps:$4 sm:$0xff]  }
0x1187   : > { %v5532_v38 = vpop.f32.mrf.mxu1 }
0x1188   : > { %v2937_v48 = vadd.f32 %v5531_v35, %v5185_v24  ;;  %2954 = vadd.xlane.f32.xlu0 %v2948_v23 }
0x1189   : > { %v5533_v19 = vpop.f32.mrf.mxu1 }
0x118a   : > { %v5534_v49 = vadd.f32 %v5533_v19, %v5532_v38  ;;  %v2949_v50 = vadd.f32 %v2937_v48, %v7063_v29  ;;  %v6072_v29 = vld [vmem:[%s7748_s9 + $0x16c] ss:$12 sps:$4 sm:$0xff]  }
0x118b   : > { %v5535_v51 = vpop.f32.mrf.mxu1  ;;  %3199 = vmatprep.subr.bf16.mxu0 %v6072_v29 }
0x118c   : > { %v2942_v54 = vadd.f32 %v5534_v49, %v5185_v24  ;;  %2956 = vadd.xlane.f32.xlu1 %v2949_v50  ;;  %3200 = vmatpush1.bf16.msra.mxu0 %v6070_v28 }
0x118d   : > { %v5536_v61 = vpop.f32.mrf.mxu1  ;;  %3201 = vmatprep.subr.bf16.mxu0 %v6075_v17 }
0x118e   : > { %v5537_v62 = vadd.f32 %v5536_v61, %v5535_v51  ;;  %v2950_v63 = vadd.f32 %v2942_v54, %v7070_v36  ;;  %v5202_v61 = vld [vmem:[%s7758_s19] ss:$0 sm:$0xff] }
0x1190   : > { %v2945_v1 = vadd.f32 %v5537_v62, %v5185_v24  ;;  %2958 = vadd.xlane.f32.xlu0 %v2950_v63  ;;  %3202 = vmatpush1.bf16.msra.mxu0 %v6073_v31  ;;  %v6101_v24 = vld [vmem:[%s7748_s9 + $0xc8] ss:$12 sps:$4 sm:$0xff]  }
0x1191   : > { %3203 = vmatprep.subr.bf16.mxu0 %v6078_v20  ;;  %5783 = vmatprep.subr.bf16.mxu1 %v6101_v24 }
0x1192   : > { %v2951_v3 = vadd.f32 %v2945_v1, %v7072_v37  ;;  %5784 = vmatpush3.bf16.msra.mxu1 %v6101_v24 }
0x1194   : > { %2960 = vadd.xlane.f32.xlu1 %v2951_v3  ;;  %3204 = vmatpush1.bf16.msra.mxu0 %v6076_v25 }
0x1195   : > { %3205 = vmatprep.subr.bf16.mxu0 %v6082_v26 }
0x1198   : > { %3206 = vmatpush1.bf16.msra.mxu0 %v6080_v30 }
0x1199   : > { %3207 = vmatprep.subr.bf16.mxu0 %v6086_v33 }
0x119c   : > { %3208 = vmatpush1.bf16.msra.mxu0 %v6084_v46 }
0x119d   : > { %3209 = vmatprep.subr.bf16.mxu0 %v6090_v53 }
0x11a0   : > { %3210 = vmatpush1.bf16.msra.mxu0 %v6088_v47 }
0x11a1   : > { %3211 = vmatprep.subr.bf16.mxu0 %v6094_v39 }
0x11a4   : > { %3212 = vmatpush1.bf16.msra.mxu0 %v6092_v14 }
0x11a5   : > { %3213 = vmatprep.subr.bf16.mxu0 %v6098_v0 }
0x11a8   : > { %3214 = vmatpush1.bf16.msra.mxu0 %v6096_v52 }
0x1211   : > { %v2955_v6 = vpop.xlane.xlu0 %2954 }
0x1212   : > { %v2962_v7 = vmul.f32 0.0078125, %v2955_v6 }
0x1214   : > { %v7185_v8 = vsub.f32 %v2948_v23, %v2962_v7 }
0x1215   : > { %v2957_v36 = vpop.xlane.xlu1 %2956 }
0x1216   : > { %v2963_v10 = vmul.f32 0.0078125, %v2957_v36  ;;  %v2970_v37 = vmul.f32 %v7185_v8, %v7185_v8 }
0x1218   : > { %v7189_v11 = vsub.f32 %v2949_v50, %v2963_v10  ;;  %2974 = vadd.xlane.f32.xlu0 %v2970_v37 }
0x1219   : > { %v2959_v12 = vpop.xlane.xlu0 %2958 }
0x121a   : > { %v2964_v13 = vmul.f32 0.0078125, %v2959_v12  ;;  %v2971_v18 = vmul.f32 %v7189_v11, %v7189_v11 }
0x121c   : > { %v7193_v16 = vsub.f32 %v2950_v63, %v2964_v13  ;;  %2976 = vadd.xlane.f32.xlu1 %v2971_v18 }
0x121d   : > { %v2961_v2 = vpop.xlane.xlu1 %2960 }
0x121e   : > { %v2965_v55 = vmul.f32 0.0078125, %v2961_v2  ;;  %v2972_v58 = vmul.f32 %v7193_v16, %v7193_v16 }
0x1220   : > { %v7197_v59 = vsub.f32 %v2951_v3, %v2965_v55  ;;  %2978 = vadd.xlane.f32.xlu0 %v2972_v58  ;;  %v5203_v3 = vld [vmem:[%s7759_s20] ss:$0 sm:$0xff] }
0x1222   : > { %v2973_v60 = vmul.f32 %v7197_v59, %v7197_v59 }
0x1224   : > { %2980 = vadd.xlane.f32.xlu1 %v2973_v60 }
0x12a1   : > { %v2975_v41 = vpop.xlane.xlu0 %2974 }
0x12a2   : > { %v2982_v42 = vmul.f32 0.0078125, %v2975_v41 }
0x12a4   : > { %v2986_v43 = vadd.f32 1e-05, %v2982_v42 }
0x12a5   : > { %v2977_v44 = vpop.xlane.xlu1 %2976 }
0x12a6   : > { %6262 = vrsqrt.f32 %v2986_v43  ;;  %v2983_v45 = vmul.f32 0.0078125, %v2977_v44 }
0x12a8   : > { %v2987_v35 = vadd.f32 1e-05, %v2983_v45 }
0x12a9   : > { %v2979_v23 = vpop.xlane.xlu0 %2978 }
0x12aa   : > { %6264 = vrsqrt.f32 %v2987_v35  ;;  %v2984_v38 = vmul.f32 0.0078125, %v2979_v23 }
0x12ac   : > { %v2988_v48 = vadd.f32 1e-05, %v2984_v38 }
0x12ad   : > { %v2981_v19 = vpop.xlane.xlu1 %2980 }
0x12ae   : > { %6266 = vrsqrt.f32 %v2988_v48  ;;  %v2985_v49 = vmul.f32 0.0078125, %v2981_v19 }
0x12b0   : > { %v2989_v50 = vadd.f32 1e-05, %v2985_v49 }
0x12b2   : > { %6268 = vrsqrt.f32 %v2989_v50 }
0x12b3   : > { %v6263_v51 = vpop.eup %6262 }
0x12b4   : > { %v2994_v54 = vmul.f32 %v6263_v51, %v7185_v8 }
0x12b6   : > { %v3004_v1 = vmul.f32 %v5202_v61, %v2994_v54 }
0x12b7   : > { %v6265_v62 = vpop.eup %6264 }
0x12b8   : > { %v2995_v63 = vmul.f32 %v6265_v62, %v7189_v11  ;;  %v7275_v6 = vadd.f32 %v5203_v3, %v3004_v1 }
0x12ba   : > { %v3005_v28 = vmul.f32 %v5202_v61, %v2995_v63 }
0x12bb   : > { %v6267_v29 = vpop.eup %6266 }
0x12bc   : > { %v7277_v7 = vadd.f32 %v5203_v3, %v3005_v28  ;;  %v2996_v8 = vmul.f32 %v6267_v29, %v7193_v16  ;;  %v5236_v16 = vld [vmem:[%s7749_s10 + $0x3] sm:$0x7] }
0x12bd   : > { %v3059_v58 = vrot.slane %v5236_v16, %v6807_v57  ;;  %v3067_v27 = vrot.slane %v5236_v16, %v1206_v15  ;;  %v3063_v34 = vrot.slane %v5236_v16, %v6816_v4 }
0x12be   : > { %v3053_v36 = vpack.c.bf16 %v7277_v7, %v7275_v6  ;;  %v3006_v11 = vmul.f32 %v5202_v61, %v2996_v8 }
0x12bf   : > { %v6269_v10 = vpop.eup %6268 }
0x12c0   : > { %3232 = vmatmul.mubr.bf16.vlgmr.msra.gmra.mxu0 %v3053_v36  ;;  %5785 = vmatprep.mubr.bf16.mxu1 %v3053_v36  ;;  %v2997_v37 = vmul.f32 %v6269_v10, %v7197_v59  ;;  %v7284_v13 = vadd.f32 %v5203_v3, %v3006_v11 }
0x12c1   : > { %3241 = vmatprep.mubr.bf16.mxu0 %v6428_v21 }
0x12c2   : > { %v3007_v12 = vmul.f32 %v5202_v61, %v2997_v37 }
0x12c4   : > { %v7286_v18 = vadd.f32 %v5203_v3, %v3007_v12 }
0x12c6   : > { %v3054_v2 = vpack.c.bf16 %v7286_v18, %v7284_v13 }
0x12c8   : > { %3242 = vmatmul.mubr.bf16.gmra.mxu0 %v3054_v2  ;;  %5786 = vmatmul.mubr.bf16.vlgmr.msra.gmra.mxu1 %v3054_v2 }
0x1380   : > { %v3233_v55 = vpop.f32.mrf.mxu0 }
0x1381   : > { %v3234_v17 = vadd.f32 %v3233_v55, %v3059_v58 }
0x1382   : > { %v3235_v59 = vpop.f32.mrf.mxu0 }
0x1383   : > { %v3236_v40 = vadd.f32 %v3235_v59, %v3063_v34 }
0x1384   : > { %v3237_v60 = vpop.f32.mrf.mxu0 }
0x1385   : > { %v3238_v31 = vadd.f32 %v3237_v60, %v3059_v58 }
0x1386   : > { %v3239_v20 = vpop.f32.mrf.mxu0 }
0x1387   : > { %v7294_v22 = vpack.c.bf16 %v3238_v31, %v3234_v17  ;;  %v3240_v39 = vadd.f32 %v3239_v20, %v3063_v34 }
0x1388   : > { %v3243_v25 = vpop.f32.mrf.mxu0  ;;  %v5787_v26 = vpop.f32.mrf.mxu1 }
0x1389   : > { %5793 = vmatprep.mubr.msk.bf16.mxu0 %vm1463_vm0, %v7294_v22  ;;  %v3295_v9 = vadd.f32 %v5787_v26, %v3067_v27  ;;  %v7309_v42 = vpack.c.bf16 %v3240_v39, %v3236_v40  ;;  %v3244_v35 = vadd.f32 %v3243_v25, %v3059_v58 }
0x138a   : > { %v3245_v30 = vpop.f32.mrf.mxu0  ;;  %v3286_v33 = vpop.f32.mrf.mxu1 }
0x138b   : > { %v3246_v5 = vadd.f32 %v3245_v30, %v3063_v34  ;;  %v3287_v32 = vadd.f32 %v3286_v33, %v3067_v27  ;;  %v3331_v44 = vsel %vm1463_vm0, %v7309_v42, 0 }
0x138c   : > { %v3247_v46 = vpop.f32.mrf.mxu0  ;;  %v5788_v53 = vpop.f32.mrf.mxu1 }
0x138d   : > { %v3298_v47 = vadd.f32 %v5788_v53, %v3067_v27  ;;  %v3248_v45 = vadd.f32 %v3247_v46, %v3059_v58 }
0x138e   : > { %v3249_v14 = vpop.f32.mrf.mxu0  ;;  %v3289_v0 = vpop.f32.mrf.mxu1 }
0x138f   : > { %v7301_v52 = vpack.c.bf16 %v3298_v47, %v3295_v9  ;;  %v3250_v56 = vadd.f32 %v3249_v14, %v3063_v34  ;;  %v3290_v15 = vadd.f32 %v3289_v0, %v3067_v27  ;;  %v7321_v23 = vpack.c.bf16 %v3248_v45, %v3244_v35  ;;  %v6103_v45 = vld [vmem:[%s7750_s11 + $0x40] sm:$0xff]  }
0x1391   : > { %v7303_v24 = vpack.c.bf16 %v3250_v56, %v3246_v5  ;;  %v7305_v41 = vpack.c.bf16 %v3290_v15, %v3287_v32  ;;  %5797 = vmatprep.subr.bf16.mxu1 %v7301_v52 }
0x1392   : > { %5798 = vmatpush3.bf16.msra.mxu1 %v7301_v52 }
0x1393   : > { %5913 = vmatprep.subr.msk.bf16.mxu0 %vm1463_vm0, %v7303_v24  ;;  %5799 = vmatprep.subr.bf16.mxu1 %v7305_v41  ;;  %v3334_v43 = vsel %vm1463_vm0, %v7303_v24, 0 }
0x1394   : > { %5790 = vmatpush3.bf16.xpose.msra.mxu0 %v3334_v43 }
0x1395   : > { %5914 = vmatprep.subr.msk.bf16.mxu0 %vm1463_vm0, %v7309_v42 }
0x1396   : > { %5800 = vmatpush3.bf16.msra.mxu1 %v7305_v41 }
0x139c   : > { %5792 = vmatpush3.bf16.xpose.msra.mxu0 %v3331_v44  ;;  %v6102_v44 = vld [vmem:[%s7750_s11 + $0x48] sm:$0xff]  }
0x13a3   : > { %5794 = vmatmul.mubr.msk.bf16.vlgmr.msra.gmra.mxu0 %vm1463_vm0, %v7321_v23 }
0x1463   : > { %v5795_v38 = vpop.f32.mrf.mxu0 }
0x1464   : > { %v3391_v51 = vsel %vm1463_vm0, %v5795_v38, -inf }
0x1465   : > { %v3370_v48 = vpop.f32.mrf.mxu0 }
0x1466   : > { %v3385_v19 = vsel %vm1463_vm0, %v3370_v48, -inf }
0x1467   : > { %3386 = vmax.xlane.f32.xlu0 %v3385_v19  ;;  %v5796_v49 = vpop.f32.mrf.mxu0 }
0x1468   : > { %v3394_v61 = vsel %vm1463_vm0, %v5796_v49, -inf }
0x1469   : > { %v3373_v50 = vpop.f32.mrf.mxu0 }
0x146a   : > { %v3388_v54 = vsel %vm1463_vm0, %v3373_v50, -inf }
0x146b   : > { %3392 = vmax.xlane.f32.xlu0 %v3391_v51  ;;  %3389 = vmax.xlane.f32.xlu1 %v3388_v54 }
0x146f   : > { %3395 = vmax.xlane.f32.xlu1 %v3394_v61 }
0x14f0   : > { %v3387_v62 = vpop.xlane.xlu0 %3386 }
0x14f1   : > { %v3397_v63 = vsub.f32 %v3370_v48, %v3387_v62 }
0x14f3   : > { %v3401_v8 = vmul.f32 1.442695, %v3397_v63 }
0x14f4   : > { %v3393_v1 = vpop.xlane.xlu0 %3392  ;;  %v3390_v3 = vpop.xlane.xlu1 %3389 }
0x14f5   : > { %v3399_v28 = vsub.f32 %v5795_v38, %v3393_v1  ;;  %v3398_v29 = vsub.f32 %v3373_v50, %v3390_v3 }
0x14f7   : > { %v3405_v36 = vmul.f32 1.442695, %v3399_v28  ;;  %v3403_v10 = vmul.f32 1.442695, %v3398_v29 }
0x14f8   : > { %v3396_v37 = vpop.xlane.xlu1 %3395 }
0x14f9   : > { %6270 = vpow2.f32 %v3405_v36  ;;  %v3400_v11 = vsub.f32 %v5796_v49, %v3396_v37 }
0x14fa   : > { %6272 = vpow2.f32 %v3403_v10 }
0x14fb   : > { %6274 = vpow2.f32 %v3401_v8  ;;  %v3407_v12 = vmul.f32 1.442695, %v3400_v11 }
0x14fd   : > { %6276 = vpow2.f32 %v3407_v12 }
0x1506   : > { %v6271_v2 = vpop.eup %6270 }
0x1507   : > { %v6273_v16 = vpop.eup %6272  ;;  %v3415_v55 = vsel %vm1463_vm0, %v6271_v2, 0.0 }
0x1508   : > { %v6275_v58 = vpop.eup %6274  ;;  %3416 = vadd.xlane.f32.xlu0 %v3415_v55  ;;  %v3412_v59 = vsel %vm1463_vm0, %v6273_v16, 0.0 }
0x1509   : > { %3413 = vadd.xlane.f32.xlu1 %v3412_v59  ;;  %v3409_v17 = vsel %vm1463_vm0, %v6275_v58, 0.0 }
0x150a   : > { %v6277_v60 = vpop.eup %6276 }
0x150b   : > { %v3418_v31 = vsel %vm1463_vm0, %v6277_v60, 0.0 }
0x150c   : > { %3410 = vadd.xlane.f32.xlu0 %v3409_v17 }
0x150d   : > { %3419 = vadd.xlane.f32.xlu1 %v3418_v31 }
0x151e   : > { %3496 = vrot.lane.b32.xlu1 %v7309_v42, %s6429_s23 }
0x1522   : > { %3490 = vrot.lane.b32.xlu1 %v7294_v22, %s6429_s23  ;;  %3498 = vrot.lane.b32.xlu0 %v7303_v24, %s6429_s23 }
0x1526   : > { %3492 = vrot.lane.b32.xlu1 %v7321_v23, %s6429_s23 }
0x1591   : > { %v3417_v20 = vpop.xlane.xlu0 %3416 }
0x1592   : > { %v3414_v25 = vpop.xlane.xlu1 %3413 }
0x1593   : > { %6278 = vrcp.f32 %v3414_v25 }
0x1594   : > { %6280 = vrcp.f32 %v3417_v20 }
0x1595   : > { %v3411_v26 = vpop.xlane.xlu0 %3410 }
0x1596   : > { %6282 = vrcp.f32 %v3411_v26  ;;  %v3420_v27 = vpop.xlane.xlu1 %3419 }
0x1597   : > { %6284 = vrcp.f32 %v3420_v27 }
0x1599   : > { %v3499_v30 = vpop.permute.xlu0 %3498 }
0x159a   : > { %5915 = vmatprep.subr.msk.bf16.mxu1 %vm1463_vm0, %v3499_v30  ;;  %v3497_v53 = vpop.permute.xlu1 %3496  ;;  %v3510_v56 = vsel %vm1463_vm0, %v3499_v30, 0 }
0x159b   : > { %v3507_v40 = vsel %vm1463_vm0, %v3497_v53, 0 }
0x159e   : > { %v3491_v15 = vpop.permute.xlu1 %3490 }
0x15a0   : > { %v6279_v33 = vpop.eup %6278 }
0x15a1   : > { %v6281_v34 = vpop.eup %6280  ;;  %v3424_v39 = vmul.f32 %v6279_v33, %v6273_v16 }
0x15a2   : > { %v3426_v5 = vmul.f32 %v6281_v34, %v6271_v2  ;;  %v3493_v43 = vpop.permute.xlu1 %3492 }
0x15a3   : > { %v6283_v46 = vpop.eup %6282 }
0x15a4   : > { %v6285_v9 = vpop.eup %6284  ;;  %v3422_v47 = vmul.f32 %v6283_v46, %v6275_v58 }
0x15a5   : > { %v3428_v14 = vmul.f32 %v6285_v9, %v6277_v60 }
0x15a6   : > { %v3429_v0 = vpack.c.bf16 %v3424_v39, %v3422_v47 }
0x15a7   : > { %v3430_v32 = vpack.c.bf16 %v3428_v14, %v3426_v5 }
0x15a8   : > { %5801 = vmatprep.mubr.msk.bf16.mxu1 %vm1463_vm0, %v3429_v0 }
0x15a9   : > { %5802 = vmatmul.mubr.msk.bf16.vlgmr.msra.gmra.mxu1 %vm1463_vm0, %v3430_v32 }
0x15aa   : > { %5806 = vmatpush3.bf16.xpose.msra.mxu1 %v3510_v56  ;;  %5809 = vmatprep.mubr.msk.bf16.mxu1 %vm1463_vm0, %v3491_v15 }
0x15ab   : > { %5916 = vmatprep.subr.msk.bf16.mxu1 %vm1463_vm0, %v3497_v53 }
0x15b2   : > { %5808 = vmatpush3.bf16.xpose.msra.mxu1 %v3507_v40  ;;  %v6105_v40 = vld [vmem:[%s7750_s11 + $0x50] sm:$0xff]  }
0x15b3   : > { %5829 = vmatprep.subr.bf16.mxu1 %v6102_v44 }
0x15b9   : > { %5810 = vmatmul.mubr.msk.bf16.vlgmr.msra.gmra.mxu1 %vm1463_vm0, %v3493_v43 }
0x15ba   : > { %5830 = vmatpush3.bf16.msra.mxu1 %v6102_v44 }
0x15bb   : > { %5831 = vmatprep.subr.bf16.mxu1 %v6103_v45 }
0x15be   : > { %5832 = vmatpush3.bf16.msra.mxu1 %v6103_v45 }
0x1669   : > { %v5803_v35 = vpop.f32.mrf.mxu1 }
0x166b   : > { %v3471_v38 = vpop.f32.mrf.mxu1 }
0x166d   : > { %v5804_v48 = vpop.f32.mrf.mxu1 }
0x166e   : > { %v3487_v50 = vpack.c.bf16 %v5804_v48, %v5803_v35 }
0x166f   : > { %v3474_v19 = vpop.f32.mrf.mxu1 }
0x1670   : > { %v3486_v49 = vpack.c.bf16 %v3474_v19, %v3471_v38 }
0x1672   : > { %5833 = vmatprep.mubr.msk.bf16.mxu1 %vm1463_vm0, %v3486_v49 }
0x1673   : > { %5834 = vmatmul.mubr.msk.bf16.vlgmr.msra.gmra.mxu1 %vm1463_vm0, %v3487_v50 }
0x1679   : > { %v5811_v51 = vpop.f32.mrf.mxu1 }
0x167a   : > { %v3567_v1 = vsel %vm1463_vm0, %v5811_v51, -inf }
0x167b   : > { %v3546_v54 = vpop.f32.mrf.mxu1 }
0x167c   : > { %v3561_v61 = vsel %vm1463_vm0, %v3546_v54, -inf }
0x167d   : > { %3562 = vmax.xlane.f32.xlu0 %v3561_v61  ;;  %v5812_v62 = vpop.f32.mrf.mxu1 }
0x167e   : > { %v3570_v28 = vsel %vm1463_vm0, %v5812_v62, -inf }
0x167f   : > { %v3549_v63 = vpop.f32.mrf.mxu1 }
0x1680   : > { %v3564_v3 = vsel %vm1463_vm0, %v3549_v63, -inf }
0x1681   : > { %3568 = vmax.xlane.f32.xlu0 %v3567_v1  ;;  %3565 = vmax.xlane.f32.xlu1 %v3564_v3 }
0x1685   : > { %3571 = vmax.xlane.f32.xlu0 %v3570_v28 }
0x1706   : > { %v3563_v29 = vpop.xlane.xlu0 %3562 }
0x1707   : > { %v3573_v8 = vsub.f32 %v3546_v54, %v3563_v29 }
0x1709   : > { %v3577_v11 = vmul.f32 1.442695, %v3573_v8 }
0x170a   : > { %v3569_v36 = vpop.xlane.xlu0 %3568  ;;  %v3566_v10 = vpop.xlane.xlu1 %3565 }
0x170b   : > { %v3575_v37 = vsub.f32 %v5811_v51, %v3569_v36  ;;  %v3574_v2 = vsub.f32 %v3549_v63, %v3566_v10 }
0x170d   : > { %v3581_v12 = vmul.f32 1.442695, %v3575_v37  ;;  %v3579_v58 = vmul.f32 1.442695, %v3574_v2 }
0x170e   : > { %v3572_v16 = vpop.xlane.xlu0 %3571 }
0x170f   : > { %6286 = vpow2.f32 %v3581_v12  ;;  %v3576_v55 = vsub.f32 %v5812_v62, %v3572_v16 }
0x1710   : > { %6288 = vpow2.f32 %v3577_v11 }
0x1711   : > { %v3583_v59 = vmul.f32 1.442695, %v3576_v55 }
0x1713   : > { %6290 = vpow2.f32 %v3583_v59 }
0x1714   : > { %6292 = vpow2.f32 %v3579_v58 }
0x171c   : > { %v6287_v60 = vpop.eup %6286 }
0x171d   : > { %v3591_v17 = vsel %vm1463_vm0, %v6287_v60, 0.0  ;;  %v6289_v31 = vpop.eup %6288 }
0x171e   : > { %3592 = vadd.xlane.f32.xlu0 %v3591_v17  ;;  %v3585_v25 = vsel %vm1463_vm0, %v6289_v31, 0.0 }
0x1720   : > { %v6291_v20 = vpop.eup %6290 }
0x1721   : > { %v3594_v26 = vsel %vm1463_vm0, %v6291_v20, 0.0  ;;  %v6293_v27 = vpop.eup %6292 }
0x1722   : > { %3586 = vadd.xlane.f32.xlu0 %v3585_v25  ;;  %3595 = vadd.xlane.f32.xlu1 %v3594_v26  ;;  %v3588_v30 = vsel %vm1463_vm0, %v6293_v27, 0.0 }
0x1726   : > { %3589 = vadd.xlane.f32.xlu1 %v3588_v30 }
0x1737   : > { %3609 = vrot.lane.b32.xlu1 %v7305_v41, %s6429_s23 }
0x1738   : > { %3611 = vrot.lane.b32.xlu0 %v7301_v52, %s6429_s23  ;;  %s7698_s23 = scalar_lea.hbm %s7804_s2, %s5410_s7 }
0x173b   : > { %3812 = vrot.lane.b32.xlu1 %v7303_v24, %s6430_s29 }
0x173c   : > { %3806 = vrot.lane.b32.xlu0 %v7294_v22, %s6430_s29 }
0x173f   : > { %3810 = vrot.lane.b32.xlu1 %v7309_v42, %s6430_s29 }
0x1740   : > { %4061 = vrot.lane.b32.xlu0 %v7303_v24, %s6431_s3 }
0x1743   : > { %3808 = vrot.lane.b32.xlu1 %v7321_v23, %s6430_s29 }
0x1744   : > { %4055 = vrot.lane.b32.xlu0 %v7294_v22, %s6431_s3  ;;  %v6104_v22 = vld [vmem:[%s7750_s11 + $0x58] sm:$0xff]  }
0x1747   : > { %4059 = vrot.lane.b32.xlu1 %v7309_v42, %s6431_s3 }
0x174b   : > { %4057 = vrot.lane.b32.xlu1 %v7321_v23, %s6431_s3 }
0x17a7   : > { %v3593_v33 = vpop.xlane.xlu0 %3592 }
0x17ab   : > { %v3587_v34 = vpop.xlane.xlu0 %3586  ;;  %v3596_v46 = vpop.xlane.xlu1 %3595 }
0x17ac   : > { %6294 = vrcp.f32 %v3596_v46 }
0x17ad   : > { %6296 = vrcp.f32 %v3587_v34 }
0x17ae   : > { %6298 = vrcp.f32 %v3593_v33 }
0x17af   : > { %v3612_v53 = vpop.permute.xlu0 %3611  ;;  %v3590_v24 = vpop.xlane.xlu1 %3589 }
0x17b0   : > { %6300 = vrcp.f32 %v3590_v24  ;;  %5813 = vmatprep.subr.bf16.mxu0 %v3612_v53 }
0x17b1   : > { %5814 = vmatpush3.bf16.msra.mxu0 %v3612_v53 }
0x17b3   : > { %v3610_v9 = vpop.permute.xlu1 %3609  ;;  %v3807_v49 = vpop.permute.xlu0 %3806 }
0x17b4   : > { %5815 = vmatprep.subr.bf16.mxu0 %v3610_v9 }
0x17b5   : > { %5816 = vmatpush3.bf16.msra.mxu0 %v3610_v9 }
0x17b6   : > { %5821 = vmatprep.subr.bf16.mxu0 %v6104_v22 }
0x17b7   : > { %v3813_v43 = vpop.permute.xlu1 %3812  ;;  %v4062_v61 = vpop.permute.xlu0 %4061 }
0x17b8   : > { %v3824_v50 = vsel %vm1463_vm0, %v3813_v43, 0  ;;  %v4073_v63 = vsel %vm1463_vm0, %v4062_v61, 0 }
0x17b9   : > { %v6295_v42 = vpop.eup %6294 }
0x17ba   : > { %v6297_v23 = vpop.eup %6296  ;;  %v3604_v5 = vmul.f32 %v6295_v42, %v6291_v20 }
0x17bb   : > { %v6299_v47 = vpop.eup %6298  ;;  %v3598_v14 = vmul.f32 %v6297_v23, %v6289_v31  ;;  %v3811_v51 = vpop.permute.xlu1 %3810 }
0x17bc   : > { %v3602_v32 = vmul.f32 %v6299_v47, %v6287_v60  ;;  %v3821_v54 = vsel %vm1463_vm0, %v3811_v51, 0  ;;  %v4056_v1 = vpop.permute.xlu0 %4055 }
0x17bd   : > { %v6301_v39 = vpop.eup %6300 }
0x17be   : > { %v3600_v0 = vmul.f32 %v6301_v39, %v6293_v27  ;;  %v3606_v15 = vpack.c.bf16 %v3604_v5, %v3602_v32 }
0x17bf   : > { %v3809_v62 = vpop.permute.xlu1 %3808 }
0x17c0   : > { %v3605_v56 = vpack.c.bf16 %v3600_v0, %v3598_v14 }
0x17c2   : > { %5817 = vmatprep.mubr.msk.bf16.mxu0 %vm1463_vm0, %v3605_v56 }
0x17c3   : > { %5818 = vmatmul.mubr.msk.bf16.vlgmr.msra.gmra.mxu0 %vm1463_vm0, %v3606_v15  ;;  %v4060_v3 = vpop.permute.xlu1 %4059 }
0x17c4   : > { %5822 = vmatpush3.bf16.msra.mxu0 %v6104_v22  ;;  %v4070_v28 = vsel %vm1463_vm0, %v4060_v3, 0 }
0x17c5   : > { %5823 = vmatprep.subr.bf16.mxu0 %v6105_v40 }
0x17c7   : > { %v4058_v29 = vpop.permute.xlu1 %4057 }
0x17c8   : > { %5824 = vmatpush3.bf16.msra.mxu0 %v6105_v40 }
0x17c9   : > { %5917 = vmatprep.subr.msk.bf16.mxu0 %vm1463_vm0, %v3813_v43 }
0x1883   : > { %v5819_v44 = vpop.f32.mrf.mxu0 }
0x1885   : > { %v3655_v45 = vpop.f32.mrf.mxu0 }
0x1887   : > { %v5820_v35 = vpop.f32.mrf.mxu0 }
0x1888   : > { %v3671_v19 = vpack.c.bf16 %v5820_v35, %v5819_v44 }
0x1889   : > { %v3658_v38 = vpop.f32.mrf.mxu0 }
0x188a   : > { %v3670_v48 = vpack.c.bf16 %v3658_v38, %v3655_v45 }
0x188c   : > { %5825 = vmatprep.mubr.msk.bf16.mxu0 %vm1463_vm0, %v3670_v48 }
0x188d   : > { %5826 = vmatmul.mubr.msk.bf16.vlgmr.msra.gmra.mxu0 %vm1463_vm0, %v3671_v19 }
0x188e   : > { %5838 = vmatpush3.bf16.xpose.msra.mxu0 %v3824_v50  ;;  %5841 = vmatprep.mubr.msk.bf16.mxu0 %vm1463_vm0, %v3807_v49 }
0x188f   : > { %5918 = vmatprep.subr.msk.bf16.mxu0 %vm1463_vm0, %v3811_v51 }
0x1896   : > { %5840 = vmatpush3.bf16.xpose.msra.mxu0 %v3821_v54 }
0x1897   : > { %5919 = vmatprep.subr.msk.bf16.mxu0 %vm1463_vm0, %v4062_v61 }
0x189d   : > { %5842 = vmatmul.mubr.msk.bf16.vlgmr.msra.gmra.mxu0 %vm1463_vm0, %v3809_v62 }
0x189e   : > { %5862 = vmatpush3.bf16.xpose.msra.mxu0 %v4073_v63  ;;  %5865 = vmatprep.mubr.msk.bf16.mxu0 %vm1463_vm0, %v4056_v1 }
0x189f   : > { %5920 = vmatprep.subr.msk.bf16.mxu0 %vm1463_vm0, %v4060_v3 }
0x18a6   : > { %5864 = vmatpush3.bf16.xpose.msra.mxu0 %v4070_v28 }
0x18ad   : > { %5866 = vmatmul.mubr.msk.bf16.vlgmr.msra.gmra.mxu0 %vm1463_vm0, %v4058_v29 }
0x18ae   : > { %4532 = vmatprep.mubr.bf16.mxu0 %v6428_v21 }
0x194d   : > { %v7408_v8 = vpop.f32.mrf.mxu0 }
0x194f   : > { %v7410_v36 = vpop.f32.mrf.mxu0 }
0x1951   : > { %v7412_v10 = vpop.f32.mrf.mxu0 }
0x1953   : > { %v7414_v37 = vpop.f32.mrf.mxu0 }
0x195d   : > { %v5843_v11 = vpop.f32.mrf.mxu0 }
0x195e   : > { %v3881_v58 = vsel %vm1463_vm0, %v5843_v11, -inf }
0x195f   : > { %v3860_v12 = vpop.f32.mrf.mxu0 }
0x1960   : > { %v3875_v2 = vsel %vm1463_vm0, %v3860_v12, -inf }
0x1961   : > { %3876 = vmax.xlane.f32.xlu0 %v3875_v2  ;;  %v5844_v16 = vpop.f32.mrf.mxu0 }
0x1962   : > { %v3884_v60 = vsel %vm1463_vm0, %v5844_v16, -inf }
0x1963   : > { %v3863_v55 = vpop.f32.mrf.mxu0 }
0x1964   : > { %v3878_v59 = vsel %vm1463_vm0, %v3863_v55, -inf }
0x1965   : > { %3882 = vmax.xlane.f32.xlu0 %v3881_v58  ;;  %3879 = vmax.xlane.f32.xlu1 %v3878_v59 }
0x1969   : > { %3885 = vmax.xlane.f32.xlu0 %v3884_v60 }
0x196d   : > { %v5867_v0 = vpop.f32.mrf.mxu0 }
0x196e   : > { %v4130_v43 = vsel %vm1463_vm0, %v5867_v0, -inf }
0x196f   : > { %v4109_v32 = vpop.f32.mrf.mxu0 }
0x1970   : > { %v4124_v44 = vsel %vm1463_vm0, %v4109_v32, -inf }
0x1971   : > { %v5868_v56 = vpop.f32.mrf.mxu0 }
0x1972   : > { %v4133_v45 = vsel %vm1463_vm0, %v5868_v56, -inf }
0x1973   : > { %v4112_v15 = vpop.f32.mrf.mxu0 }
0x1974   : > { %v4127_v40 = vsel %vm1463_vm0, %v4112_v15, -inf }
0x19ea   : > { %v3877_v17 = vpop.xlane.xlu0 %3876 }
0x19eb   : > { %v3887_v31 = vsub.f32 %v3860_v12, %v3877_v17 }
0x19ed   : > { %v3891_v27 = vmul.f32 1.442695, %v3887_v31 }
0x19ee   : > { %v3883_v20 = vpop.xlane.xlu0 %3882  ;;  %v3880_v25 = vpop.xlane.xlu1 %3879 }
0x19ef   : > { %v3889_v26 = vsub.f32 %v5843_v11, %v3883_v20  ;;  %v3888_v33 = vsub.f32 %v3863_v55, %v3880_v25 }
0x19f1   : > { %v3895_v30 = vmul.f32 1.442695, %v3889_v26  ;;  %v3893_v53 = vmul.f32 1.442695, %v3888_v33 }
0x19f2   : > { %v3886_v34 = vpop.xlane.xlu0 %3885 }
0x19f3   : > { %6302 = vpow2.f32 %v3895_v30  ;;  %v3890_v46 = vsub.f32 %v5844_v16, %v3886_v34 }
0x19f4   : > { %6304 = vpow2.f32 %v3891_v27 }
0x19f5   : > { %v3897_v24 = vmul.f32 1.442695, %v3890_v46 }
0x19f7   : > { %6306 = vpow2.f32 %v3897_v24 }
0x19f8   : > { %6308 = vpow2.f32 %v3893_v53 }
0x1a00   : > { %v6303_v22 = vpop.eup %6302 }
0x1a01   : > { %v3905_v9 = vsel %vm1463_vm0, %v6303_v22, 0.0  ;;  %v6305_v42 = vpop.eup %6304 }
0x1a02   : > { %3906 = vadd.xlane.f32.xlu0 %v3905_v9  ;;  %v3899_v47 = vsel %vm1463_vm0, %v6305_v42, 0.0  ;;  %v6106_v9 = vld [vmem:[%s7750_s11 + $0x68] sm:$0xff]  }
0x1a04   : > { %v6307_v23 = vpop.eup %6306 }
0x1a05   : > { %v3908_v39 = vsel %vm1463_vm0, %v6307_v23, 0.0  ;;  %v6309_v5 = vpop.eup %6308 }
0x1a06   : > { %3900 = vadd.xlane.f32.xlu0 %v3899_v47  ;;  %3909 = vadd.xlane.f32.xlu1 %v3908_v39  ;;  %v3902_v14 = vsel %vm1463_vm0, %v6309_v5, 0.0 }
0x1a0a   : > { %3903 = vadd.xlane.f32.xlu1 %v3902_v14 }
0x1a1b   : > { %3921 = vrot.lane.b32.xlu1 %v7305_v41, %s6430_s29 }
0x1a1c   : > { %3923 = vrot.lane.b32.xlu0 %v7301_v52, %s6430_s29  ;;  %s6370_s29 = sshll.u32 %s6434_s22, 4  ;;  %s6371_s29 = int_to_ptr.vmem [resolvable:$false] %s6370_s29 }
0x1a3b   : > { %4128 = vmax.xlane.f32.xlu0 %v4127_v40 }
0x1a3f   : > { %4131 = vmax.xlane.f32.xlu0 %v4130_v43  ;;  %4125 = vmax.xlane.f32.xlu1 %v4124_v44 }
0x1a43   : > { %4134 = vmax.xlane.f32.xlu1 %v4133_v45 }
0x1a8b   : > { %v3907_v35 = vpop.xlane.xlu0 %3906 }
0x1a8f   : > { %v3901_v38 = vpop.xlane.xlu0 %3900  ;;  %v3910_v48 = vpop.xlane.xlu1 %3909 }
0x1a90   : > { %6310 = vrcp.f32 %v3910_v48 }
0x1a91   : > { %6312 = vrcp.f32 %v3901_v38 }
0x1a92   : > { %6314 = vrcp.f32 %v3907_v35 }
0x1a93   : > { %v3924_v19 = vpop.permute.xlu0 %3923  ;;  %v3904_v49 = vpop.xlane.xlu1 %3903 }
0x1a94   : > { %6316 = vrcp.f32 %v3904_v49  ;;  %5845 = vmatprep.subr.bf16.mxu1 %v3924_v19 }
0x1a95   : > { %5846 = vmatpush3.bf16.msra.mxu1 %v3924_v19 }
0x1a97   : > { %v3922_v50 = vpop.permute.xlu1 %3921 }
0x1a98   : > { %5847 = vmatprep.subr.bf16.mxu1 %v3922_v50 }
0x1a99   : > { %5848 = vmatpush3.bf16.msra.mxu1 %v3922_v50 }
0x1a9a   : > { %5853 = vmatprep.subr.bf16.mxu1 %v6106_v9 }
0x1a9d   : > { %v6311_v51 = vpop.eup %6310 }
0x1a9e   : > { %v6313_v54 = vpop.eup %6312  ;;  %v3918_v63 = vmul.f32 %v6311_v51, %v6307_v23  ;;  %v5835_v23 = vpop.f32.mrf.mxu1 }
0x1a9f   : > { %v6315_v61 = vpop.eup %6314  ;;  %v3912_v1 = vmul.f32 %v6313_v54, %v6305_v42  ;;  %v6107_v42 = vld [vmem:[%s7750_s11 + $0x60] sm:$0xff]  }
0x1aa0   : > { %v3916_v28 = vmul.f32 %v6315_v61, %v6303_v22  ;;  %v3791_v47 = vpop.f32.mrf.mxu1 }
0x1aa1   : > { %v6317_v62 = vpop.eup %6316 }
0x1aa2   : > { %v3914_v3 = vmul.f32 %v6317_v62, %v6309_v5  ;;  %v3920_v11 = vpack.c.bf16 %v3918_v63, %v3916_v28  ;;  %v5836_v39 = vpop.f32.mrf.mxu1  ;;  %v3800_v28 = vadd.f32 %v5835_v23, %v7408_v8 }
0x1aa4   : > { %v3919_v29 = vpack.c.bf16 %v3914_v3, %v3912_v1  ;;  %v3794_v5 = vpop.f32.mrf.mxu1  ;;  %v6108_v1 = vld [vmem:[%s7750_s11 + $0x78] sm:$0xff]   ;;  %v6109_v3 = vld [vmem:[%s7750_s11 + $0x70] sm:$0xff]  }
0x1aa6   : > { %5849 = vmatprep.mubr.msk.bf16.mxu1 %vm1463_vm0, %v3919_v29 }
0x1aa7   : > { %5850 = vmatmul.mubr.msk.bf16.vlgmr.msra.gmra.mxu1 %vm1463_vm0, %v3920_v11  ;;  %v3792_v11 = vadd.f32 %v3791_v47, %v7410_v36 }
0x1aa8   : > { %5854 = vmatpush3.bf16.msra.mxu1 %v6106_v9 }
0x1aa9   : > { %5855 = vmatprep.subr.bf16.mxu1 %v6107_v42 }
0x1aac   : > { %5856 = vmatpush3.bf16.msra.mxu1 %v6107_v42 }
0x1ac4   : > { %v4129_v12 = vpop.xlane.xlu0 %4128 }
0x1ac5   : > { %v4137_v59 = vsub.f32 %v4112_v15, %v4129_v12 }
0x1ac7   : > { %v4142_v25 = vmul.f32 1.442695, %v4137_v59  ;;  %v3795_v59 = vadd.f32 %v3794_v5, %v7414_v37  ;;  %v5310_v37 = vld [vmem:[%s7751_s12 + $0x1] ss:$0 sm:$0xff] }
0x1ac8   : > { %v4132_v2 = vpop.xlane.xlu0 %4131  ;;  %v4126_v16 = vpop.xlane.xlu1 %4125 }
0x1ac9   : > { %v4138_v55 = vsub.f32 %v5867_v0, %v4132_v2  ;;  %v4136_v58 = vsub.f32 %v4109_v32, %v4126_v16  ;;  %v3803_v16 = vadd.f32 %v5836_v39, %v7412_v10 }
0x1acb   : > { %v4144_v60 = vmul.f32 1.442695, %v4138_v55  ;;  %v4140_v17 = vmul.f32 1.442695, %v4136_v58 }
0x1acc   : > { %v4135_v31 = vpop.xlane.xlu1 %4134 }
0x1acd   : > { %6318 = vpow2.f32 %v4144_v60  ;;  %v4139_v20 = vsub.f32 %v5868_v56, %v4135_v31 }
0x1ace   : > { %6320 = vpow2.f32 %v4140_v17 }
0x1acf   : > { %v4146_v26 = vmul.f32 1.442695, %v4139_v20 }
0x1ad1   : > { %6322 = vpow2.f32 %v4146_v26 }
0x1ad2   : > { %6324 = vpow2.f32 %v4142_v25 }
0x1ada   : > { %v6319_v27 = vpop.eup %6318 }
0x1adb   : > { %v4154_v30 = vsel %vm1463_vm0, %v6319_v27, 0.0  ;;  %v6321_v33 = vpop.eup %6320 }
0x1adc   : > { %4155 = vadd.xlane.f32.xlu0 %v4154_v30  ;;  %v4148_v46 = vsel %vm1463_vm0, %v6321_v33, 0.0 }
0x1ade   : > { %v6323_v34 = vpop.eup %6322 }
0x1adf   : > { %v4157_v53 = vsel %vm1463_vm0, %v6323_v34, 0.0  ;;  %v6325_v24 = vpop.eup %6324 }
0x1ae0   : > { %4149 = vadd.xlane.f32.xlu0 %v4148_v46  ;;  %4158 = vadd.xlane.f32.xlu1 %v4157_v53  ;;  %v4151_v22 = vsel %vm1463_vm0, %v6325_v24, 0.0 }
0x1ae4   : > { %4152 = vadd.xlane.f32.xlu1 %v4151_v22 }
0x1af5   : > { %4170 = vrot.lane.b32.xlu1 %v7305_v41, %s6431_s3 }
0x1af6   : > { %4172 = vrot.lane.b32.xlu0 %v7301_v52, %s6431_s3  ;;  %s702_s3 = scalar_lea.vmem [#allocation2], %s701_s24 }
0x1af7   : > { %s5019_s1 = sshll.u32 %s702_s3, 4  ;;  %s7700_s1 = int_to_ptr.vmem [resolvable:$true] %s5019_s1 }
0x1af8   : > { %s6366_s5 = scalar_lea.vmem %s7700_s1, 16  ;;  %p6373_p0 = scmp.lt.s32.totalorder %s7700_s1, %s6371_s29 }
0x1af9   : > { %p6367_p11 = scmp.ne.s32.totalorder %s7700_s1, %s6366_s5 }
0x1afb   : > { %p6368_p12 = pnand %p6367_p11, %p6593_p5 }
0x1afd   : > { %p6369_p13 = pneg %p6368_p12 }
0x1b65   : > { %v4156_v14 = vpop.xlane.xlu0 %4155 }
0x1b67   : > { %v5851_v0 = vpop.f32.mrf.mxu1 }
0x1b69   : > { %v3967_v32 = vpop.f32.mrf.mxu1  ;;  %v4150_v56 = vpop.xlane.xlu0 %4149 }
0x1b6a   : > { %v4159_v15 = vpop.xlane.xlu1 %4158 }
0x1b6b   : > { %v5852_v40 = vpop.f32.mrf.mxu1  ;;  %6326 = vrcp.f32 %v4159_v15 }
0x1b6c   : > { %6328 = vrcp.f32 %v4150_v56  ;;  %v3983_v35 = vpack.c.bf16 %v5852_v40, %v5851_v0 }
0x1b6d   : > { %v3970_v43 = vpop.f32.mrf.mxu1  ;;  %v4173_v44 = vpop.permute.xlu0 %4172  ;;  %6330 = vrcp.f32 %v4156_v14 }
0x1b6e   : > { %v3982_v45 = vpack.c.bf16 %v3970_v43, %v3967_v32  ;;  %v4153_v41 = vpop.xlane.xlu1 %4152  ;;  %5869 = vmatprep.subr.bf16.mxu1 %v4173_v44  ;;  %v6110_v32 = vld [vmem:[%s7754_s15 + $0xf0] ss:$8 sps:$4 sm:$0xff]  }
0x1b6f   : > { %6332 = vrcp.f32 %v4153_v41 }
0x1b70   : > { %5857 = vmatprep.mubr.msk.bf16.mxu1 %vm1463_vm0, %v3982_v45 }
0x1b71   : > { %5858 = vmatmul.mubr.msk.bf16.vlgmr.msra.gmra.mxu1 %vm1463_vm0, %v3983_v35 }
0x1b72   : > { %5870 = vmatpush3.bf16.msra.mxu1 %v4173_v44  ;;  %v4171_v52 = vpop.permute.xlu1 %4170 }
0x1b73   : > { %5871 = vmatprep.subr.bf16.mxu1 %v4171_v52 }
0x1b76   : > { %5872 = vmatpush3.bf16.msra.mxu1 %v4171_v52 }
0x1b77   : > { %5877 = vmatprep.subr.bf16.mxu1 %v6108_v1 }
0x1b78   : > { %v6327_v38 = vpop.eup %6326 }
0x1b79   : > { %v6329_v48 = vpop.eup %6328  ;;  %v4167_v50 = vmul.f32 %v6327_v38, %v6323_v34 }
0x1b7a   : > { %v6331_v19 = vpop.eup %6330  ;;  %v4161_v51 = vmul.f32 %v6329_v48, %v6321_v33 }
0x1b7b   : > { %v4165_v61 = vmul.f32 %v6331_v19, %v6319_v27 }
0x1b7c   : > { %v6333_v49 = vpop.eup %6332 }
0x1b7d   : > { %v4163_v54 = vmul.f32 %v6333_v49, %v6325_v24  ;;  %v4169_v63 = vpack.c.bf16 %v4167_v50, %v4165_v61  ;;  %v6115_v50 = vld [vmem:[%s7754_s15 + $0xe4] ss:$8 sps:$4 sm:$0xff]   ;;  %v6116_v61 = vld [vmem:[%s7754_s15 + $0xd0] ss:$8 sps:$4 sm:$0xff]  }
0x1b7f   : > { %v4168_v62 = vpack.c.bf16 %v4163_v54, %v4161_v51  ;;  %v6113_v51 = vld [vmem:[%s7754_s15 + $0xe0] ss:$8 sps:$4 sm:$0xff]   ;;  %v6118_v54 = vld [vmem:[%s7754_s15 + $0xd4] ss:$8 sps:$4 sm:$0xff]  }
0x1b81   : > { %5873 = vmatprep.mubr.msk.bf16.mxu1 %vm1463_vm0, %v4168_v62  ;;  %v6121_v62 = vld [vmem:[%s7754_s15 + $0xc4] ss:$8 sps:$4 sm:$0xff]  }
0x1b82   : > { %5874 = vmatmul.mubr.msk.bf16.vlgmr.msra.gmra.mxu1 %vm1463_vm0, %v4169_v63  ;;  %v6119_v63 = vld [vmem:[%s7754_s15 + $0xc0] ss:$8 sps:$4 sm:$0xff]  }
0x1b83   : > { %5878 = vmatpush3.bf16.msra.mxu1 %v6108_v1  ;;  %v6122_v1 = vld [vmem:[%s7754_s15 + $0xb0] ss:$8 sps:$4 sm:$0xff]  }
0x1b84   : > { %5879 = vmatprep.subr.bf16.mxu1 %v6109_v3 }
0x1b87   : > { %5880 = vmatpush3.bf16.msra.mxu1 %v6109_v3  ;;  %v6124_v3 = vld [vmem:[%s7754_s15 + $0xb4] ss:$8 sps:$4 sm:$0xff]  }
0x1c31   : > { %v5859_v29 = vpop.f32.mrf.mxu1 }
0x1c32   : > { %v4053_v12 = vadd.f32 %v5859_v29, %v3800_v28  ;;  %v6127_v28 = vld [vmem:[%s7754_s15 + $0xa4] ss:$8 sps:$4 sm:$0xff]   ;;  %v6125_v29 = vld [vmem:[%s7754_s15 + $0xa0] ss:$8 sps:$4 sm:$0xff]  }
0x1c33   : > { %v4036_v2 = vpop.f32.mrf.mxu1 }
0x1c34   : > { %v4051_v55 = vadd.f32 %v4036_v2, %v3792_v11  ;;  %v6130_v11 = vld [vmem:[%s7754_s15 + $0x94] ss:$8 sps:$4 sm:$0xff]   ;;  %v6133_v2 = vld [vmem:[%s7754_s15 + $0x84] ss:$8 sps:$4 sm:$0xff]  }
0x1c35   : > { %v5860_v58 = vpop.f32.mrf.mxu1 }
0x1c36   : > { %v4054_v60 = vadd.f32 %v5860_v58, %v3803_v16  ;;  %v6131_v16 = vld [vmem:[%s7754_s15 + $0x80] ss:$8 sps:$4 sm:$0xff]  }
0x1c37   : > { %v4039_v17 = vpop.f32.mrf.mxu1 }
0x1c38   : > { %v4052_v31 = vadd.f32 %v4039_v17, %v3795_v59 }
0x1c42   : > { %v5875_v20 = vpop.f32.mrf.mxu1 }
0x1c44   : > { %v4216_v25 = vpop.f32.mrf.mxu1 }
0x1c46   : > { %v5876_v26 = vpop.f32.mrf.mxu1 }
0x1c47   : > { %v4232_v8 = vpack.c.bf16 %v5876_v26, %v5875_v20 }
0x1c48   : > { %v4219_v27 = vpop.f32.mrf.mxu1 }
0x1c49   : > { %v4231_v30 = vpack.c.bf16 %v4219_v27, %v4216_v25 }
0x1c4b   : > { %5881 = vmatprep.mubr.msk.bf16.mxu1 %vm1463_vm0, %v4231_v30 }
0x1c4c   : > { %5882 = vmatmul.mubr.msk.bf16.vlgmr.msra.gmra.mxu1 %vm1463_vm0, %v4232_v8 }
0x1d0c   : > { %v5883_v36 = vpop.f32.mrf.mxu1 }
0x1d0d   : > { %v4302_v22 = vadd.f32 %v5883_v36, %v4053_v12  ;;  %v6128_v12 = vld [vmem:[%s7754_s15 + $0x90] ss:$8 sps:$4 sm:$0xff]  }
0x1d0e   : > { %v4285_v33 = vpop.f32.mrf.mxu1 }
0x1d0f   : > { %v4300_v10 = vadd.f32 %v4285_v33, %v4051_v55  ;;  %v4314_v39 = vadd.f32 %v5310_v37, %v4302_v22 }
0x1d10   : > { %v5884_v34 = vpop.f32.mrf.mxu1 }
0x1d11   : > { %v4312_v46 = vadd.f32 %v5310_v37, %v4300_v10  ;;  %v4303_v53 = vadd.f32 %v5884_v34, %v4054_v60  ;;  %v4318_v0 = vadd.f32 %v4314_v39, %v7284_v13  ;;  %v5313_v10 = vld [vmem:[%s7752_s13 + $0x1] ss:$0 sm:$0xff] }
0x1d12   : > { %v4288_v24 = vpop.f32.mrf.mxu1 }
0x1d13   : > { %v4315_v9 = vadd.f32 %v5310_v37, %v4303_v53  ;;  %v4301_v42 = vadd.f32 %v4288_v24, %v4052_v31  ;;  %v4316_v23 = vadd.f32 %v4312_v46, %v7275_v6  ;;  %v6112_v6 = vld [vmem:[%s7754_s15 + $0xf4] ss:$8 sps:$4 sm:$0xff]   ;;  %v5314_v53 = vld [vmem:[%s7753_s14 + $0x1] ss:$0 sm:$0xff] }
0x1d14   : > { %4500 = vmatprep.subr.bf16.mxu0 %v6112_v6 }
0x1d15   : > { %v4313_v47 = vadd.f32 %v5310_v37, %v4301_v42  ;;  %4324 = vadd.xlane.f32.xlu1 %v4316_v23  ;;  %v4319_v5 = vadd.f32 %v4315_v9, %v7286_v18  ;;  %4501 = vmatpush1.bf16.msra.mxu0 %v6110_v32 }
0x1d16   : > { %4502 = vmatprep.subr.bf16.mxu0 %v6115_v50  ;;  %v5331_v50 = vld [vmem:[%s7755_s16 + $0x2] sm:$0x3] }
0x1d17   : > { %v4317_v14 = vadd.f32 %v4313_v47, %v7277_v7 }
0x1d19   : > { %4330 = vadd.xlane.f32.xlu1 %v4319_v5  ;;  %4326 = vadd.xlane.f32.xlu0 %v4317_v14 }
0x1d1a   : > { %4503 = vmatpush1.bf16.msra.mxu0 %v6113_v51  ;;  %v4413_v51 = vrot.slane %v5331_v50, %v6807_v57 }
0x1d1b   : > { %4504 = vmatprep.subr.bf16.mxu0 %v6118_v54  ;;  %v4417_v54 = vrot.slane %v5331_v50, %v6816_v4 }
0x1d1d   : > { %4328 = vadd.xlane.f32.xlu0 %v4318_v0 }
0x1d1e   : > { %4505 = vmatpush1.bf16.msra.mxu0 %v6116_v61 }
0x1d1f   : > { %4506 = vmatprep.subr.bf16.mxu0 %v6121_v62 }
0x1d22   : > { %4507 = vmatpush1.bf16.msra.mxu0 %v6119_v63 }
0x1d23   : > { %4508 = vmatprep.subr.bf16.mxu0 %v6124_v3 }
0x1d26   : > { %4509 = vmatpush1.bf16.msra.mxu0 %v6122_v1 }
0x1d27   : > { %4510 = vmatprep.subr.bf16.mxu0 %v6127_v28 }
0x1d2a   : > { %4511 = vmatpush1.bf16.msra.mxu0 %v6125_v29 }
0x1d2b   : > { %4512 = vmatprep.subr.bf16.mxu0 %v6130_v11 }
0x1d2e   : > { %4513 = vmatpush1.bf16.msra.mxu0 %v6128_v12 }
0x1d2f   : > { %4514 = vmatprep.subr.bf16.mxu0 %v6133_v2 }
0x1d32   : > { %4515 = vmatpush1.bf16.msra.mxu0 %v6131_v16 }
0x1d9e   : > { %v4325_v56 = vpop.xlane.xlu1 %4324 }
0x1d9f   : > { %v4332_v15 = vmul.f32 0.0078125, %v4325_v56 }
0x1da1   : > { %v7477_v18 = vsub.f32 %v4316_v23, %v4332_v15  ;;  %v6134_v15 = vld [vmem:[%s7756_s17 + $0xf8] sm:$0xff]  }
0x1da2   : > { %v4331_v7 = vpop.xlane.xlu1 %4330  ;;  %v4327_v40 = vpop.xlane.xlu0 %4326  ;;  %5596 = vmatprep.subr.bf16.mxu1 %v6134_v15 }
0x1da3   : > { %v4335_v43 = vmul.f32 0.0078125, %v4331_v7  ;;  %v4333_v44 = vmul.f32 0.0078125, %v4327_v40  ;;  %v4340_v13 = vmul.f32 %v7477_v18, %v7477_v18  ;;  %v6137_v7 = vld [vmem:[%s7756_s17 + $0xb0] sm:$0xff]   ;;  %v6138_v40 = vld [vmem:[%s7756_s17 + $0xe8] sm:$0xff]  }
0x1da5   : > { %v4337_v45 = vsub.f32 %v4317_v14, %v4333_v44  ;;  %4344 = vadd.xlane.f32.xlu0 %v4340_v13  ;;  %v7481_v35 = vsub.f32 %v4319_v5, %v4335_v43  ;;  %v6139_v43 = vld [vmem:[%s7756_s17 + $0xa8] sm:$0xff]   ;;  %v6140_v44 = vld [vmem:[%s7756_s17 + $0xe0] sm:$0xff]  }
0x1da6   : > { %v4329_v41 = vpop.xlane.xlu0 %4328  ;;  %v6141_v13 = vld [vmem:[%s7756_s17 + $0xa0] sm:$0xff]  }
0x1da7   : > { %v4334_v52 = vmul.f32 0.0078125, %v4329_v41  ;;  %v4341_v38 = vmul.f32 %v4337_v45, %v4337_v45  ;;  %v4343_v19 = vmul.f32 %v7481_v35, %v7481_v35  ;;  %v6143_v41 = vld [vmem:[%s7756_s17 + $0x98] sm:$0xff]  }
0x1da9   : > { %v7483_v48 = vsub.f32 %v4318_v0, %v4334_v52  ;;  %4346 = vadd.xlane.f32.xlu1 %v4341_v38  ;;  %v6145_v52 = vld [vmem:[%s7756_s17 + $0x90] sm:$0xff]   ;;  %v6146_v38 = vld [vmem:[%s7756_s17 + $0xc8] sm:$0xff]  }
0x1dab   : > { %v4342_v49 = vmul.f32 %v7483_v48, %v7483_v48 }
0x1dad   : > { %4350 = vadd.xlane.f32.xlu1 %v4343_v19  ;;  %4348 = vadd.xlane.f32.xlu0 %v4342_v49  ;;  %v6148_v19 = vld [vmem:[%s7756_s17 + $0xc0] sm:$0xff]  }
0x1dae   : > { %v6149_v49 = vld [vmem:[%s7756_s17 + $0x80] sm:$0xff]  }
0x1e2e   : > { %v4345_v55 = vpop.xlane.xlu0 %4344 }
0x1e2f   : > { %v4352_v58 = vmul.f32 0.0078125, %v4345_v55 }
0x1e31   : > { %v4356_v59 = vadd.f32 1e-05, %v4352_v58 }
0x1e32   : > { %v4347_v60 = vpop.xlane.xlu1 %4346 }
0x1e33   : > { %6334 = vrsqrt.f32 %v4356_v59  ;;  %v4353_v17 = vmul.f32 0.0078125, %v4347_v60 }
0x1e35   : > { %v4357_v31 = vadd.f32 1e-05, %v4353_v17 }
0x1e36   : > { %v4351_v20 = vpop.xlane.xlu1 %4350  ;;  %v4349_v25 = vpop.xlane.xlu0 %4348 }
0x1e37   : > { %6336 = vrsqrt.f32 %v4357_v31  ;;  %v4355_v26 = vmul.f32 0.0078125, %v4351_v20  ;;  %v4354_v27 = vmul.f32 0.0078125, %v4349_v25 }
0x1e39   : > { %v4359_v30 = vadd.f32 1e-05, %v4355_v26  ;;  %v4358_v8 = vadd.f32 1e-05, %v4354_v27 }
0x1e3b   : > { %6338 = vrsqrt.f32 %v4359_v30 }
0x1e3c   : > { %6340 = vrsqrt.f32 %v4358_v8 }
0x1e40   : > { %v6335_v36 = vpop.eup %6334 }
0x1e41   : > { %v4364_v33 = vmul.f32 %v6335_v36, %v7477_v18  ;;  %v6135_v18 = vld [vmem:[%s7756_s17 + $0xb8] sm:$0xff]  }
0x1e42   : > { %5597 = vmatpush3.bf16.msra.mxu1 %v6135_v18 }
0x1e43   : > { %v4374_v46 = vmul.f32 %v5313_v10, %v4364_v33 }
0x1e44   : > { %v6337_v37 = vpop.eup %6336 }
0x1e45   : > { %v4365_v34 = vmul.f32 %v6337_v37, %v4337_v45  ;;  %v7538_v42 = vadd.f32 %v5314_v53, %v4374_v46  ;;  %v6142_v45 = vld [vmem:[%s7756_s17 + $0xd8] sm:$0xff]  }
0x1e47   : > { %v4375_v24 = vmul.f32 %v5313_v10, %v4365_v34 }
0x1e48   : > { %v6339_v22 = vpop.eup %6338 }
0x1e49   : > { %v6341_v9 = vpop.eup %6340  ;;  %v7540_v23 = vadd.f32 %v5314_v53, %v4375_v24  ;;  %v4367_v47 = vmul.f32 %v6339_v22, %v7481_v35  ;;  %v6144_v35 = vld [vmem:[%s7756_s17 + $0xd0] sm:$0xff]  }
0x1e4a   : > { %v4366_v39 = vmul.f32 %v6341_v9, %v7483_v48  ;;  %v6147_v48 = vld [vmem:[%s7756_s17 + $0x88] sm:$0xff]  }
0x1e4b   : > { %v4407_v5 = vpack.c.bf16 %v7540_v23, %v7538_v42  ;;  %v4377_v14 = vmul.f32 %v5313_v10, %v4367_v47 }
0x1e4c   : > { %v4376_v0 = vmul.f32 %v5313_v10, %v4366_v39 }
0x1e4d   : > { %4533 = vmatmul.mubr.bf16.vlgmr.msra.gmra.mxu0 %v4407_v5  ;;  %v7549_v6 = vadd.f32 %v5314_v53, %v4377_v14 }
0x1e4e   : > { %4542 = vmatprep.mubr.bf16.mxu0 %v6428_v21  ;;  %v7547_v32 = vadd.f32 %v5314_v53, %v4376_v0  ;;  %v6136_v21 = vld [vmem:[%s7756_s17 + $0xf0] sm:$0xff]  }
0x1e4f   : > { %5598 = vmatprep.subr.bf16.mxu1 %v6136_v21 }
0x1e50   : > { %v4408_v56 = vpack.c.bf16 %v7549_v6, %v7547_v32  ;;  %5599 = vmatpush3.bf16.msra.mxu1 %v6137_v7 }
0x1e51   : > { %5600 = vmatprep.subr.bf16.mxu1 %v6138_v40 }
0x1e54   : > { %5601 = vmatpush3.bf16.msra.mxu1 %v6139_v43 }
0x1e55   : > { %4543 = vmatmul.mubr.bf16.gmra.mxu0 %v4408_v56  ;;  %5602 = vmatprep.subr.bf16.mxu1 %v6140_v44 }
0x1e58   : > { %5603 = vmatpush3.bf16.msra.mxu1 %v6141_v13 }
0x1e59   : > { %5604 = vmatprep.subr.bf16.mxu1 %v6142_v45 }
0x1e5c   : > { %5605 = vmatpush3.bf16.msra.mxu1 %v6143_v41 }
0x1e5d   : > { %5606 = vmatprep.subr.bf16.mxu1 %v6144_v35 }
0x1e60   : > { %5607 = vmatpush3.bf16.msra.mxu1 %v6145_v52 }
0x1e61   : > { %5608 = vmatprep.subr.bf16.mxu1 %v6146_v38 }
0x1e64   : > { %5609 = vmatpush3.bf16.msra.mxu1 %v6147_v48 }
0x1e65   : > { %5610 = vmatprep.subr.bf16.mxu1 %v6148_v19 }
0x1e68   : > { %5611 = vmatpush3.bf16.msra.mxu1 %v6149_v49 }
0x1f0d   : > { %v4534_v61 = vpop.f32.mrf.mxu0 }
0x1f0e   : > { %v7606_v62 = vadd.f32 %v4534_v61, %v4413_v51 }
0x1f0f   : > { %v4536_v63 = vpop.f32.mrf.mxu0 }
0x1f10   : > { %v4553_v1 = vmul.f32 %v7606_v62, %v7606_v62  ;;  %v7610_v3 = vadd.f32 %v4536_v63, %v4417_v54 }
0x1f11   : > { %v4538_v28 = vpop.f32.mrf.mxu0 }
0x1f12   : > { %v4561_v29 = vmul.f32 %v4553_v1, %v7606_v62  ;;  %v4554_v11 = vmul.f32 %v7610_v3, %v7610_v3  ;;  %v7615_v12 = vadd.f32 %v4538_v28, %v4413_v51 }
0x1f13   : > { %v4540_v57 = vpop.f32.mrf.mxu0 }
0x1f14   : > { %v4569_v2 = vmul.f32 0.044715, %v4561_v29  ;;  %v4562_v4 = vmul.f32 %v4554_v11, %v7610_v3  ;;  %v4555_v16 = vmul.f32 %v7615_v12, %v7615_v12  ;;  %v7620_v55 = vadd.f32 %v4540_v57, %v4417_v54 }
0x1f15   : > { %v4544_v58 = vpop.f32.mrf.mxu0 }
0x1f16   : > { %v4577_v59 = vadd.f32 %v4569_v2, %v7606_v62  ;;  %v4570_v60 = vmul.f32 0.044715, %v4562_v4  ;;  %v4563_v17 = vmul.f32 %v4555_v16, %v7615_v12  ;;  %v4556_v31 = vmul.f32 %v7620_v55, %v7620_v55 }
0x1f17   : > { %v7626_v20 = vadd.f32 %v4544_v58, %v4413_v51  ;;  %v4546_v25 = vpop.f32.mrf.mxu0 }
0x1f18   : > { %v4585_v26 = vmul.f32 0.7978846, %v4577_v59  ;;  %v4578_v27 = vadd.f32 %v4570_v60, %v7610_v3  ;;  %v4571_v30 = vmul.f32 0.044715, %v4563_v17  ;;  %v4564_v8 = vmul.f32 %v4556_v31, %v7620_v55 }
0x1f19   : > { %v4557_v36 = vmul.f32 %v7626_v20, %v7626_v20  ;;  %v7632_v33 = vadd.f32 %v4546_v25, %v4417_v54  ;;  %v4548_v10 = vpop.f32.mrf.mxu0 }
0x1f1a   : > { %v4586_v37 = vmul.f32 0.7978846, %v4578_v27  ;;  %v4579_v34 = vadd.f32 %v4571_v30, %v7615_v12  ;;  %v4572_v46 = vmul.f32 0.044715, %v4564_v8  ;;  %6342 = vtanh.f32 %v4585_v26 }
0x1f1b   : > { %v4565_v53 = vmul.f32 %v4557_v36, %v7626_v20  ;;  %v4558_v24 = vmul.f32 %v7632_v33, %v7632_v33  ;;  %v4549_v22 = vadd.f32 %v4548_v10, %v4413_v51  ;;  %v4550_v9 = vpop.f32.mrf.mxu0 }
0x1f1c   : > { %6344 = vtanh.f32 %v4586_v37  ;;  %v4587_v47 = vmul.f32 0.7978846, %v4579_v34  ;;  %v4580_v39 = vadd.f32 %v4572_v46, %v7620_v55  ;;  %v4551_v5 = vadd.f32 %v4550_v9, %v4417_v54 }
0x1f1d   : > { %v4573_v14 = vmul.f32 0.044715, %v4565_v53  ;;  %v4566_v0 = vmul.f32 %v4558_v24, %v7632_v33  ;;  %v4559_v56 = vmul.f32 %v4549_v22, %v4549_v22 }
0x1f1e   : > { %6346 = vtanh.f32 %v4587_v47  ;;  %v4588_v15 = vmul.f32 0.7978846, %v4580_v39  ;;  %v4560_v18 = vmul.f32 %v4551_v5, %v4551_v5  ;;  %v5381_v39 = vld [vmem:[%s7757_s18 + $0x1] ss:$0 sm:$0xff] }
0x1f1f   : > { %v4581_v21 = vadd.f32 %v4573_v14, %v7626_v20  ;;  %v4574_v7 = vmul.f32 0.044715, %v4566_v0  ;;  %v4567_v40 = vmul.f32 %v4559_v56, %v4549_v22 }
0x1f20   : > { %6348 = vtanh.f32 %v4588_v15  ;;  %v4568_v43 = vmul.f32 %v4560_v18, %v4551_v5 }
0x1f21   : > { %v4589_v44 = vmul.f32 0.7978846, %v4581_v21  ;;  %v4582_v13 = vadd.f32 %v4574_v7, %v7632_v33  ;;  %v4575_v45 = vmul.f32 0.044715, %v4567_v40 }
0x1f22   : > { %v4576_v41 = vmul.f32 0.044715, %v4568_v43 }
0x1f23   : > { %6350 = vtanh.f32 %v4589_v44  ;;  %v4590_v35 = vmul.f32 0.7978846, %v4582_v13  ;;  %v4583_v52 = vadd.f32 %v4575_v45, %v4549_v22 }
0x1f24   : > { %v4584_v38 = vadd.f32 %v4576_v41, %v4551_v5 }
0x1f25   : > { %6352 = vtanh.f32 %v4590_v35  ;;  %v4591_v48 = vmul.f32 0.7978846, %v4583_v52 }
0x1f26   : > { %v4592_v19 = vmul.f32 0.7978846, %v4584_v38 }
0x1f27   : > { %6354 = vtanh.f32 %v4591_v48  ;;  %v6343_v49 = vpop.eup %6342 }
0x1f28   : > { %6356 = vtanh.f32 %v4592_v19  ;;  %v4601_v61 = vadd.f32 1.0, %v6343_v49 }
0x1f29   : > { %v6345_v50 = vpop.eup %6344 }
0x1f2a   : > { %v4602_v51 = vadd.f32 1.0, %v6345_v50  ;;  %v4609_v57 = vmul.f32 0.5, %v4601_v61 }
0x1f2b   : > { %v6347_v54 = vpop.eup %6346 }
0x1f2c   : > { %v4603_v63 = vadd.f32 1.0, %v6347_v54  ;;  %v4610_v11 = vmul.f32 0.5, %v4602_v51  ;;  %v4617_v17 = vmul.f32 %v4609_v57, %v7606_v62  ;;  %v6432_v57 = vmov 0.0  }
0x1f2d   : > { %v6349_v1 = vpop.eup %6348  ;;  %5885 = vmatprep.subr.bf16.mxu0 %v6432_v57  ;;  %5901 = vmatprep.mubr.msk.bf16.mxu0 %vm6433_vm1, %v6432_v57 }
0x1f2e   : > { %v4611_v28 = vmul.f32 0.5, %v4603_v63  ;;  %v4604_v29 = vadd.f32 1.0, %v6349_v1  ;;  %v4618_v59 = vmul.f32 %v4610_v11, %v7610_v3  ;;  %v6150_v11 = vld [vmem:[%s7760_s21 + $0x38] sm:$0xff]  }
0x1f2f   : > { %5886 = vmatpush3.bf16.msra.mxu0 %v6150_v11 }
0x1f30   : > { %v6351_v2 = vpop.eup %6350  ;;  %v4612_v4 = vmul.f32 0.5, %v4604_v29  ;;  %v4619_v16 = vmul.f32 %v4611_v28, %v7615_v12  ;;  %5887 = vmatprep.subr.bf16.mxu0 %v6432_v57 }
0x1f31   : > { %v4605_v25 = vadd.f32 1.0, %v6351_v2  ;;  %v6151_v2 = vld [vmem:[%s7760_s21 + $0x30] sm:$0xff]  }
0x1f32   : > { %v6353_v58 = vpop.eup %6352  ;;  %v4620_v60 = vmul.f32 %v4612_v4, %v7620_v55  ;;  %v4660_v8 = vpack.c.bf16 %v4619_v16, %v4617_v17  ;;  %v6152_v4 = vld [vmem:[%s7760_s21 + $0x28] sm:$0xff]   ;;  %v6153_v16 = vld [vmem:[%s7760_s21 + $0x20] sm:$0xff]  }
0x1f33   : > { %v4606_v31 = vadd.f32 1.0, %v6353_v58  ;;  %v4613_v34 = vmul.f32 0.5, %v4605_v25  ;;  %5888 = vmatpush3.bf16.msra.mxu0 %v6151_v2  ;;  %v6154_v58 = vld [vmem:[%s7760_s21 + $0x18] sm:$0xff]   ;;  %v6157_v17 = vld [vmem:[%s7760_s21] sm:$0xff]  }
0x1f34   : > { %v6355_v26 = vpop.eup %6354  ;;  %v4661_v27 = vpack.c.bf16 %v4620_v60, %v4618_v59  ;;  %5889 = vmatprep.subr.bf16.mxu0 %v6432_v57  ;;  %v6155_v59 = vld [vmem:[%s7760_s21 + $0x10] sm:$0xff]   ;;  %v6156_v60 = vld [vmem:[%s7760_s21 + $0x8] sm:$0xff]  }
0x1f35   : > { %v6357_v30 = vpop.eup %6356  ;;  %v4607_v36 = vadd.f32 1.0, %v6355_v26  ;;  %v4614_v37 = vmul.f32 0.5, %v4606_v31  ;;  %v4621_v62 = vmul.f32 %v4613_v34, %v7626_v20 }
0x1f36   : > { %4798 = vmatprep.mubr.bf16.mxu1 %v4661_v27  ;;  %v4608_v10 = vadd.f32 1.0, %v6357_v30 }
0x1f37   : > { %4799 = vmatmul.mubr.bf16.vlgmr.msra.gmra.mxu1 %v4660_v8  ;;  %v4615_v12 = vmul.f32 0.5, %v4607_v36  ;;  %v4622_v3 = vmul.f32 %v4614_v37, %v7632_v33  ;;  %5890 = vmatpush3.bf16.msra.mxu0 %v6152_v4 }
0x1f38   : > { %v4616_v46 = vmul.f32 0.5, %v4608_v10  ;;  %5891 = vmatprep.subr.bf16.mxu0 %v6432_v57 }
0x1f39   : > { %v4623_v53 = vmul.f32 %v4615_v12, %v4549_v22 }
0x1f3a   : > { %v4624_v55 = vmul.f32 %v4616_v46, %v4551_v5 }
0x1f3b   : > { %v4662_v9 = vpack.c.bf16 %v4623_v53, %v4621_v62  ;;  %5892 = vmatpush3.bf16.msra.mxu0 %v6153_v16 }
0x1f3c   : > { %v4663_v24 = vpack.c.bf16 %v4624_v55, %v4622_v3  ;;  %5893 = vmatprep.subr.bf16.mxu0 %v6432_v57 }
0x1f3e   : > { %4806 = vmatprep.mubr.bf16.mxu1 %v4663_v24  ;;  %v5400_v24 = vld [vmem:[%s7758_s19 + $0x1] ss:$0 sm:$0xff] }
0x1f3f   : > { %4807 = vmatmul.mubr.bf16.gmra.mxu1 %v4662_v9  ;;  %5894 = vmatpush3.bf16.msra.mxu0 %v6154_v58 }
0x1f40   : > { %5895 = vmatprep.subr.bf16.mxu0 %v6432_v57 }
0x1f43   : > { %5896 = vmatpush3.bf16.msra.mxu0 %v6155_v59 }
0x1f44   : > { %5897 = vmatprep.subr.bf16.mxu0 %v6432_v57 }
0x1f47   : > { %5898 = vmatpush3.bf16.msra.mxu0 %v6156_v60 }
0x1f48   : > { %5899 = vmatprep.subr.bf16.mxu0 %v6432_v57 }
0x1f4b   : > { %5900 = vmatpush3.bf16.msra.mxu0 %v6157_v17 }
0x1ff7   : > { %v5612_v47 = vpop.f32.mrf.mxu1 }
0x1ff9   : > { %v5613_v14 = vpop.f32.mrf.mxu1 }
0x1ffa   : > { %v5614_v0 = vadd.f32 %v5613_v14, %v5612_v47 }
0x1ffb   : > { %v5615_v56 = vpop.f32.mrf.mxu1 }
0x1ffc   : > { %v4801_v15 = vadd.f32 %v5614_v0, %v5381_v39  ;;  %v5401_v0 = vld [vmem:[%s7759_s20 + $0x1] ss:$0 sm:$0xff] }
0x1ffd   : > { %v5616_v18 = vpop.f32.mrf.mxu1 }
0x1ffe   : > { %v5617_v22 = vadd.f32 %v5616_v18, %v5615_v56  ;;  %v4815_v33 = vadd.f32 %v4801_v15, %v7538_v42 }
0x1fff   : > { %v5618_v5 = vpop.f32.mrf.mxu1 }
0x2000   : > { %v4804_v21 = vadd.f32 %v5617_v22, %v5381_v39  ;;  %4823 = vadd.xlane.f32.xlu0 %v4815_v33 }
0x2001   : > { %v5619_v20 = vpop.f32.mrf.mxu1 }
0x2002   : > { %v5620_v7 = vadd.f32 %v5619_v20, %v5618_v5  ;;  %v4816_v40 = vadd.f32 %v4804_v21, %v7540_v23 }
0x2003   : > { %v5621_v43 = vpop.f32.mrf.mxu1 }
0x2004   : > { %v4809_v44 = vadd.f32 %v5620_v7, %v5381_v39  ;;  %4825 = vadd.xlane.f32.xlu1 %v4816_v40 }
0x2005   : > { %v5622_v13 = vpop.f32.mrf.mxu1 }
0x2006   : > { %v5623_v45 = vadd.f32 %v5622_v13, %v5621_v43  ;;  %v4817_v41 = vadd.f32 %v4809_v44, %v7547_v32 }
0x2008   : > { %v4812_v35 = vadd.f32 %v5623_v45, %v5381_v39  ;;  %4827 = vadd.xlane.f32.xlu0 %v4817_v41 }
0x200a   : > { %v4818_v52 = vadd.f32 %v4812_v35, %v7549_v6 }
0x200c   : > { %4829 = vadd.xlane.f32.xlu1 %v4818_v52 }
0x2089   : > { %v4824_v42 = vpop.xlane.xlu0 %4823 }
0x208a   : > { %v4831_v38 = vmul.f32 0.0078125, %v4824_v42 }
0x208c   : > { %v7655_v48 = vsub.f32 %v4815_v33, %v4831_v38 }
0x208d   : > { %v4826_v19 = vpop.xlane.xlu1 %4825 }
0x208e   : > { %v4832_v49 = vmul.f32 0.0078125, %v4826_v19  ;;  %v4839_v23 = vmul.f32 %v7655_v48, %v7655_v48 }
0x2090   : > { %v4836_v50 = vsub.f32 %v4816_v40, %v4832_v49  ;;  %4843 = vadd.xlane.f32.xlu0 %v4839_v23 }
0x2091   : > { %v4828_v51 = vpop.xlane.xlu0 %4827 }
0x2092   : > { %v4833_v54 = vmul.f32 0.0078125, %v4828_v51  ;;  %v4840_v61 = vmul.f32 %v4836_v50, %v4836_v50 }
0x2094   : > { %v4837_v32 = vsub.f32 %v4817_v41, %v4833_v54  ;;  %4845 = vadd.xlane.f32.xlu1 %v4840_v61 }
0x2095   : > { %v4830_v63 = vpop.xlane.xlu1 %4829 }
0x2096   : > { %v4834_v1 = vmul.f32 0.0078125, %v4830_v63  ;;  %v4841_v6 = vmul.f32 %v4837_v32, %v4837_v32 }
0x2098   : > { %v4838_v28 = vsub.f32 %v4818_v52, %v4834_v1  ;;  %4847 = vadd.xlane.f32.xlu0 %v4841_v6 }
0x209a   : > { %v4842_v29 = vmul.f32 %v4838_v28, %v4838_v28 }
0x209c   : > { %4849 = vadd.xlane.f32.xlu1 %v4842_v29 }
0x2119   : > { %v4844_v31 = vpop.xlane.xlu0 %4843 }
0x211a   : > { %v4851_v25 = vmul.f32 0.0078125, %v4844_v31 }
0x211c   : > { %v4855_v26 = vadd.f32 1e-05, %v4851_v25 }
0x211d   : > { %v4846_v27 = vpop.xlane.xlu1 %4845 }
0x211e   : > { %v4852_v30 = vmul.f32 0.0078125, %v4846_v27  ;;  %6358 = vrsqrt.f32 %v4855_v26 }
0x2120   : > { %v4856_v8 = vadd.f32 1e-05, %v4852_v30 }
0x2121   : > { %v4848_v36 = vpop.xlane.xlu0 %4847 }
0x2122   : > { %6360 = vrsqrt.f32 %v4856_v8  ;;  %v4853_v10 = vmul.f32 0.0078125, %v4848_v36 }
0x2124   : > { %v4857_v37 = vadd.f32 1e-05, %v4853_v10 }
0x2125   : > { %v4850_v34 = vpop.xlane.xlu1 %4849 }
0x2126   : > { %6362 = vrsqrt.f32 %v4857_v37  ;;  %v4854_v12 = vmul.f32 0.0078125, %v4850_v34 }
0x2128   : > { %v4858_v46 = vadd.f32 1e-05, %v4854_v12 }
0x212a   : > { %6364 = vrsqrt.f32 %v4858_v46 }
0x212b   : > { %v6359_v53 = vpop.eup %6358 }
0x212c   : > { %v4863_v55 = vmul.f32 %v6359_v53, %v7655_v48  ;;  %v4915_v48 = vld [vmem:[%s7802_s4] sm:$0x1]  ;;  %s6372_s4 = scalar_lea.vmem %s6371_s29, 32 }
0x212d   : > { %p6374_p1 = scmp.lt.s32.totalorder %s6372_s4, %s6366_s5 }
0x212e   : > { %v4873_v39 = vmul.f32 %v5400_v24, %v4863_v55 }
0x212f   : > { %v6361_v3 = vpop.eup %6360  ;;  %p6375_p2 = por %p6374_p1, %p6373_p0 }
0x2130   : > { %v4864_v62 = vmul.f32 %v6361_v3, %v4836_v50  ;;  %v4883_v22 = vadd.f32 %v5401_v0, %v4873_v39 }
0x2131   : > { %p6376_p3 = pnand %p6375_p2, %p6369_p13 }
0x2132   : > { %v4874_v9 = vmul.f32 %v5400_v24, %v4864_v62 }
0x2133   : > { %v6363_v47 = vpop.eup %6362 }
0x2134   : > { %v4865_v14 = vmul.f32 %v6363_v47, %v4837_v32  ;;  %v4884_v56 = vadd.f32 %v5401_v0, %v4874_v9 }
0x2136   : > { %v4875_v15 = vmul.f32 %v5400_v24, %v4865_v14  ;;  %v4887_v21 = vadd.f32 %v4884_v56, %v4883_v22 }
0x2137   : > { %v6365_v18 = vpop.eup %6364 }
0x2138   : > { %v4885_v33 = vadd.f32 %v5401_v0, %v4875_v15  ;;  %v4866_v5 = vmul.f32 %v6365_v18, %v4838_v28 }
0x213a   : > { %v4876_v20 = vmul.f32 %v5400_v24, %v4866_v5  ;;  %v4888_v7 = vadd.f32 %v4887_v21, %v4885_v33 }
0x213c   : > { %v4886_v40 = vadd.f32 %v5401_v0, %v4876_v20 }
0x213e   : > { %v4889_v43 = vadd.f32 %v4888_v7, %v4886_v40 }
0x2140   : > { %v4890_v44 = vrot.slane %v4889_v43, 4 }
0x2142   : > { %v4891_v13 = vadd.f32 %v4890_v44, %v4889_v43 }
0x2144   : > { %v4892_v45 = vrot.slane %v4891_v13, 2 }
0x2146   : > { %v4893_v41 = vadd.f32 %v4892_v45, %v4891_v13 }
0x2148   : > { %v4894_v35 = vrot.slane %v4893_v41, 1 }
0x214a   : > { %v4895_v52 = vadd.f32 %v4894_v35, %v4893_v41 }
0x214c   : > { %v4897_v42 = vmul.f32 0.03125, %v4895_v52 }
0x214e   : > { %v4898_v38 = vpack.c.bf16 %v4897_v42, %v4897_v42 }
0x2150   : > { %5902 = vmatmul.mubr.bf16.vlgmr.msra.gmra.mxu0 %v4898_v38 }
0x2210   : > { %v4998_v19 = vpop.f32.mrf.mxu0 }
0x2211   : > { %v4999_v49 = vadd.f32 %v4998_v19, %v4915_v48 }
0x2212   : > { %v5903_v23 = vpop.f32.mrf.mxu0 }
0x2213   : > { %5005 = vst.msk [vmem:[%s702_s3] sm:$0x1] %vm5004_vm2, %v4999_v49 }
0x2214   : > { %v5001_v50 = vpop.f32.mrf.mxu0 }
0x2215   : > { %6379 = shalt.err (!%p6376_p3)
}
0x2216   : > { %s6380_s7 = scalar_lea.hbm %s7698_s23, 16  ;;  %s6384_s28 = scalar_lea.hbm %s7804_s2, 32 }
0x2217   : > { %p6381_p4 = scmp.ne.s32.totalorder %s7698_s23, %s6380_s7  ;;  %p6385_p9 = scmp.lt.s32.totalorder %s7698_s23, %s7804_s2 }
0x2218   : > { %p6386_p10 = scmp.lt.s32.totalorder %s6384_s28, %s6380_s7 }
0x2219   : > { %p6382_p7 = pnand %p6381_p4, %p6593_p5 }
0x221a   : > { %p6387_p11 = por %p6386_p10, %p6385_p9 }
0x221b   : > { %p6383_p8 = pneg %p6382_p7 }
0x221d   : > { %p6388_p12 = pnand %p6387_p11, %p6383_p8 }
0x221f   : > { %6391 = shalt.err (!%p6388_p12)
}
0x2220   : > { %5921 = dma.vmem_to_hbm [thread:$0]  (%p6593_p5), %s7700_s1, 16, %s7698_s23, %s5007_s6   ;;  %v5904_v51 = vpop.f32.mrf.mxu0 }
0x2221 PF: > { %s7805_s5 = sld [smem:[#allocation7_spill]] }
0x2222   : > { %s7806_s29 = sld [smem:[#allocation5_spill]] }
0x2227   : > { %p5927_p13 = scmp.ge.s32.totalorder %s7805_s5, 2 }
0x2228   : > { %s5031_s24 = sand.u32 1, %s7806_s29  }
0x2229   : > { %p5924_p0 = pnand %p5927_p13, %p6597_p6  ;;  %s5032_s3 = scalar_lea.sflag [#allocation3], %s5031_s24 }
0x222b   : > { %p5925_p1 = pneg %p5924_p0 }
0x222d   : > { %6409 = dma.done.wait (%p5925_p1), %s5032_s3, 16  }
0x222e   : > { %6411 = vsyncadd (%p5925_p1), %s5032_s3, 4294967280  ;;  %s7808_s25 = sld [smem:[#allocation8_spill]]  ;;  %s7811_s4 = smov %s6418_s30 }
0x222f   : > { %s7809_s7 = sld [smem:[#allocation6_spill]] }
0x2230   : > { %s7810_s24 = sld [smem:[#allocation9_spill]] }
0x2234   : > { %p33_p2 = scmp.ge.s32.totalorder %s7808_s25, 4  }
0x2235   : > { %s7812_s30 = smov %s7809_s7 }
0x2236   :  { %35 = sbr.rel (!%p33_p2) target bundleno = 14 (0xe), region = 159 }
0x223b   :  { %5036 = vsyncpa [#allocation3], 1 }
0x223c   :  { %5038 = vsyncpa [#allocation3 + $0x1], 1 }

</bundles_post_ra>
